<compile_context>
chip_gen: v5e
topology: v5e:2x2
jax: 0.10.0
libtpu: 0.0.40
codegen_flags: <defaults>
</compile_context>

<pallas_src>
import jax
import jax.numpy as jnp
from jax import lax
from jax.experimental import pallas as pl
from jax.experimental.pallas import tpu as pltpu


# ----------------------------- Fused forward kernel -----------------------------
def _gru_net_kernel(x_ref, wih1_ref, whh1_ref, bx1_ref, bhn1_ref,
                    wih2_ref, whh2_ref, bx2_ref, bhn2_ref,
                    fcw_ref, fcb_ref, out_ref, xg1_scr):
    """Fused 2-layer GRU + FC head, both recurrences interleaved in one loop.

    x_ref    : (T*B, D)  time-major, flattened input (rows t*B:(t+1)*B = step t), bf16
    wih*_ref : (D|H, 3H) input-to-hidden weights, pre-transposed (bf16)
    whh*_ref : (H, 3H)   hidden-to-hidden weights, pre-transposed (bf16)
    bx*_ref  : (1, 3H)   b_ih + [b_hh_r, b_hh_z, 0]  (folded, f32)
    bhn*_ref : (1, H)    b_hh n-gate slice (f32)
    fcw_ref  : (H, O), fcb_ref: (1, O)
    out_ref  : (B, O)
    xg1_scr  : VMEM (T*B, 3H) f32 — hoisted layer-1 gate projections
    """
    B = out_ref.shape[0]
    TB = xg1_scr.shape[0]
    T = TB // B
    H = whh1_ref.shape[0]
    D = x_ref.shape[1]
    cdt = whh1_ref.dtype            # MXU compute dtype (bf16); accumulation is f32

    # ---- Layer-1 input projection, hoisted off the serial path -------------------
    # input_size is tiny (2): two VPU broadcast-FMAs instead of a zero-padded K=2
    # MXU contraction. (Products of bf16 values in f32 == bf16 MXU w/ f32 acc.)
    if D <= 8:
        xin = x_ref[...].astype(jnp.float32)                       # (TB, D)
        w1 = wih1_ref[...].astype(jnp.float32)                     # (D, 3H)
        acc = jnp.broadcast_to(bx1_ref[...], (TB, 3 * H))
        for d in range(D):
            acc = acc + xin[:, d:d + 1] * w1[d:d + 1, :]
        xg1_scr[...] = acc
    else:
        xg1_scr[...] = (jnp.dot(x_ref[...], wih1_ref[...],
                                preferred_element_type=jnp.float32) + bx1_ref[...])

    # ---- Bias broadcasts hoisted out of the unrolled recurrence ------------------
    b_hn1 = jnp.broadcast_to(bhn1_ref[...], (B, H))
    b_hn2 = jnp.broadcast_to(bhn2_ref[...], (B, H))
    bx2 = jnp.broadcast_to(bx2_ref[...], (B, 3 * H))

    def gru_gates(xg, hg_rz, hg_n, b_hn, h_prev):
        r = jax.nn.sigmoid(xg[:, :H] + hg_rz[:, :H])
        z = jax.nn.sigmoid(xg[:, H:2 * H] + hg_rz[:, H:2 * H])
        n = jnp.tanh(xg[:, 2 * H:] + r * (hg_n + b_hn))
        return (1.0 - z) * n + z * h_prev

    def step(t, carry):
        h1, h2 = carry

        # Layer-2 hidden projection for step t depends only on h2_{t-1}: it can
        # issue immediately and overlap all of layer-1's step-t work.
        # W_hh is read from the ref per chunk inside the dot (never held live
        # across the unroll); r/z and n chunks are split so gate math can start
        # before the n-gate columns finish draining from the MXU.
        h2c = h2.astype(cdt)
        hg2_rz = jnp.dot(h2c, whh2_ref[:, :2 * H], preferred_element_type=jnp.float32)
        hg2_n = jnp.dot(h2c, whh2_ref[:, 2 * H:], preferred_element_type=jnp.float32)

        # ---- Layer-1 step t ----
        row = pl.multiple_of(t * B, B)                  # sublane-aligned slab start
        xg1 = xg1_scr[pl.ds(row, B), :]                 # hoisted x-projection, step t
        h1c = h1.astype(cdt)
        hg1_rz = jnp.dot(h1c, whh1_ref[:, :2 * H], preferred_element_type=jnp.float32)
        hg1_n = jnp.dot(h1c, whh1_ref[:, 2 * H:], preferred_element_type=jnp.float32)
        h1_new = gru_gates(xg1, hg1_rz, hg1_n, b_hn1, h1)

        # ---- Layer-2 step t (x-projection only needs h1_t, computed just above) ----
        xg2 = jnp.dot(h1_new.astype(cdt), wih2_ref[...],
                      preferred_element_type=jnp.float32) + bx2
        h2_new = gru_gates(xg2, hg2_rz, hg2_n, b_hn2, h2)

        return h1_new, h2_new

    h0 = jnp.zeros((B, H), jnp.float32)
    _, h2_last = lax.fori_loop(0, T, step, (h0, h0), unroll=True)

    # ---- FC head on the last hidden state (dropout p=0.3 -> identity, eval) ------
    out_ref[...] = (jnp.dot(h2_last.astype(cdt), fcw_ref[...],
                            preferred_element_type=jnp.float32)
                    + fcb_ref[...]).astype(out_ref.dtype)


@jax.jit
def gru_network_forward(x, kp):
    """x: (B, T, input_size) batch_first (or (B, input_size) -> seq len 1)."""
    if x.ndim == 2:                         # mirrors x.unsqueeze(1)
        x = x[:, None, :]
    B, T, D = x.shape
    H = kp["whh1"].shape[0]
    O = kp["fcw"].shape[1]
    cdt = kp["whh1"].dtype

    # Pad batch to a sublane multiple (rows are independent; padding is sliced off).
    B_pad = ((B + 7) // 8) * 8
    if B_pad != B:
        x = jnp.pad(x, ((0, B_pad - B), (0, 0), (0, 0)))

    # batch_first -> time-major, flattened: rows [t*B:(t+1)*B] belong to step t.
    x_flat = jnp.transpose(x, (1, 0, 2)).reshape(T * B_pad, D).astype(cdt)

    ins = (x_flat, kp["wih1"], kp["whh1"], kp["bx1"], kp["bhn1"],
           kp["wih2"], kp["whh2"], kp["bx2"], kp["bhn2"],
           kp["fcw"], kp["fcb"])

    # Size the VMEM request to the actual footprint (inputs + scratch + output),
    # with 2x headroom for Mosaic internal scratch; never ask for all of VMEM.
    in_bytes = sum(int(a.size) * a.dtype.itemsize for a in ins)
    scratch_bytes = T * B_pad * 3 * H * 4
    out_bytes = B_pad * O * 4
    vmem_limit = int(min(max(2 * (in_bytes + scratch_bytes + out_bytes),
                             4 * 1024 * 1024), 32 * 1024 * 1024))

    vmem_spec = pl.BlockSpec(memory_space=pltpu.MemorySpace.VMEM)

    out = pl.pallas_call(
        _gru_net_kernel,
        out_shape=jax.ShapeDtypeStruct((B_pad, O), jnp.float32),
        in_specs=[vmem_spec] * len(ins),            # whole-array VMEM residency,
        out_specs=vmem_spec,                        # no grid => no double-buffering
        scratch_shapes=[
            pltpu.VMEM((T * B_pad, 3 * H), jnp.float32),   # hoisted layer-1 gate proj
        ],
        compiler_params=pltpu.CompilerParams(vmem_limit_bytes=vmem_limit),
    )(*ins)
    return out[:B]


# --------------------------- Pure-JAX reference ---------------------------------
def gru_network_reference(x, raw, cdt):
    """Standard (unfolded) PyTorch GRU math, with the same bf16 matmul casts."""
    if x.ndim == 2:
        x = x[:, None, :]
    x_tm = jnp.transpose(x, (1, 0, 2)).astype(jnp.float32)

    def run_layer(x_seq, lay):
        H = lay["w_hh"].shape[1]
        w_ih_t = lay["w_ih"].T.astype(cdt)   # (D, 3H)
        w_hh_t = lay["w_hh"].T.astype(cdt)   # (H, 3H)
        b_ih = lay["b_ih"][None, :]
        b_hh = lay["b_hh"][None, :]

        def step(h, x_t):
            xg = jnp.dot(x_t.astype(cdt), w_ih_t,
                         preferred_element_type=jnp.float32) + b_ih
            hg = jnp.dot(h.astype(cdt), w_hh_t,
                         preferred_element_type=jnp.float32) + b_hh
            r = jax.nn.sigmoid(xg[:, :H] + hg[:, :H])
            z = jax.nn.sigmoid(xg[:, H:2 * H] + hg[:, H:2 * H])
            n = jnp.tanh(xg[:, 2 * H:] + r * hg[:, 2 * H:])
            h_new = (1.0 - z) * n + z * h
            return h_new, h_new

        h0 = jnp.zeros((x_seq.shape[1], H), jnp.float32)
        _, hs = lax.scan(step, h0, x_seq)
        return hs

    h_seq = x_tm
    for lay in raw["gru"]:
        h_seq = run_layer(h_seq, lay)
    h_last = h_seq[-1]
    return (jnp.dot(h_last.astype(cdt), raw["fc_w"].T.astype(cdt),
                    preferred_element_type=jnp.float32) + raw["fc_b"][None, :])


# ------------------------------ Param init / prep --------------------------------
def init_params(key, input_size, hidden_size, output_size, num_layers):
    """PyTorch-layout f32 params (uniform +/- 1/sqrt(H))."""
    bound = 1.0 / jnp.sqrt(jnp.float32(hidden_size))
    params = {"gru": []}
    for layer in range(num_layers):
        d_in = input_size if layer == 0 else hidden_size
        key, k1, k2, k3, k4 = jax.random.split(key, 5)
        params["gru"].append({
            "w_ih": jax.random.uniform(k1, (3 * hidden_size, d_in),
                                       jnp.float32, -bound, bound),
            "w_hh": jax.random.uniform(k2, (3 * hidden_size, hidden_size),
                                       jnp.float32, -bound, bound),
            "b_ih": jax.random.uniform(k3, (3 * hidden_size,),
                                       jnp.float32, -bound, bound),
            "b_hh": jax.random.uniform(k4, (3 * hidden_size,),
                                       jnp.float32, -bound, bound),
        })
    key, k5, k6 = jax.random.split(key, 3)
    params["fc_w"] = jax.random.uniform(k5, (output_size, hidden_size),
                                        jnp.float32, -bound, bound)
    params["fc_b"] = jax.random.uniform(k6, (output_size,),
                                        jnp.float32, -bound, bound)
    return params


def prepare_kernel_params(raw, cdt=jnp.bfloat16):
    """Transpose weights, fold biases, cast weights to the MXU compute dtype."""
    assert len(raw["gru"]) == 2, "fused kernel is specialized to num_layers=2"
    kp = {}
    for li, lay in enumerate(raw["gru"], start=1):
        H = lay["w_hh"].shape[1]
        b_ih, b_hh = lay["b_ih"], lay["b_hh"]
        b_fold = b_ih.at[:2 * H].add(b_hh[:2 * H])       # fold r/z parts of b_hh
        kp[f"wih{li}"] = lay["w_ih"].T.astype(cdt)        # (D|H, 3H)
        kp[f"whh{li}"] = lay["w_hh"].T.astype(cdt)        # (H, 3H)
        kp[f"bx{li}"] = b_fold[None, :].astype(jnp.float32)        # (1, 3H)
        kp[f"bhn{li}"] = b_hh[None, 2 * H:].astype(jnp.float32)    # (1, H)
    kp["fcw"] = raw["fc_w"].T.astype(cdt)                 # (H, O)
    kp["fcb"] = raw["fc_b"][None, :].astype(jnp.float32)  # (1, O)
    return kp


if __name__ == "__main__":
    # Small shapes consistent with the module: input_size=2, output_size=3,
    # num_layers=2; hidden reduced 512 -> 128 for a compact demo.
    B, T, INPUT, HIDDEN, OUTPUT, LAYERS = 8, 8, 2, 128, 3, 2
    CDT = jnp.bfloat16    # MXU compute dtype; accumulation and gate math stay f32

    key = jax.random.PRNGKey(0)
    key, kx = jax.random.split(key)
    x = jax.random.normal(kx, (B, T, INPUT), jnp.float32)

    raw_params = init_params(key, INPUT, HIDDEN, OUTPUT, LAYERS)
    kparams = prepare_kernel_params(raw_params, CDT)

    out = gru_network_forward(x, kparams)
    out = jax.block_until_ready(out)

    ref = gru_network_reference(x, raw_params, CDT)
    assert out.shape == (B, OUTPUT), out.shape
    max_err = jnp.max(jnp.abs(out - ref))
    assert jnp.allclose(out, ref, atol=5e-3, rtol=5e-3), f"max abs err {max_err}"

    print("KERNEL_OK")
</pallas_src>

<mosaic_0001>
module attributes {stable_mosaic.version = 11 : i64} {
  func.func @_gru_net_kernel(%arg0: memref<64x2xbf16, #tpu.memory_space<vmem>>, %arg1: memref<2x384xbf16, #tpu.memory_space<vmem>>, %arg2: memref<128x384xbf16, #tpu.memory_space<vmem>>, %arg3: memref<1x384xf32, #tpu.memory_space<vmem>>, %arg4: memref<1x128xf32, #tpu.memory_space<vmem>>, %arg5: memref<128x384xbf16, #tpu.memory_space<vmem>>, %arg6: memref<128x384xbf16, #tpu.memory_space<vmem>>, %arg7: memref<1x384xf32, #tpu.memory_space<vmem>>, %arg8: memref<1x128xf32, #tpu.memory_space<vmem>>, %arg9: memref<128x3xbf16, #tpu.memory_space<vmem>>, %arg10: memref<1x3xf32, #tpu.memory_space<vmem>>, %arg11: memref<8x3xf32, #tpu.memory_space<vmem>>, %arg12: memref<64x384xf32, #tpu.memory_space<vmem>>) attributes {dimension_semantics = [], scalar_prefetch = 0 : i64, scratch_operands = 1 : i64, tpu.core_type = #tpu.core_type<tc>} {
    %c0 = arith.constant 0 : index
    %c0_0 = arith.constant 0 : index
    %0 = vector.load %arg0[%c0, %c0_0] : memref<64x2xbf16, #tpu.memory_space<vmem>>, vector<64x2xbf16>
    %1 = arith.extf %0 : vector<64x2xbf16> to vector<64x2xf32>
    %c0_1 = arith.constant 0 : index
    %c0_2 = arith.constant 0 : index
    %2 = vector.load %arg1[%c0_1, %c0_2] : memref<2x384xbf16, #tpu.memory_space<vmem>>, vector<2x384xbf16>
    %3 = arith.extf %2 : vector<2x384xbf16> to vector<2x384xf32>
    %c0_3 = arith.constant 0 : index
    %c0_4 = arith.constant 0 : index
    %4 = vector.load %arg3[%c0_3, %c0_4] : memref<1x384xf32, #tpu.memory_space<vmem>>, vector<1x384xf32>
    %5 = vector.shape_cast %4 : vector<1x384xf32> to vector<1x384xf32>
    %6 = vector.broadcast %5 : vector<1x384xf32> to vector<64x384xf32>
    %7 = vector.extract_strided_slice %1 {offsets = [0, 0], sizes = [64, 1], strides = [1, 1]} : vector<64x2xf32> to vector<64x1xf32>
    %8 = vector.extract_strided_slice %3 {offsets = [0, 0], sizes = [1, 384], strides = [1, 1]} : vector<2x384xf32> to vector<1x384xf32>
    %9 = vector.broadcast %7 : vector<64x1xf32> to vector<64x384xf32>
    %10 = vector.broadcast %8 : vector<1x384xf32> to vector<64x384xf32>
    %11 = arith.mulf %9, %10 : vector<64x384xf32>
    %12 = arith.addf %6, %11 : vector<64x384xf32>
    %13 = vector.extract_strided_slice %1 {offsets = [0, 1], sizes = [64, 1], strides = [1, 1]} : vector<64x2xf32> to vector<64x1xf32>
    %14 = vector.extract_strided_slice %3 {offsets = [1, 0], sizes = [1, 384], strides = [1, 1]} : vector<2x384xf32> to vector<1x384xf32>
    %15 = vector.broadcast %13 : vector<64x1xf32> to vector<64x384xf32>
    %16 = vector.broadcast %14 : vector<1x384xf32> to vector<64x384xf32>
    %17 = arith.mulf %15, %16 : vector<64x384xf32>
    %18 = arith.addf %12, %17 : vector<64x384xf32>
    %c0_5 = arith.constant 0 : index
    %c0_6 = arith.constant 0 : index
    %19 = vector.load %arg12[%c0_5, %c0_6] : memref<64x384xf32, #tpu.memory_space<vmem>>, vector<64x384xf32>
    tpu.vector_store %arg12[%c0_5, %c0_6], %18 {strides = array<i32>} : memref<64x384xf32, #tpu.memory_space<vmem>>, vector<64x384xf32>,
    %c0_7 = arith.constant 0 : index
    %c0_8 = arith.constant 0 : index
    %20 = vector.load %arg4[%c0_7, %c0_8] : memref<1x128xf32, #tpu.memory_space<vmem>>, vector<1x128xf32>
    %21 = vector.shape_cast %20 : vector<1x128xf32> to vector<1x128xf32>
    %22 = vector.broadcast %21 : vector<1x128xf32> to vector<8x128xf32>
    %c0_9 = arith.constant 0 : index
    %c0_10 = arith.constant 0 : index
    %23 = vector.load %arg8[%c0_9, %c0_10] : memref<1x128xf32, #tpu.memory_space<vmem>>, vector<1x128xf32>
    %24 = vector.shape_cast %23 : vector<1x128xf32> to vector<1x128xf32>
    %25 = vector.broadcast %24 : vector<1x128xf32> to vector<8x128xf32>
    %c0_11 = arith.constant 0 : index
    %c0_12 = arith.constant 0 : index
    %26 = vector.load %arg7[%c0_11, %c0_12] : memref<1x384xf32, #tpu.memory_space<vmem>>, vector<1x384xf32>
    %27 = vector.shape_cast %26 : vector<1x384xf32> to vector<1x384xf32>
    %28 = vector.broadcast %27 : vector<1x384xf32> to vector<8x384xf32>
    %cst = arith.constant 0.000000e+00 : f32
    %29 = vector.broadcast %cst : f32 to vector<8x128xf32>
    %c0_i32 = arith.constant 0 : i32
    %30 = arith.truncf %29 : vector<8x128xf32> to vector<8x128xbf16>
    %c0_13 = arith.constant 0 : index
    %c0_14 = arith.constant 0 : index
    %31 = vector.load %arg6[%c0_13, %c0_14] : memref<128x384xbf16, #tpu.memory_space<vmem>>, vector<128x256xbf16>
    %cst_15 = arith.constant dense<0.000000e+00> : vector<8x256xf32>
    %32 = tpu.matmul %30, %31, %cst_15 {dimension_numbers = #tpu.dot_dimension_numbers<[1], [0], [0], [1], [0, 0, 1, 1], [], []>} : vector<8x128xbf16>, vector<128x256xbf16>, vector<8x256xf32> -> vector<8x256xf32>
    %c0_16 = arith.constant 0 : index
    %c256 = arith.constant 256 : index
    %33 = vector.load %arg6[%c0_16, %c256] : memref<128x384xbf16, #tpu.memory_space<vmem>>, vector<128x128xbf16>
    %cst_17 = arith.constant dense<0.000000e+00> : vector<8x128xf32>
    %34 = tpu.matmul %30, %33, %cst_17 {dimension_numbers = #tpu.dot_dimension_numbers<[1], [0], [0], [1], [0, 0, 1, 1], [], []>} : vector<8x128xbf16>, vector<128x128xbf16>, vector<8x128xf32> -> vector<8x128xf32>
    %c8_i32 = arith.constant 8 : i32
    %35 = arith.muli %c0_i32, %c8_i32 : i32
    %36 = tpu.assume_multiple %35, 8 : i32
    %37 = arith.index_cast %36 : i32 to index
    %c0_18 = arith.constant 0 : index
    %38 = vector.load %arg12[%37, %c0_18] : memref<64x384xf32, #tpu.memory_space<vmem>>, vector<8x384xf32>
    %39 = arith.truncf %29 : vector<8x128xf32> to vector<8x128xbf16>
    %c0_19 = arith.constant 0 : index
    %c0_20 = arith.constant 0 : index
    %40 = vector.load %arg2[%c0_19, %c0_20] : memref<128x384xbf16, #tpu.memory_space<vmem>>, vector<128x256xbf16>
    %cst_21 = arith.constant dense<0.000000e+00> : vector<8x256xf32>
    %41 = tpu.matmul %39, %40, %cst_21 {dimension_numbers = #tpu.dot_dimension_numbers<[1], [0], [0], [1], [0, 0, 1, 1], [], []>} : vector<8x128xbf16>, vector<128x256xbf16>, vector<8x256xf32> -> vector<8x256xf32>
    %c0_22 = arith.constant 0 : index
    %c256_23 = arith.constant 256 : index
    %42 = vector.load %arg2[%c0_22, %c256_23] : memref<128x384xbf16, #tpu.memory_space<vmem>>, vector<128x128xbf16>
    %cst_24 = arith.constant dense<0.000000e+00> : vector<8x128xf32>
    %43 = tpu.matmul %39, %42, %cst_24 {dimension_numbers = #tpu.dot_dimension_numbers<[1], [0], [0], [1], [0, 0, 1, 1], [], []>} : vector<8x128xbf16>, vector<128x128xbf16>, vector<8x128xf32> -> vector<8x128xf32>
    %44 = vector.extract_strided_slice %38 {offsets = [0, 0], sizes = [8, 128], strides = [1, 1]} : vector<8x384xf32> to vector<8x128xf32>
    %45 = vector.extract_strided_slice %41 {offsets = [0, 0], sizes = [8, 128], strides = [1, 1]} : vector<8x256xf32> to vector<8x128xf32>
    %46 = arith.addf %44, %45 : vector<8x128xf32>
    %47 = arith.negf %46 : vector<8x128xf32>
    %48 = math.exp %47 : vector<8x128xf32>
    %cst_25 = arith.constant 1.000000e+00 : f32
    %49 = vector.broadcast %cst_25 : f32 to vector<8x128xf32>
    %50 = arith.addf %49, %48 : vector<8x128xf32>
    %51 = arith.divf %49, %50 : vector<8x128xf32>
    %52 = vector.extract_strided_slice %38 {offsets = [0, 128], sizes = [8, 128], strides = [1, 1]} : vector<8x384xf32> to vector<8x128xf32>
    %53 = vector.extract_strided_slice %41 {offsets = [0, 128], sizes = [8, 128], strides = [1, 1]} : vector<8x256xf32> to vector<8x128xf32>
    %54 = arith.addf %52, %53 : vector<8x128xf32>
    %55 = arith.negf %54 : vector<8x128xf32>
    %56 = math.exp %55 : vector<8x128xf32>
    %cst_26 = arith.constant 1.000000e+00 : f32
    %57 = vector.broadcast %cst_26 : f32 to vector<8x128xf32>
    %58 = arith.addf %57, %56 : vector<8x128xf32>
    %59 = arith.divf %57, %58 : vector<8x128xf32>
    %60 = vector.extract_strided_slice %38 {offsets = [0, 256], sizes = [8, 128], strides = [1, 1]} : vector<8x384xf32> to vector<8x128xf32>
    %61 = arith.addf %43, %22 : vector<8x128xf32>
    %62 = arith.mulf %51, %61 : vector<8x128xf32>
    %63 = arith.addf %60, %62 : vector<8x128xf32>
    %64 = math.tanh %63 : vector<8x128xf32>
    %cst_27 = arith.constant 1.000000e+00 : f32
    %65 = vector.broadcast %cst_27 : f32 to vector<8x128xf32>
    %66 = arith.subf %65, %59 : vector<8x128xf32>
    %67 = arith.mulf %66, %64 : vector<8x128xf32>
    %68 = arith.mulf %59, %29 : vector<8x128xf32>
    %69 = arith.addf %67, %68 : vector<8x128xf32>
    %70 = arith.truncf %69 : vector<8x128xf32> to vector<8x128xbf16>
    %c0_28 = arith.constant 0 : index
    %c0_29 = arith.constant 0 : index
    %71 = vector.load %arg5[%c0_28, %c0_29] : memref<128x384xbf16, #tpu.memory_space<vmem>>, vector<128x384xbf16>
    %cst_30 = arith.constant dense<0.000000e+00> : vector<8x384xf32>
    %72 = tpu.matmul %70, %71, %cst_30 {dimension_numbers = #tpu.dot_dimension_numbers<[1], [0], [0], [1], [0, 0, 1, 1], [], []>} : vector<8x128xbf16>, vector<128x384xbf16>, vector<8x384xf32> -> vector<8x384xf32>
    %73 = arith.addf %72, %28 : vector<8x384xf32>
    %74 = vector.extract_strided_slice %73 {offsets = [0, 0], sizes = [8, 128], strides = [1, 1]} : vector<8x384xf32> to vector<8x128xf32>
    %75 = vector.extract_strided_slice %32 {offsets = [0, 0], sizes = [8, 128], strides = [1, 1]} : vector<8x256xf32> to vector<8x128xf32>
    %76 = arith.addf %74, %75 : vector<8x128xf32>
    %77 = arith.negf %76 : vector<8x128xf32>
    %78 = math.exp %77 : vector<8x128xf32>
    %cst_31 = arith.constant 1.000000e+00 : f32
    %79 = vector.broadcast %cst_31 : f32 to vector<8x128xf32>
    %80 = arith.addf %79, %78 : vector<8x128xf32>
    %81 = arith.divf %79, %80 : vector<8x128xf32>
    %82 = vector.extract_strided_slice %73 {offsets = [0, 128], sizes = [8, 128], strides = [1, 1]} : vector<8x384xf32> to vector<8x128xf32>
    %83 = vector.extract_strided_slice %32 {offsets = [0, 128], sizes = [8, 128], strides = [1, 1]} : vector<8x256xf32> to vector<8x128xf32>
    %84 = arith.addf %82, %83 : vector<8x128xf32>
    %85 = arith.negf %84 : vector<8x128xf32>
    %86 = math.exp %85 : vector<8x128xf32>
    %cst_32 = arith.constant 1.000000e+00 : f32
    %87 = vector.broadcast %cst_32 : f32 to vector<8x128xf32>
    %88 = arith.addf %87, %86 : vector<8x128xf32>
    %89 = arith.divf %87, %88 : vector<8x128xf32>
    %90 = vector.extract_strided_slice %73 {offsets = [0, 256], sizes = [8, 128], strides = [1, 1]} : vector<8x384xf32> to vector<8x128xf32>
    %91 = arith.addf %34, %25 : vector<8x128xf32>
    %92 = arith.mulf %81, %91 : vector<8x128xf32>
    %93 = arith.addf %90, %92 : vector<8x128xf32>
    %94 = math.tanh %93 : vector<8x128xf32>
    %cst_33 = arith.constant 1.000000e+00 : f32
    %95 = vector.broadcast %cst_33 : f32 to vector<8x128xf32>
    %96 = arith.subf %95, %89 : vector<8x128xf32>
    %97 = arith.mulf %96, %94 : vector<8x128xf32>
    %98 = arith.mulf %89, %29 : vector<8x128xf32>
    %99 = arith.addf %97, %98 : vector<8x128xf32>
    %c1_i32 = arith.constant 1 : i32
    %100 = arith.truncf %99 : vector<8x128xf32> to vector<8x128xbf16>
    %c0_34 = arith.constant 0 : index
    %c0_35 = arith.constant 0 : index
    %101 = vector.load %arg6[%c0_34, %c0_35] : memref<128x384xbf16, #tpu.memory_space<vmem>>, vector<128x256xbf16>
    %cst_36 = arith.constant dense<0.000000e+00> : vector<8x256xf32>
    %102 = tpu.matmul %100, %101, %cst_36 {dimension_numbers = #tpu.dot_dimension_numbers<[1], [0], [0], [1], [0, 0, 1, 1], [], []>} : vector<8x128xbf16>, vector<128x256xbf16>, vector<8x256xf32> -> vector<8x256xf32>
    %c0_37 = arith.constant 0 : index
    %c256_38 = arith.constant 256 : index
    %103 = vector.load %arg6[%c0_37, %c256_38] : memref<128x384xbf16, #tpu.memory_space<vmem>>, vector<128x128xbf16>
    %cst_39 = arith.constant dense<0.000000e+00> : vector<8x128xf32>
    %104 = tpu.matmul %100, %103, %cst_39 {dimension_numbers = #tpu.dot_dimension_numbers<[1], [0], [0], [1], [0, 0, 1, 1], [], []>} : vector<8x128xbf16>, vector<128x128xbf16>, vector<8x128xf32> -> vector<8x128xf32>
    %c8_i32_40 = arith.constant 8 : i32
    %105 = arith.muli %c1_i32, %c8_i32_40 : i32
    %106 = tpu.assume_multiple %105, 8 : i32
    %107 = arith.index_cast %106 : i32 to index
    %c0_41 = arith.constant 0 : index
    %108 = vector.load %arg12[%107, %c0_41] : memref<64x384xf32, #tpu.memory_space<vmem>>, vector<8x384xf32>
    %109 = arith.truncf %69 : vector<8x128xf32> to vector<8x128xbf16>
    %c0_42 = arith.constant 0 : index
    %c0_43 = arith.constant 0 : index
    %110 = vector.load %arg2[%c0_42, %c0_43] : memref<128x384xbf16, #tpu.memory_space<vmem>>, vector<128x256xbf16>
    %cst_44 = arith.constant dense<0.000000e+00> : vector<8x256xf32>
    %111 = tpu.matmul %109, %110, %cst_44 {dimension_numbers = #tpu.dot_dimension_numbers<[1], [0], [0], [1], [0, 0, 1, 1], [], []>} : vector<8x128xbf16>, vector<128x256xbf16>, vector<8x256xf32> -> vector<8x256xf32>
    %c0_45 = arith.constant 0 : index
    %c256_46 = arith.constant 256 : index
    %112 = vector.load %arg2[%c0_45, %c256_46] : memref<128x384xbf16, #tpu.memory_space<vmem>>, vector<128x128xbf16>
    %cst_47 = arith.constant dense<0.000000e+00> : vector<8x128xf32>
    %113 = tpu.matmul %109, %112, %cst_47 {dimension_numbers = #tpu.dot_dimension_numbers<[1], [0], [0], [1], [0, 0, 1, 1], [], []>} : vector<8x128xbf16>, vector<128x128xbf16>, vector<8x128xf32> -> vector<8x128xf32>
    %114 = vector.extract_strided_slice %108 {offsets = [0, 0], sizes = [8, 128], strides = [1, 1]} : vector<8x384xf32> to vector<8x128xf32>
    %115 = vector.extract_strided_slice %111 {offsets = [0, 0], sizes = [8, 128], strides = [1, 1]} : vector<8x256xf32> to vector<8x128xf32>
    %116 = arith.addf %114, %115 : vector<8x128xf32>
    %117 = arith.negf %116 : vector<8x128xf32>
    %118 = math.exp %117 : vector<8x128xf32>
    %cst_48 = arith.constant 1.000000e+00 : f32
    %119 = vector.broadcast %cst_48 : f32 to vector<8x128xf32>
    %120 = arith.addf %119, %118 : vector<8x128xf32>
    %121 = arith.divf %119, %120 : vector<8x128xf32>
    %122 = vector.extract_strided_slice %108 {offsets = [0, 128], sizes = [8, 128], strides = [1, 1]} : vector<8x384xf32> to vector<8x128xf32>
    %123 = vector.extract_strided_slice %111 {offsets = [0, 128], sizes = [8, 128], strides = [1, 1]} : vector<8x256xf32> to vector<8x128xf32>
    %124 = arith.addf %122, %123 : vector<8x128xf32>
    %125 = arith.negf %124 : vector<8x128xf32>
    %126 = math.exp %125 : vector<8x128xf32>
    %cst_49 = arith.constant 1.000000e+00 : f32
    %127 = vector.broadcast %cst_49 : f32 to vector<8x128xf32>
    %128 = arith.addf %127, %126 : vector<8x128xf32>
    %129 = arith.divf %127, %128 : vector<8x128xf32>
    %130 = vector.extract_strided_slice %108 {offsets = [0, 256], sizes = [8, 128], strides = [1, 1]} : vector<8x384xf32> to vector<8x128xf32>
    %131 = arith.addf %113, %22 : vector<8x128xf32>
    %132 = arith.mulf %121, %131 : vector<8x128xf32>
    %133 = arith.addf %130, %132 : vector<8x128xf32>
    %134 = math.tanh %133 : vector<8x128xf32>
    %cst_50 = arith.constant 1.000000e+00 : f32
    %135 = vector.broadcast %cst_50 : f32 to vector<8x128xf32>
    %136 = arith.subf %135, %129 : vector<8x128xf32>
    %137 = arith.mulf %136, %134 : vector<8x128xf32>
    %138 = arith.mulf %129, %69 : vector<8x128xf32>
    %139 = arith.addf %137, %138 : vector<8x128xf32>
    %140 = arith.truncf %139 : vector<8x128xf32> to vector<8x128xbf16>
    %c0_51 = arith.constant 0 : index
    %c0_52 = arith.constant 0 : index
    %141 = vector.load %arg5[%c0_51, %c0_52] : memref<128x384xbf16, #tpu.memory_space<vmem>>, vector<128x384xbf16>
    %cst_53 = arith.constant dense<0.000000e+00> : vector<8x384xf32>
    %142 = tpu.matmul %140, %141, %cst_53 {dimension_numbers = #tpu.dot_dimension_numbers<[1], [0], [0], [1], [0, 0, 1, 1], [], []>} : vector<8x128xbf16>, vector<128x384xbf16>, vector<8x384xf32> -> vector<8x384xf32>
    %143 = arith.addf %142, %28 : vector<8x384xf32>
    %144 = vector.extract_strided_slice %143 {offsets = [0, 0], sizes = [8, 128], strides = [1, 1]} : vector<8x384xf32> to vector<8x128xf32>
    %145 = vector.extract_strided_slice %102 {offsets = [0, 0], sizes = [8, 128], strides = [1, 1]} : vector<8x256xf32> to vector<8x128xf32>
    %146 = arith.addf %144, %145 : vector<8x128xf32>
    %147 = arith.negf %146 : vector<8x128xf32>
    %148 = math.exp %147 : vector<8x128xf32>
    %cst_54 = arith.constant 1.000000e+00 : f32
    %149 = vector.broadcast %cst_54 : f32 to vector<8x128xf32>
    %150 = arith.addf %149, %148 : vector<8x128xf32>
    %151 = arith.divf %149, %150 : vector<8x128xf32>
    %152 = vector.extract_strided_slice %143 {offsets = [0, 128], sizes = [8, 128], strides = [1, 1]} : vector<8x384xf32> to vector<8x128xf32>
    %153 = vector.extract_strided_slice %102 {offsets = [0, 128], sizes = [8, 128], strides = [1, 1]} : vector<8x256xf32> to vector<8x128xf32>
    %154 = arith.addf %152, %153 : vector<8x128xf32>
    %155 = arith.negf %154 : vector<8x128xf32>
    %156 = math.exp %155 : vector<8x128xf32>
    %cst_55 = arith.constant 1.000000e+00 : f32
    %157 = vector.broadcast %cst_55 : f32 to vector<8x128xf32>
    %158 = arith.addf %157, %156 : vector<8x128xf32>
    %159 = arith.divf %157, %158 : vector<8x128xf32>
    %160 = vector.extract_strided_slice %143 {offsets = [0, 256], sizes = [8, 128], strides = [1, 1]} : vector<8x384xf32> to vector<8x128xf32>
    %161 = arith.addf %104, %25 : vector<8x128xf32>
    %162 = arith.mulf %151, %161 : vector<8x128xf32>
    %163 = arith.addf %160, %162 : vector<8x128xf32>
    %164 = math.tanh %163 : vector<8x128xf32>
    %cst_56 = arith.constant 1.000000e+00 : f32
    %165 = vector.broadcast %cst_56 : f32 to vector<8x128xf32>
    %166 = arith.subf %165, %159 : vector<8x128xf32>
    %167 = arith.mulf %166, %164 : vector<8x128xf32>
    %168 = arith.mulf %159, %99 : vector<8x128xf32>
    %169 = arith.addf %167, %168 : vector<8x128xf32>
    %c2_i32 = arith.constant 2 : i32
    %170 = arith.truncf %169 : vector<8x128xf32> to vector<8x128xbf16>
    %c0_57 = arith.constant 0 : index
    %c0_58 = arith.constant 0 : index
    %171 = vector.load %arg6[%c0_57, %c0_58] : memref<128x384xbf16, #tpu.memory_space<vmem>>, vector<128x256xbf16>
    %cst_59 = arith.constant dense<0.000000e+00> : vector<8x256xf32>
    %172 = tpu.matmul %170, %171, %cst_59 {dimension_numbers = #tpu.dot_dimension_numbers<[1], [0], [0], [1], [0, 0, 1, 1], [], []>} : vector<8x128xbf16>, vector<128x256xbf16>, vector<8x256xf32> -> vector<8x256xf32>
    %c0_60 = arith.constant 0 : index
    %c256_61 = arith.constant 256 : index
    %173 = vector.load %arg6[%c0_60, %c256_61] : memref<128x384xbf16, #tpu.memory_space<vmem>>, vector<128x128xbf16>
    %cst_62 = arith.constant dense<0.000000e+00> : vector<8x128xf32>
    %174 = tpu.matmul %170, %173, %cst_62 {dimension_numbers = #tpu.dot_dimension_numbers<[1], [0], [0], [1], [0, 0, 1, 1], [], []>} : vector<8x128xbf16>, vector<128x128xbf16>, vector<8x128xf32> -> vector<8x128xf32>
    %c8_i32_63 = arith.constant 8 : i32
    %175 = arith.muli %c2_i32, %c8_i32_63 : i32
    %176 = tpu.assume_multiple %175, 8 : i32
    %177 = arith.index_cast %176 : i32 to index
    %c0_64 = arith.constant 0 : index
    %178 = vector.load %arg12[%177, %c0_64] : memref<64x384xf32, #tpu.memory_space<vmem>>, vector<8x384xf32>
    %179 = arith.truncf %139 : vector<8x128xf32> to vector<8x128xbf16>
    %c0_65 = arith.constant 0 : index
    %c0_66 = arith.constant 0 : index
    %180 = vector.load %arg2[%c0_65, %c0_66] : memref<128x384xbf16, #tpu.memory_space<vmem>>, vector<128x256xbf16>
    %cst_67 = arith.constant dense<0.000000e+00> : vector<8x256xf32>
    %181 = tpu.matmul %179, %180, %cst_67 {dimension_numbers = #tpu.dot_dimension_numbers<[1], [0], [0], [1], [0, 0, 1, 1], [], []>} : vector<8x128xbf16>, vector<128x256xbf16>, vector<8x256xf32> -> vector<8x256xf32>
    %c0_68 = arith.constant 0 : index
    %c256_69 = arith.constant 256 : index
    %182 = vector.load %arg2[%c0_68, %c256_69] : memref<128x384xbf16, #tpu.memory_space<vmem>>, vector<128x128xbf16>
    %cst_70 = arith.constant dense<0.000000e+00> : vector<8x128xf32>
    %183 = tpu.matmul %179, %182, %cst_70 {dimension_numbers = #tpu.dot_dimension_numbers<[1], [0], [0], [1], [0, 0, 1, 1], [], []>} : vector<8x128xbf16>, vector<128x128xbf16>, vector<8x128xf32> -> vector<8x128xf32>
    %184 = vector.extract_strided_slice %178 {offsets = [0, 0], sizes = [8, 128], strides = [1, 1]} : vector<8x384xf32> to vector<8x128xf32>
    %185 = vector.extract_strided_slice %181 {offsets = [0, 0], sizes = [8, 128], strides = [1, 1]} : vector<8x256xf32> to vector<8x128xf32>
    %186 = arith.addf %184, %185 : vector<8x128xf32>
    %187 = arith.negf %186 : vector<8x128xf32>
    %188 = math.exp %187 : vector<8x128xf32>
    %cst_71 = arith.constant 1.000000e+00 : f32
    %189 = vector.broadcast %cst_71 : f32 to vector<8x128xf32>
    %190 = arith.addf %189, %188 : vector<8x128xf32>
    %191 = arith.divf %189, %190 : vector<8x128xf32>
    %192 = vector.extract_strided_slice %178 {offsets = [0, 128], sizes = [8, 128], strides = [1, 1]} : vector<8x384xf32> to vector<8x128xf32>
    %193 = vector.extract_strided_slice %181 {offsets = [0, 128], sizes = [8, 128], strides = [1, 1]} : vector<8x256xf32> to vector<8x128xf32>
    %194 = arith.addf %192, %193 : vector<8x128xf32>
    %195 = arith.negf %194 : vector<8x128xf32>
    %196 = math.exp %195 : vector<8x128xf32>
    %cst_72 = arith.constant 1.000000e+00 : f32
    %197 = vector.broadcast %cst_72 : f32 to vector<8x128xf32>
    %198 = arith.addf %197, %196 : vector<8x128xf32>
    %199 = arith.divf %197, %198 : vector<8x128xf32>
    %200 = vector.extract_strided_slice %178 {offsets = [0, 256], sizes = [8, 128], strides = [1, 1]} : vector<8x384xf32> to vector<8x128xf32>
    %201 = arith.addf %183, %22 : vector<8x128xf32>
    %202 = arith.mulf %191, %201 : vector<8x128xf32>
    %203 = arith.addf %200, %202 : vector<8x128xf32>
    %204 = math.tanh %203 : vector<8x128xf32>
    %cst_73 = arith.constant 1.000000e+00 : f32
    %205 = vector.broadcast %cst_73 : f32 to vector<8x128xf32>
    %206 = arith.subf %205, %199 : vector<8x128xf32>
    %207 = arith.mulf %206, %204 : vector<8x128xf32>
    %208 = arith.mulf %199, %139 : vector<8x128xf32>
    %209 = arith.addf %207, %208 : vector<8x128xf32>
    %210 = arith.truncf %209 : vector<8x128xf32> to vector<8x128xbf16>
    %c0_74 = arith.constant 0 : index
    %c0_75 = arith.constant 0 : index
    %211 = vector.load %arg5[%c0_74, %c0_75] : memref<128x384xbf16, #tpu.memory_space<vmem>>, vector<128x384xbf16>
    %cst_76 = arith.constant dense<0.000000e+00> : vector<8x384xf32>
    %212 = tpu.matmul %210, %211, %cst_76 {dimension_numbers = #tpu.dot_dimension_numbers<[1], [0], [0], [1], [0, 0, 1, 1], [], []>} : vector<8x128xbf16>, vector<128x384xbf16>, vector<8x384xf32> -> vector<8x384xf32>
    %213 = arith.addf %212, %28 : vector<8x384xf32>
    %214 = vector.extract_strided_slice %213 {offsets = [0, 0], sizes = [8, 128], strides = [1, 1]} : vector<8x384xf32> to vector<8x128xf32>
    %215 = vector.extract_strided_slice %172 {offsets = [0, 0], sizes = [8, 128], strides = [1, 1]} : vector<8x256xf32> to vector<8x128xf32>
    %216 = arith.addf %214, %215 : vector<8x128xf32>
    %217 = arith.negf %216 : vector<8x128xf32>
    %218 = math.exp %217 : vector<8x128xf32>
    %cst_77 = arith.constant 1.000000e+00 : f32
    %219 = vector.broadcast %cst_77 : f32 to vector<8x128xf32>
    %220 = arith.addf %219, %218 : vector<8x128xf32>
    %221 = arith.divf %219, %220 : vector<8x128xf32>
    %222 = vector.extract_strided_slice %213 {offsets = [0, 128], sizes = [8, 128], strides = [1, 1]} : vector<8x384xf32> to vector<8x128xf32>
    %223 = vector.extract_strided_slice %172 {offsets = [0, 128], sizes = [8, 128], strides = [1, 1]} : vector<8x256xf32> to vector<8x128xf32>
    %224 = arith.addf %222, %223 : vector<8x128xf32>
    %225 = arith.negf %224 : vector<8x128xf32>
    %226 = math.exp %225 : vector<8x128xf32>
    %cst_78 = arith.constant 1.000000e+00 : f32
    %227 = vector.broadcast %cst_78 : f32 to vector<8x128xf32>
    %228 = arith.addf %227, %226 : vector<8x128xf32>
    %229 = arith.divf %227, %228 : vector<8x128xf32>
    %230 = vector.extract_strided_slice %213 {offsets = [0, 256], sizes = [8, 128], strides = [1, 1]} : vector<8x384xf32> to vector<8x128xf32>
    %231 = arith.addf %174, %25 : vector<8x128xf32>
    %232 = arith.mulf %221, %231 : vector<8x128xf32>
    %233 = arith.addf %230, %232 : vector<8x128xf32>
    %234 = math.tanh %233 : vector<8x128xf32>
    %cst_79 = arith.constant 1.000000e+00 : f32
    %235 = vector.broadcast %cst_79 : f32 to vector<8x128xf32>
    %236 = arith.subf %235, %229 : vector<8x128xf32>
    %237 = arith.mulf %236, %234 : vector<8x128xf32>
    %238 = arith.mulf %229, %169 : vector<8x128xf32>
    %239 = arith.addf %237, %238 : vector<8x128xf32>
    %c3_i32 = arith.constant 3 : i32
    %240 = arith.truncf %239 : vector<8x128xf32> to vector<8x128xbf16>
    %c0_80 = arith.constant 0 : index
    %c0_81 = arith.constant 0 : index
    %241 = vector.load %arg6[%c0_80, %c0_81] : memref<128x384xbf16, #tpu.memory_space<vmem>>, vector<128x256xbf16>
    %cst_82 = arith.constant dense<0.000000e+00> : vector<8x256xf32>
    %242 = tpu.matmul %240, %241, %cst_82 {dimension_numbers = #tpu.dot_dimension_numbers<[1], [0], [0], [1], [0, 0, 1, 1], [], []>} : vector<8x128xbf16>, vector<128x256xbf16>, vector<8x256xf32> -> vector<8x256xf32>
    %c0_83 = arith.constant 0 : index
    %c256_84 = arith.constant 256 : index
    %243 = vector.load %arg6[%c0_83, %c256_84] : memref<128x384xbf16, #tpu.memory_space<vmem>>, vector<128x128xbf16>
    %cst_85 = arith.constant dense<0.000000e+00> : vector<8x128xf32>
    %244 = tpu.matmul %240, %243, %cst_85 {dimension_numbers = #tpu.dot_dimension_numbers<[1], [0], [0], [1], [0, 0, 1, 1], [], []>} : vector<8x128xbf16>, vector<128x128xbf16>, vector<8x128xf32> -> vector<8x128xf32>
    %c8_i32_86 = arith.constant 8 : i32
    %245 = arith.muli %c3_i32, %c8_i32_86 : i32
    %246 = tpu.assume_multiple %245, 8 : i32
    %247 = arith.index_cast %246 : i32 to index
    %c0_87 = arith.constant 0 : index
    %248 = vector.load %arg12[%247, %c0_87] : memref<64x384xf32, #tpu.memory_space<vmem>>, vector<8x384xf32>
    %249 = arith.truncf %209 : vector<8x128xf32> to vector<8x128xbf16>
    %c0_88 = arith.constant 0 : index
    %c0_89 = arith.constant 0 : index
    %250 = vector.load %arg2[%c0_88, %c0_89] : memref<128x384xbf16, #tpu.memory_space<vmem>>, vector<128x256xbf16>
    %cst_90 = arith.constant dense<0.000000e+00> : vector<8x256xf32>
    %251 = tpu.matmul %249, %250, %cst_90 {dimension_numbers = #tpu.dot_dimension_numbers<[1], [0], [0], [1], [0, 0, 1, 1], [], []>} : vector<8x128xbf16>, vector<128x256xbf16>, vector<8x256xf32> -> vector<8x256xf32>
    %c0_91 = arith.constant 0 : index
    %c256_92 = arith.constant 256 : index
    %252 = vector.load %arg2[%c0_91, %c256_92] : memref<128x384xbf16, #tpu.memory_space<vmem>>, vector<128x128xbf16>
    %cst_93 = arith.constant dense<0.000000e+00> : vector<8x128xf32>
    %253 = tpu.matmul %249, %252, %cst_93 {dimension_numbers = #tpu.dot_dimension_numbers<[1], [0], [0], [1], [0, 0, 1, 1], [], []>} : vector<8x128xbf16>, vector<128x128xbf16>, vector<8x128xf32> -> vector<8x128xf32>
    %254 = vector.extract_strided_slice %248 {offsets = [0, 0], sizes = [8, 128], strides = [1, 1]} : vector<8x384xf32> to vector<8x128xf32>
    %255 = vector.extract_strided_slice %251 {offsets = [0, 0], sizes = [8, 128], strides = [1, 1]} : vector<8x256xf32> to vector<8x128xf32>
    %256 = arith.addf %254, %255 : vector<8x128xf32>
    %257 = arith.negf %256 : vector<8x128xf32>
    %258 = math.exp %257 : vector<8x128xf32>
    %cst_94 = arith.constant 1.000000e+00 : f32
    %259 = vector.broadcast %cst_94 : f32 to vector<8x128xf32>
    %260 = arith.addf %259, %258 : vector<8x128xf32>
    %261 = arith.divf %259, %260 : vector<8x128xf32>
    %262 = vector.extract_strided_slice %248 {offsets = [0, 128], sizes = [8, 128], strides = [1, 1]} : vector<8x384xf32> to vector<8x128xf32>
    %263 = vector.extract_strided_slice %251 {offsets = [0, 128], sizes = [8, 128], strides = [1, 1]} : vector<8x256xf32> to vector<8x128xf32>
    %264 = arith.addf %262, %263 : vector<8x128xf32>
    %265 = arith.negf %264 : vector<8x128xf32>
    %266 = math.exp %265 : vector<8x128xf32>
    %cst_95 = arith.constant 1.000000e+00 : f32
    %267 = vector.broadcast %cst_95 : f32 to vector<8x128xf32>
    %268 = arith.addf %267, %266 : vector<8x128xf32>
    %269 = arith.divf %267, %268 : vector<8x128xf32>
    %270 = vector.extract_strided_slice %248 {offsets = [0, 256], sizes = [8, 128], strides = [1, 1]} : vector<8x384xf32> to vector<8x128xf32>
    %271 = arith.addf %253, %22 : vector<8x128xf32>
    %272 = arith.mulf %261, %271 : vector<8x128xf32>
    %273 = arith.addf %270, %272 : vector<8x128xf32>
    %274 = math.tanh %273 : vector<8x128xf32>
    %cst_96 = arith.constant 1.000000e+00 : f32
    %275 = vector.broadcast %cst_96 : f32 to vector<8x128xf32>
    %276 = arith.subf %275, %269 : vector<8x128xf32>
    %277 = arith.mulf %276, %274 : vector<8x128xf32>
    %278 = arith.mulf %269, %209 : vector<8x128xf32>
    %279 = arith.addf %277, %278 : vector<8x128xf32>
    %280 = arith.truncf %279 : vector<8x128xf32> to vector<8x128xbf16>
    %c0_97 = arith.constant 0 : index
    %c0_98 = arith.constant 0 : index
    %281 = vector.load %arg5[%c0_97, %c0_98] : memref<128x384xbf16, #tpu.memory_space<vmem>>, vector<128x384xbf16>
    %cst_99 = arith.constant dense<0.000000e+00> : vector<8x384xf32>
    %282 = tpu.matmul %280, %281, %cst_99 {dimension_numbers = #tpu.dot_dimension_numbers<[1], [0], [0], [1], [0, 0, 1, 1], [], []>} : vector<8x128xbf16>, vector<128x384xbf16>, vector<8x384xf32> -> vector<8x384xf32>
    %283 = arith.addf %282, %28 : vector<8x384xf32>
    %284 = vector.extract_strided_slice %283 {offsets = [0, 0], sizes = [8, 128], strides = [1, 1]} : vector<8x384xf32> to vector<8x128xf32>
    %285 = vector.extract_strided_slice %242 {offsets = [0, 0], sizes = [8, 128], strides = [1, 1]} : vector<8x256xf32> to vector<8x128xf32>
    %286 = arith.addf %284, %285 : vector<8x128xf32>
    %287 = arith.negf %286 : vector<8x128xf32>
    %288 = math.exp %287 : vector<8x128xf32>
    %cst_100 = arith.constant 1.000000e+00 : f32
    %289 = vector.broadcast %cst_100 : f32 to vector<8x128xf32>
    %290 = arith.addf %289, %288 : vector<8x128xf32>
    %291 = arith.divf %289, %290 : vector<8x128xf32>
    %292 = vector.extract_strided_slice %283 {offsets = [0, 128], sizes = [8, 128], strides = [1, 1]} : vector<8x384xf32> to vector<8x128xf32>
    %293 = vector.extract_strided_slice %242 {offsets = [0, 128], sizes = [8, 128], strides = [1, 1]} : vector<8x256xf32> to vector<8x128xf32>
    %294 = arith.addf %292, %293 : vector<8x128xf32>
    %295 = arith.negf %294 : vector<8x128xf32>
    %296 = math.exp %295 : vector<8x128xf32>
    %cst_101 = arith.constant 1.000000e+00 : f32
    %297 = vector.broadcast %cst_101 : f32 to vector<8x128xf32>
    %298 = arith.addf %297, %296 : vector<8x128xf32>
    %299 = arith.divf %297, %298 : vector<8x128xf32>
    %300 = vector.extract_strided_slice %283 {offsets = [0, 256], sizes = [8, 128], strides = [1, 1]} : vector<8x384xf32> to vector<8x128xf32>
    %301 = arith.addf %244, %25 : vector<8x128xf32>
    %302 = arith.mulf %291, %301 : vector<8x128xf32>
    %303 = arith.addf %300, %302 : vector<8x128xf32>
    %304 = math.tanh %303 : vector<8x128xf32>
    %cst_102 = arith.constant 1.000000e+00 : f32
    %305 = vector.broadcast %cst_102 : f32 to vector<8x128xf32>
    %306 = arith.subf %305, %299 : vector<8x128xf32>
    %307 = arith.mulf %306, %304 : vector<8x128xf32>
    %308 = arith.mulf %299, %239 : vector<8x128xf32>
    %309 = arith.addf %307, %308 : vector<8x128xf32>
    %c4_i32 = arith.constant 4 : i32
    %310 = arith.truncf %309 : vector<8x128xf32> to vector<8x128xbf16>
    %c0_103 = arith.constant 0 : index
    %c0_104 = arith.constant 0 : index
    %311 = vector.load %arg6[%c0_103, %c0_104] : memref<128x384xbf16, #tpu.memory_space<vmem>>, vector<128x256xbf16>
    %cst_105 = arith.constant dense<0.000000e+00> : vector<8x256xf32>
    %312 = tpu.matmul %310, %311, %cst_105 {dimension_numbers = #tpu.dot_dimension_numbers<[1], [0], [0], [1], [0, 0, 1, 1], [], []>} : vector<8x128xbf16>, vector<128x256xbf16>, vector<8x256xf32> -> vector<8x256xf32>
    %c0_106 = arith.constant 0 : index
    %c256_107 = arith.constant 256 : index
    %313 = vector.load %arg6[%c0_106, %c256_107] : memref<128x384xbf16, #tpu.memory_space<vmem>>, vector<128x128xbf16>
    %cst_108 = arith.constant dense<0.000000e+00> : vector<8x128xf32>
    %314 = tpu.matmul %310, %313, %cst_108 {dimension_numbers = #tpu.dot_dimension_numbers<[1], [0], [0], [1], [0, 0, 1, 1], [], []>} : vector<8x128xbf16>, vector<128x128xbf16>, vector<8x128xf32> -> vector<8x128xf32>
    %c8_i32_109 = arith.constant 8 : i32
    %315 = arith.muli %c4_i32, %c8_i32_109 : i32
    %316 = tpu.assume_multiple %315, 8 : i32
    %317 = arith.index_cast %316 : i32 to index
    %c0_110 = arith.constant 0 : index
    %318 = vector.load %arg12[%317, %c0_110] : memref<64x384xf32, #tpu.memory_space<vmem>>, vector<8x384xf32>
    %319 = arith.truncf %279 : vector<8x128xf32> to vector<8x128xbf16>
    %c0_111 = arith.constant 0 : index
    %c0_112 = arith.constant 0 : index
    %320 = vector.load %arg2[%c0_111, %c0_112] : memref<128x384xbf16, #tpu.memory_space<vmem>>, vector<128x256xbf16>
    %cst_113 = arith.constant dense<0.000000e+00> : vector<8x256xf32>
    %321 = tpu.matmul %319, %320, %cst_113 {dimension_numbers = #tpu.dot_dimension_numbers<[1], [0], [0], [1], [0, 0, 1, 1], [], []>} : vector<8x128xbf16>, vector<128x256xbf16>, vector<8x256xf32> -> vector<8x256xf32>
    %c0_114 = arith.constant 0 : index
    %c256_115 = arith.constant 256 : index
    %322 = vector.load %arg2[%c0_114, %c256_115] : memref<128x384xbf16, #tpu.memory_space<vmem>>, vector<128x128xbf16>
    %cst_116 = arith.constant dense<0.000000e+00> : vector<8x128xf32>
    %323 = tpu.matmul %319, %322, %cst_116 {dimension_numbers = #tpu.dot_dimension_numbers<[1], [0], [0], [1], [0, 0, 1, 1], [], []>} : vector<8x128xbf16>, vector<128x128xbf16>, vector<8x128xf32> -> vector<8x128xf32>
    %324 = vector.extract_strided_slice %318 {offsets = [0, 0], sizes = [8, 128], strides = [1, 1]} : vector<8x384xf32> to vector<8x128xf32>
    %325 = vector.extract_strided_slice %321 {offsets = [0, 0], sizes = [8, 128], strides = [1, 1]} : vector<8x256xf32> to vector<8x128xf32>
    %326 = arith.addf %324, %325 : vector<8x128xf32>
    %327 = arith.negf %326 : vector<8x128xf32>
    %328 = math.exp %327 : vector<8x128xf32>
    %cst_117 = arith.constant 1.000000e+00 : f32
    %329 = vector.broadcast %cst_117 : f32 to vector<8x128xf32>
    %330 = arith.addf %329, %328 : vector<8x128xf32>
    %331 = arith.divf %329, %330 : vector<8x128xf32>
    %332 = vector.extract_strided_slice %318 {offsets = [0, 128], sizes = [8, 128], strides = [1, 1]} : vector<8x384xf32> to vector<8x128xf32>
    %333 = vector.extract_strided_slice %321 {offsets = [0, 128], sizes = [8, 128], strides = [1, 1]} : vector<8x256xf32> to vector<8x128xf32>
    %334 = arith.addf %332, %333 : vector<8x128xf32>
    %335 = arith.negf %334 : vector<8x128xf32>
    %336 = math.exp %335 : vector<8x128xf32>
    %cst_118 = arith.constant 1.000000e+00 : f32
    %337 = vector.broadcast %cst_118 : f32 to vector<8x128xf32>
    %338 = arith.addf %337, %336 : vector<8x128xf32>
    %339 = arith.divf %337, %338 : vector<8x128xf32>
    %340 = vector.extract_strided_slice %318 {offsets = [0, 256], sizes = [8, 128], strides = [1, 1]} : vector<8x384xf32> to vector<8x128xf32>
    %341 = arith.addf %323, %22 : vector<8x128xf32>
    %342 = arith.mulf %331, %341 : vector<8x128xf32>
    %343 = arith.addf %340, %342 : vector<8x128xf32>
    %344 = math.tanh %343 : vector<8x128xf32>
    %cst_119 = arith.constant 1.000000e+00 : f32
    %345 = vector.broadcast %cst_119 : f32 to vector<8x128xf32>
    %346 = arith.subf %345, %339 : vector<8x128xf32>
    %347 = arith.mulf %346, %344 : vector<8x128xf32>
    %348 = arith.mulf %339, %279 : vector<8x128xf32>
    %349 = arith.addf %347, %348 : vector<8x128xf32>
    %350 = arith.truncf %349 : vector<8x128xf32> to vector<8x128xbf16>
    %c0_120 = arith.constant 0 : index
    %c0_121 = arith.constant 0 : index
    %351 = vector.load %arg5[%c0_120, %c0_121] : memref<128x384xbf16, #tpu.memory_space<vmem>>, vector<128x384xbf16>
    %cst_122 = arith.constant dense<0.000000e+00> : vector<8x384xf32>
    %352 = tpu.matmul %350, %351, %cst_122 {dimension_numbers = #tpu.dot_dimension_numbers<[1], [0], [0], [1], [0, 0, 1, 1], [], []>} : vector<8x128xbf16>, vector<128x384xbf16>, vector<8x384xf32> -> vector<8x384xf32>
    %353 = arith.addf %352, %28 : vector<8x384xf32>
    %354 = vector.extract_strided_slice %353 {offsets = [0, 0], sizes = [8, 128], strides = [1, 1]} : vector<8x384xf32> to vector<8x128xf32>
    %355 = vector.extract_strided_slice %312 {offsets = [0, 0], sizes = [8, 128], strides = [1, 1]} : vector<8x256xf32> to vector<8x128xf32>
    %356 = arith.addf %354, %355 : vector<8x128xf32>
    %357 = arith.negf %356 : vector<8x128xf32>
    %358 = math.exp %357 : vector<8x128xf32>
    %cst_123 = arith.constant 1.000000e+00 : f32
    %359 = vector.broadcast %cst_123 : f32 to vector<8x128xf32>
    %360 = arith.addf %359, %358 : vector<8x128xf32>
    %361 = arith.divf %359, %360 : vector<8x128xf32>
    %362 = vector.extract_strided_slice %353 {offsets = [0, 128], sizes = [8, 128], strides = [1, 1]} : vector<8x384xf32> to vector<8x128xf32>
    %363 = vector.extract_strided_slice %312 {offsets = [0, 128], sizes = [8, 128], strides = [1, 1]} : vector<8x256xf32> to vector<8x128xf32>
    %364 = arith.addf %362, %363 : vector<8x128xf32>
    %365 = arith.negf %364 : vector<8x128xf32>
    %366 = math.exp %365 : vector<8x128xf32>
    %cst_124 = arith.constant 1.000000e+00 : f32
    %367 = vector.broadcast %cst_124 : f32 to vector<8x128xf32>
    %368 = arith.addf %367, %366 : vector<8x128xf32>
    %369 = arith.divf %367, %368 : vector<8x128xf32>
    %370 = vector.extract_strided_slice %353 {offsets = [0, 256], sizes = [8, 128], strides = [1, 1]} : vector<8x384xf32> to vector<8x128xf32>
    %371 = arith.addf %314, %25 : vector<8x128xf32>
    %372 = arith.mulf %361, %371 : vector<8x128xf32>
    %373 = arith.addf %370, %372 : vector<8x128xf32>
    %374 = math.tanh %373 : vector<8x128xf32>
    %cst_125 = arith.constant 1.000000e+00 : f32
    %375 = vector.broadcast %cst_125 : f32 to vector<8x128xf32>
    %376 = arith.subf %375, %369 : vector<8x128xf32>
    %377 = arith.mulf %376, %374 : vector<8x128xf32>
    %378 = arith.mulf %369, %309 : vector<8x128xf32>
    %379 = arith.addf %377, %378 : vector<8x128xf32>
    %c5_i32 = arith.constant 5 : i32
    %380 = arith.truncf %379 : vector<8x128xf32> to vector<8x128xbf16>
    %c0_126 = arith.constant 0 : index
    %c0_127 = arith.constant 0 : index
    %381 = vector.load %arg6[%c0_126, %c0_127] : memref<128x384xbf16, #tpu.memory_space<vmem>>, vector<128x256xbf16>
    %cst_128 = arith.constant dense<0.000000e+00> : vector<8x256xf32>
    %382 = tpu.matmul %380, %381, %cst_128 {dimension_numbers = #tpu.dot_dimension_numbers<[1], [0], [0], [1], [0, 0, 1, 1], [], []>} : vector<8x128xbf16>, vector<128x256xbf16>, vector<8x256xf32> -> vector<8x256xf32>
    %c0_129 = arith.constant 0 : index
    %c256_130 = arith.constant 256 : index
    %383 = vector.load %arg6[%c0_129, %c256_130] : memref<128x384xbf16, #tpu.memory_space<vmem>>, vector<128x128xbf16>
    %cst_131 = arith.constant dense<0.000000e+00> : vector<8x128xf32>
    %384 = tpu.matmul %380, %383, %cst_131 {dimension_numbers = #tpu.dot_dimension_numbers<[1], [0], [0], [1], [0, 0, 1, 1], [], []>} : vector<8x128xbf16>, vector<128x128xbf16>, vector<8x128xf32> -> vector<8x128xf32>
    %c8_i32_132 = arith.constant 8 : i32
    %385 = arith.muli %c5_i32, %c8_i32_132 : i32
    %386 = tpu.assume_multiple %385, 8 : i32
    %387 = arith.index_cast %386 : i32 to index
    %c0_133 = arith.constant 0 : index
    %388 = vector.load %arg12[%387, %c0_133] : memref<64x384xf32, #tpu.memory_space<vmem>>, vector<8x384xf32>
    %389 = arith.truncf %349 : vector<8x128xf32> to vector<8x128xbf16>
    %c0_134 = arith.constant 0 : index
    %c0_135 = arith.constant 0 : index
    %390 = vector.load %arg2[%c0_134, %c0_135] : memref<128x384xbf16, #tpu.memory_space<vmem>>, vector<128x256xbf16>
    %cst_136 = arith.constant dense<0.000000e+00> : vector<8x256xf32>
    %391 = tpu.matmul %389, %390, %cst_136 {dimension_numbers = #tpu.dot_dimension_numbers<[1], [0], [0], [1], [0, 0, 1, 1], [], []>} : vector<8x128xbf16>, vector<128x256xbf16>, vector<8x256xf32> -> vector<8x256xf32>
    %c0_137 = arith.constant 0 : index
    %c256_138 = arith.constant 256 : index
    %392 = vector.load %arg2[%c0_137, %c256_138] : memref<128x384xbf16, #tpu.memory_space<vmem>>, vector<128x128xbf16>
    %cst_139 = arith.constant dense<0.000000e+00> : vector<8x128xf32>
    %393 = tpu.matmul %389, %392, %cst_139 {dimension_numbers = #tpu.dot_dimension_numbers<[1], [0], [0], [1], [0, 0, 1, 1], [], []>} : vector<8x128xbf16>, vector<128x128xbf16>, vector<8x128xf32> -> vector<8x128xf32>
    %394 = vector.extract_strided_slice %388 {offsets = [0, 0], sizes = [8, 128], strides = [1, 1]} : vector<8x384xf32> to vector<8x128xf32>
    %395 = vector.extract_strided_slice %391 {offsets = [0, 0], sizes = [8, 128], strides = [1, 1]} : vector<8x256xf32> to vector<8x128xf32>
    %396 = arith.addf %394, %395 : vector<8x128xf32>
    %397 = arith.negf %396 : vector<8x128xf32>
    %398 = math.exp %397 : vector<8x128xf32>
    %cst_140 = arith.constant 1.000000e+00 : f32
    %399 = vector.broadcast %cst_140 : f32 to vector<8x128xf32>
    %400 = arith.addf %399, %398 : vector<8x128xf32>
    %401 = arith.divf %399, %400 : vector<8x128xf32>
    %402 = vector.extract_strided_slice %388 {offsets = [0, 128], sizes = [8, 128], strides = [1, 1]} : vector<8x384xf32> to vector<8x128xf32>
    %403 = vector.extract_strided_slice %391 {offsets = [0, 128], sizes = [8, 128], strides = [1, 1]} : vector<8x256xf32> to vector<8x128xf32>
    %404 = arith.addf %402, %403 : vector<8x128xf32>
    %405 = arith.negf %404 : vector<8x128xf32>
    %406 = math.exp %405 : vector<8x128xf32>
    %cst_141 = arith.constant 1.000000e+00 : f32
    %407 = vector.broadcast %cst_141 : f32 to vector<8x128xf32>
    %408 = arith.addf %407, %406 : vector<8x128xf32>
    %409 = arith.divf %407, %408 : vector<8x128xf32>
    %410 = vector.extract_strided_slice %388 {offsets = [0, 256], sizes = [8, 128], strides = [1, 1]} : vector<8x384xf32> to vector<8x128xf32>
    %411 = arith.addf %393, %22 : vector<8x128xf32>
    %412 = arith.mulf %401, %411 : vector<8x128xf32>
    %413 = arith.addf %410, %412 : vector<8x128xf32>
    %414 = math.tanh %413 : vector<8x128xf32>
    %cst_142 = arith.constant 1.000000e+00 : f32
    %415 = vector.broadcast %cst_142 : f32 to vector<8x128xf32>
    %416 = arith.subf %415, %409 : vector<8x128xf32>
    %417 = arith.mulf %416, %414 : vector<8x128xf32>
    %418 = arith.mulf %409, %349 : vector<8x128xf32>
    %419 = arith.addf %417, %418 : vector<8x128xf32>
    %420 = arith.truncf %419 : vector<8x128xf32> to vector<8x128xbf16>
    %c0_143 = arith.constant 0 : index
    %c0_144 = arith.constant 0 : index
    %421 = vector.load %arg5[%c0_143, %c0_144] : memref<128x384xbf16, #tpu.memory_space<vmem>>, vector<128x384xbf16>
    %cst_145 = arith.constant dense<0.000000e+00> : vector<8x384xf32>
    %422 = tpu.matmul %420, %421, %cst_145 {dimension_numbers = #tpu.dot_dimension_numbers<[1], [0], [0], [1], [0, 0, 1, 1], [], []>} : vector<8x128xbf16>, vector<128x384xbf16>, vector<8x384xf32> -> vector<8x384xf32>
    %423 = arith.addf %422, %28 : vector<8x384xf32>
    %424 = vector.extract_strided_slice %423 {offsets = [0, 0], sizes = [8, 128], strides = [1, 1]} : vector<8x384xf32> to vector<8x128xf32>
    %425 = vector.extract_strided_slice %382 {offsets = [0, 0], sizes = [8, 128], strides = [1, 1]} : vector<8x256xf32> to vector<8x128xf32>
    %426 = arith.addf %424, %425 : vector<8x128xf32>
    %427 = arith.negf %426 : vector<8x128xf32>
    %428 = math.exp %427 : vector<8x128xf32>
    %cst_146 = arith.constant 1.000000e+00 : f32
    %429 = vector.broadcast %cst_146 : f32 to vector<8x128xf32>
    %430 = arith.addf %429, %428 : vector<8x128xf32>
    %431 = arith.divf %429, %430 : vector<8x128xf32>
    %432 = vector.extract_strided_slice %423 {offsets = [0, 128], sizes = [8, 128], strides = [1, 1]} : vector<8x384xf32> to vector<8x128xf32>
    %433 = vector.extract_strided_slice %382 {offsets = [0, 128], sizes = [8, 128], strides = [1, 1]} : vector<8x256xf32> to vector<8x128xf32>
    %434 = arith.addf %432, %433 : vector<8x128xf32>
    %435 = arith.negf %434 : vector<8x128xf32>
    %436 = math.exp %435 : vector<8x128xf32>
    %cst_147 = arith.constant 1.000000e+00 : f32
    %437 = vector.broadcast %cst_147 : f32 to vector<8x128xf32>
    %438 = arith.addf %437, %436 : vector<8x128xf32>
    %439 = arith.divf %437, %438 : vector<8x128xf32>
    %440 = vector.extract_strided_slice %423 {offsets = [0, 256], sizes = [8, 128], strides = [1, 1]} : vector<8x384xf32> to vector<8x128xf32>
    %441 = arith.addf %384, %25 : vector<8x128xf32>
    %442 = arith.mulf %431, %441 : vector<8x128xf32>
    %443 = arith.addf %440, %442 : vector<8x128xf32>
    %444 = math.tanh %443 : vector<8x128xf32>
    %cst_148 = arith.constant 1.000000e+00 : f32
    %445 = vector.broadcast %cst_148 : f32 to vector<8x128xf32>
    %446 = arith.subf %445, %439 : vector<8x128xf32>
    %447 = arith.mulf %446, %444 : vector<8x128xf32>
    %448 = arith.mulf %439, %379 : vector<8x128xf32>
    %449 = arith.addf %447, %448 : vector<8x128xf32>
    %c6_i32 = arith.constant 6 : i32
    %450 = arith.truncf %449 : vector<8x128xf32> to vector<8x128xbf16>
    %c0_149 = arith.constant 0 : index
    %c0_150 = arith.constant 0 : index
    %451 = vector.load %arg6[%c0_149, %c0_150] : memref<128x384xbf16, #tpu.memory_space<vmem>>, vector<128x256xbf16>
    %cst_151 = arith.constant dense<0.000000e+00> : vector<8x256xf32>
    %452 = tpu.matmul %450, %451, %cst_151 {dimension_numbers = #tpu.dot_dimension_numbers<[1], [0], [0], [1], [0, 0, 1, 1], [], []>} : vector<8x128xbf16>, vector<128x256xbf16>, vector<8x256xf32> -> vector<8x256xf32>
    %c0_152 = arith.constant 0 : index
    %c256_153 = arith.constant 256 : index
    %453 = vector.load %arg6[%c0_152, %c256_153] : memref<128x384xbf16, #tpu.memory_space<vmem>>, vector<128x128xbf16>
    %cst_154 = arith.constant dense<0.000000e+00> : vector<8x128xf32>
    %454 = tpu.matmul %450, %453, %cst_154 {dimension_numbers = #tpu.dot_dimension_numbers<[1], [0], [0], [1], [0, 0, 1, 1], [], []>} : vector<8x128xbf16>, vector<128x128xbf16>, vector<8x128xf32> -> vector<8x128xf32>
    %c8_i32_155 = arith.constant 8 : i32
    %455 = arith.muli %c6_i32, %c8_i32_155 : i32
    %456 = tpu.assume_multiple %455, 8 : i32
    %457 = arith.index_cast %456 : i32 to index
    %c0_156 = arith.constant 0 : index
    %458 = vector.load %arg12[%457, %c0_156] : memref<64x384xf32, #tpu.memory_space<vmem>>, vector<8x384xf32>
    %459 = arith.truncf %419 : vector<8x128xf32> to vector<8x128xbf16>
    %c0_157 = arith.constant 0 : index
    %c0_158 = arith.constant 0 : index
    %460 = vector.load %arg2[%c0_157, %c0_158] : memref<128x384xbf16, #tpu.memory_space<vmem>>, vector<128x256xbf16>
    %cst_159 = arith.constant dense<0.000000e+00> : vector<8x256xf32>
    %461 = tpu.matmul %459, %460, %cst_159 {dimension_numbers = #tpu.dot_dimension_numbers<[1], [0], [0], [1], [0, 0, 1, 1], [], []>} : vector<8x128xbf16>, vector<128x256xbf16>, vector<8x256xf32> -> vector<8x256xf32>
    %c0_160 = arith.constant 0 : index
    %c256_161 = arith.constant 256 : index
    %462 = vector.load %arg2[%c0_160, %c256_161] : memref<128x384xbf16, #tpu.memory_space<vmem>>, vector<128x128xbf16>
    %cst_162 = arith.constant dense<0.000000e+00> : vector<8x128xf32>
    %463 = tpu.matmul %459, %462, %cst_162 {dimension_numbers = #tpu.dot_dimension_numbers<[1], [0], [0], [1], [0, 0, 1, 1], [], []>} : vector<8x128xbf16>, vector<128x128xbf16>, vector<8x128xf32> -> vector<8x128xf32>
    %464 = vector.extract_strided_slice %458 {offsets = [0, 0], sizes = [8, 128], strides = [1, 1]} : vector<8x384xf32> to vector<8x128xf32>
    %465 = vector.extract_strided_slice %461 {offsets = [0, 0], sizes = [8, 128], strides = [1, 1]} : vector<8x256xf32> to vector<8x128xf32>
    %466 = arith.addf %464, %465 : vector<8x128xf32>
    %467 = arith.negf %466 : vector<8x128xf32>
    %468 = math.exp %467 : vector<8x128xf32>
    %cst_163 = arith.constant 1.000000e+00 : f32
    %469 = vector.broadcast %cst_163 : f32 to vector<8x128xf32>
    %470 = arith.addf %469, %468 : vector<8x128xf32>
    %471 = arith.divf %469, %470 : vector<8x128xf32>
    %472 = vector.extract_strided_slice %458 {offsets = [0, 128], sizes = [8, 128], strides = [1, 1]} : vector<8x384xf32> to vector<8x128xf32>
    %473 = vector.extract_strided_slice %461 {offsets = [0, 128], sizes = [8, 128], strides = [1, 1]} : vector<8x256xf32> to vector<8x128xf32>
    %474 = arith.addf %472, %473 : vector<8x128xf32>
    %475 = arith.negf %474 : vector<8x128xf32>
    %476 = math.exp %475 : vector<8x128xf32>
    %cst_164 = arith.constant 1.000000e+00 : f32
    %477 = vector.broadcast %cst_164 : f32 to vector<8x128xf32>
    %478 = arith.addf %477, %476 : vector<8x128xf32>
    %479 = arith.divf %477, %478 : vector<8x128xf32>
    %480 = vector.extract_strided_slice %458 {offsets = [0, 256], sizes = [8, 128], strides = [1, 1]} : vector<8x384xf32> to vector<8x128xf32>
    %481 = arith.addf %463, %22 : vector<8x128xf32>
    %482 = arith.mulf %471, %481 : vector<8x128xf32>
    %483 = arith.addf %480, %482 : vector<8x128xf32>
    %484 = math.tanh %483 : vector<8x128xf32>
    %cst_165 = arith.constant 1.000000e+00 : f32
    %485 = vector.broadcast %cst_165 : f32 to vector<8x128xf32>
    %486 = arith.subf %485, %479 : vector<8x128xf32>
    %487 = arith.mulf %486, %484 : vector<8x128xf32>
    %488 = arith.mulf %479, %419 : vector<8x128xf32>
    %489 = arith.addf %487, %488 : vector<8x128xf32>
    %490 = arith.truncf %489 : vector<8x128xf32> to vector<8x128xbf16>
    %c0_166 = arith.constant 0 : index
    %c0_167 = arith.constant 0 : index
    %491 = vector.load %arg5[%c0_166, %c0_167] : memref<128x384xbf16, #tpu.memory_space<vmem>>, vector<128x384xbf16>
    %cst_168 = arith.constant dense<0.000000e+00> : vector<8x384xf32>
    %492 = tpu.matmul %490, %491, %cst_168 {dimension_numbers = #tpu.dot_dimension_numbers<[1], [0], [0], [1], [0, 0, 1, 1], [], []>} : vector<8x128xbf16>, vector<128x384xbf16>, vector<8x384xf32> -> vector<8x384xf32>
    %493 = arith.addf %492, %28 : vector<8x384xf32>
    %494 = vector.extract_strided_slice %493 {offsets = [0, 0], sizes = [8, 128], strides = [1, 1]} : vector<8x384xf32> to vector<8x128xf32>
    %495 = vector.extract_strided_slice %452 {offsets = [0, 0], sizes = [8, 128], strides = [1, 1]} : vector<8x256xf32> to vector<8x128xf32>
    %496 = arith.addf %494, %495 : vector<8x128xf32>
    %497 = arith.negf %496 : vector<8x128xf32>
    %498 = math.exp %497 : vector<8x128xf32>
    %cst_169 = arith.constant 1.000000e+00 : f32
    %499 = vector.broadcast %cst_169 : f32 to vector<8x128xf32>
    %500 = arith.addf %499, %498 : vector<8x128xf32>
    %501 = arith.divf %499, %500 : vector<8x128xf32>
    %502 = vector.extract_strided_slice %493 {offsets = [0, 128], sizes = [8, 128], strides = [1, 1]} : vector<8x384xf32> to vector<8x128xf32>
    %503 = vector.extract_strided_slice %452 {offsets = [0, 128], sizes = [8, 128], strides = [1, 1]} : vector<8x256xf32> to vector<8x128xf32>
    %504 = arith.addf %502, %503 : vector<8x128xf32>
    %505 = arith.negf %504 : vector<8x128xf32>
    %506 = math.exp %505 : vector<8x128xf32>
    %cst_170 = arith.constant 1.000000e+00 : f32
    %507 = vector.broadcast %cst_170 : f32 to vector<8x128xf32>
    %508 = arith.addf %507, %506 : vector<8x128xf32>
    %509 = arith.divf %507, %508 : vector<8x128xf32>
    %510 = vector.extract_strided_slice %493 {offsets = [0, 256], sizes = [8, 128], strides = [1, 1]} : vector<8x384xf32> to vector<8x128xf32>
    %511 = arith.addf %454, %25 : vector<8x128xf32>
    %512 = arith.mulf %501, %511 : vector<8x128xf32>
    %513 = arith.addf %510, %512 : vector<8x128xf32>
    %514 = math.tanh %513 : vector<8x128xf32>
    %cst_171 = arith.constant 1.000000e+00 : f32
    %515 = vector.broadcast %cst_171 : f32 to vector<8x128xf32>
    %516 = arith.subf %515, %509 : vector<8x128xf32>
    %517 = arith.mulf %516, %514 : vector<8x128xf32>
    %518 = arith.mulf %509, %449 : vector<8x128xf32>
    %519 = arith.addf %517, %518 : vector<8x128xf32>
    %c7_i32 = arith.constant 7 : i32
    %520 = arith.truncf %519 : vector<8x128xf32> to vector<8x128xbf16>
    %c0_172 = arith.constant 0 : index
    %c0_173 = arith.constant 0 : index
    %521 = vector.load %arg6[%c0_172, %c0_173] : memref<128x384xbf16, #tpu.memory_space<vmem>>, vector<128x256xbf16>
    %cst_174 = arith.constant dense<0.000000e+00> : vector<8x256xf32>
    %522 = tpu.matmul %520, %521, %cst_174 {dimension_numbers = #tpu.dot_dimension_numbers<[1], [0], [0], [1], [0, 0, 1, 1], [], []>} : vector<8x128xbf16>, vector<128x256xbf16>, vector<8x256xf32> -> vector<8x256xf32>
    %c0_175 = arith.constant 0 : index
    %c256_176 = arith.constant 256 : index
    %523 = vector.load %arg6[%c0_175, %c256_176] : memref<128x384xbf16, #tpu.memory_space<vmem>>, vector<128x128xbf16>
    %cst_177 = arith.constant dense<0.000000e+00> : vector<8x128xf32>
    %524 = tpu.matmul %520, %523, %cst_177 {dimension_numbers = #tpu.dot_dimension_numbers<[1], [0], [0], [1], [0, 0, 1, 1], [], []>} : vector<8x128xbf16>, vector<128x128xbf16>, vector<8x128xf32> -> vector<8x128xf32>
    %c8_i32_178 = arith.constant 8 : i32
    %525 = arith.muli %c7_i32, %c8_i32_178 : i32
    %526 = tpu.assume_multiple %525, 8 : i32
    %527 = arith.index_cast %526 : i32 to index
    %c0_179 = arith.constant 0 : index
    %528 = vector.load %arg12[%527, %c0_179] : memref<64x384xf32, #tpu.memory_space<vmem>>, vector<8x384xf32>
    %529 = arith.truncf %489 : vector<8x128xf32> to vector<8x128xbf16>
    %c0_180 = arith.constant 0 : index
    %c0_181 = arith.constant 0 : index
    %530 = vector.load %arg2[%c0_180, %c0_181] : memref<128x384xbf16, #tpu.memory_space<vmem>>, vector<128x256xbf16>
    %cst_182 = arith.constant dense<0.000000e+00> : vector<8x256xf32>
    %531 = tpu.matmul %529, %530, %cst_182 {dimension_numbers = #tpu.dot_dimension_numbers<[1], [0], [0], [1], [0, 0, 1, 1], [], []>} : vector<8x128xbf16>, vector<128x256xbf16>, vector<8x256xf32> -> vector<8x256xf32>
    %c0_183 = arith.constant 0 : index
    %c256_184 = arith.constant 256 : index
    %532 = vector.load %arg2[%c0_183, %c256_184] : memref<128x384xbf16, #tpu.memory_space<vmem>>, vector<128x128xbf16>
    %cst_185 = arith.constant dense<0.000000e+00> : vector<8x128xf32>
    %533 = tpu.matmul %529, %532, %cst_185 {dimension_numbers = #tpu.dot_dimension_numbers<[1], [0], [0], [1], [0, 0, 1, 1], [], []>} : vector<8x128xbf16>, vector<128x128xbf16>, vector<8x128xf32> -> vector<8x128xf32>
    %534 = vector.extract_strided_slice %528 {offsets = [0, 0], sizes = [8, 128], strides = [1, 1]} : vector<8x384xf32> to vector<8x128xf32>
    %535 = vector.extract_strided_slice %531 {offsets = [0, 0], sizes = [8, 128], strides = [1, 1]} : vector<8x256xf32> to vector<8x128xf32>
    %536 = arith.addf %534, %535 : vector<8x128xf32>
    %537 = arith.negf %536 : vector<8x128xf32>
    %538 = math.exp %537 : vector<8x128xf32>
    %cst_186 = arith.constant 1.000000e+00 : f32
    %539 = vector.broadcast %cst_186 : f32 to vector<8x128xf32>
    %540 = arith.addf %539, %538 : vector<8x128xf32>
    %541 = arith.divf %539, %540 : vector<8x128xf32>
    %542 = vector.extract_strided_slice %528 {offsets = [0, 128], sizes = [8, 128], strides = [1, 1]} : vector<8x384xf32> to vector<8x128xf32>
    %543 = vector.extract_strided_slice %531 {offsets = [0, 128], sizes = [8, 128], strides = [1, 1]} : vector<8x256xf32> to vector<8x128xf32>
    %544 = arith.addf %542, %543 : vector<8x128xf32>
    %545 = arith.negf %544 : vector<8x128xf32>
    %546 = math.exp %545 : vector<8x128xf32>
    %cst_187 = arith.constant 1.000000e+00 : f32
    %547 = vector.broadcast %cst_187 : f32 to vector<8x128xf32>
    %548 = arith.addf %547, %546 : vector<8x128xf32>
    %549 = arith.divf %547, %548 : vector<8x128xf32>
    %550 = vector.extract_strided_slice %528 {offsets = [0, 256], sizes = [8, 128], strides = [1, 1]} : vector<8x384xf32> to vector<8x128xf32>
    %551 = arith.addf %533, %22 : vector<8x128xf32>
    %552 = arith.mulf %541, %551 : vector<8x128xf32>
    %553 = arith.addf %550, %552 : vector<8x128xf32>
    %554 = math.tanh %553 : vector<8x128xf32>
    %cst_188 = arith.constant 1.000000e+00 : f32
    %555 = vector.broadcast %cst_188 : f32 to vector<8x128xf32>
    %556 = arith.subf %555, %549 : vector<8x128xf32>
    %557 = arith.mulf %556, %554 : vector<8x128xf32>
    %558 = arith.mulf %549, %489 : vector<8x128xf32>
    %559 = arith.addf %557, %558 : vector<8x128xf32>
    %560 = arith.truncf %559 : vector<8x128xf32> to vector<8x128xbf16>
    %c0_189 = arith.constant 0 : index
    %c0_190 = arith.constant 0 : index
    %561 = vector.load %arg5[%c0_189, %c0_190] : memref<128x384xbf16, #tpu.memory_space<vmem>>, vector<128x384xbf16>
    %cst_191 = arith.constant dense<0.000000e+00> : vector<8x384xf32>
    %562 = tpu.matmul %560, %561, %cst_191 {dimension_numbers = #tpu.dot_dimension_numbers<[1], [0], [0], [1], [0, 0, 1, 1], [], []>} : vector<8x128xbf16>, vector<128x384xbf16>, vector<8x384xf32> -> vector<8x384xf32>
    %563 = arith.addf %562, %28 : vector<8x384xf32>
    %564 = vector.extract_strided_slice %563 {offsets = [0, 0], sizes = [8, 128], strides = [1, 1]} : vector<8x384xf32> to vector<8x128xf32>
    %565 = vector.extract_strided_slice %522 {offsets = [0, 0], sizes = [8, 128], strides = [1, 1]} : vector<8x256xf32> to vector<8x128xf32>
    %566 = arith.addf %564, %565 : vector<8x128xf32>
    %567 = arith.negf %566 : vector<8x128xf32>
    %568 = math.exp %567 : vector<8x128xf32>
    %cst_192 = arith.constant 1.000000e+00 : f32
    %569 = vector.broadcast %cst_192 : f32 to vector<8x128xf32>
    %570 = arith.addf %569, %568 : vector<8x128xf32>
    %571 = arith.divf %569, %570 : vector<8x128xf32>
    %572 = vector.extract_strided_slice %563 {offsets = [0, 128], sizes = [8, 128], strides = [1, 1]} : vector<8x384xf32> to vector<8x128xf32>
    %573 = vector.extract_strided_slice %522 {offsets = [0, 128], sizes = [8, 128], strides = [1, 1]} : vector<8x256xf32> to vector<8x128xf32>
    %574 = arith.addf %572, %573 : vector<8x128xf32>
    %575 = arith.negf %574 : vector<8x128xf32>
    %576 = math.exp %575 : vector<8x128xf32>
    %cst_193 = arith.constant 1.000000e+00 : f32
    %577 = vector.broadcast %cst_193 : f32 to vector<8x128xf32>
    %578 = arith.addf %577, %576 : vector<8x128xf32>
    %579 = arith.divf %577, %578 : vector<8x128xf32>
    %580 = vector.extract_strided_slice %563 {offsets = [0, 256], sizes = [8, 128], strides = [1, 1]} : vector<8x384xf32> to vector<8x128xf32>
    %581 = arith.addf %524, %25 : vector<8x128xf32>
    %582 = arith.mulf %571, %581 : vector<8x128xf32>
    %583 = arith.addf %580, %582 : vector<8x128xf32>
    %584 = math.tanh %583 : vector<8x128xf32>
    %cst_194 = arith.constant 1.000000e+00 : f32
    %585 = vector.broadcast %cst_194 : f32 to vector<8x128xf32>
    %586 = arith.subf %585, %579 : vector<8x128xf32>
    %587 = arith.mulf %586, %584 : vector<8x128xf32>
    %588 = arith.mulf %579, %519 : vector<8x128xf32>
    %589 = arith.addf %587, %588 : vector<8x128xf32>
    %c8_i32_195 = arith.constant 8 : i32
    %590 = arith.truncf %589 : vector<8x128xf32> to vector<8x128xbf16>
    %c0_196 = arith.constant 0 : index
    %c0_197 = arith.constant 0 : index
    %591 = vector.load %arg9[%c0_196, %c0_197] : memref<128x3xbf16, #tpu.memory_space<vmem>>, vector<128x3xbf16>
    %cst_198 = arith.constant dense<0.000000e+00> : vector<8x3xf32>
    %592 = tpu.matmul %590, %591, %cst_198 {dimension_numbers = #tpu.dot_dimension_numbers<[1], [0], [0], [1], [0, 0, 1, 1], [], []>} : vector<8x128xbf16>, vector<128x3xbf16>, vector<8x3xf32> -> vector<8x3xf32>
    %c0_199 = arith.constant 0 : index
    %c0_200 = arith.constant 0 : index
    %593 = vector.load %arg10[%c0_199, %c0_200] : memref<1x3xf32, #tpu.memory_space<vmem>>, vector<1x3xf32>
    %594 = vector.broadcast %593 : vector<1x3xf32> to vector<8x3xf32>
    %595 = arith.addf %592, %594 : vector<8x3xf32>
    %c0_201 = arith.constant 0 : index
    %c0_202 = arith.constant 0 : index
    %596 = vector.load %arg11[%c0_201, %c0_202] : memref<8x3xf32, #tpu.memory_space<vmem>>, vector<8x3xf32>
    tpu.vector_store %arg11[%c0_201, %c0_202], %595 {strides = array<i32>} : memref<8x3xf32, #tpu.memory_space<vmem>>, vector<8x3xf32>,
    return
  }
}

</mosaic_0001>

<bundles_post_ra>
// kernel: gru_network_forward.1
= control target key start
LH: loop header
LB: loop body
LE: loop exit
PB: predicated region body
PF: predicated region fallthrough
CT: control target
= control target key end

     0   :  { %16 = vsyncpa [#allocation4], 0  ;;  %s4683_s0 = inlined_call_operand.vmem [shape: bf16[64,2], index: 0, kind: input, shape index: {}]   ;;  %s4684_s1 = inlined_call_operand.vmem [shape: bf16[2,384], index: 1, kind: input, shape index: {}]   ;;  %s4685_s2 = inlined_call_operand.hbm [shape: bf16[128,384], index: 2, kind: input, shape index: {}]   ;;  %s4686_s3 = inlined_call_operand.vmem [shape: f32[1,384], index: 3, kind: input, shape index: {}]   ;;  %s4687_s4 = inlined_call_operand.vmem [shape: f32[1,128], index: 4, kind: input, shape index: {}]   ;;  %s4688_s5 = inlined_call_operand.hbm [shape: bf16[128,384], index: 5, kind: input, shape index: {}]   ;;  %s4689_s6 = inlined_call_operand.hbm [shape: bf16[128,384], index: 6, kind: input, shape index: {}]   ;;  %s4690_s7 = inlined_call_operand.vmem [shape: f32[1,384], index: 7, kind: input, shape index: {}]   ;;  %s4691_s8 = inlined_call_operand.vmem [shape: f32[1,128], index: 8, kind: input, shape index: {}]   ;;  %s4692_s9 = inlined_call_operand.vmem [shape: bf16[128,3], index: 9, kind: input, shape index: {}]   ;;  %s4693_s10 = inlined_call_operand.vmem [shape: f32[1,3], index: 10, kind: input, shape index: {}]   ;;  %s4694_s11 = inlined_call_operand.vmem [shape: f32[8,3], index: 11, kind: output, shape index: {}]  }
   0x1   :  { %17 = vsyncpa [#allocation6], 0  ;;  %s43_s19 = sshll.u32 %s4688_s5, 4  ;;  %s3381_s20 = smov [#allocation5]   ;;  %s44_s19 = int_to_ptr.hbm [resolvable:$true] %s43_s19 }
   0x2   :  { %s45_s21 = sshll.u32 %s3381_s20, 4  ;;  %s26_s24 = sshll.u32 %s4685_s2, 4  ;;  %s46_s21 = int_to_ptr.vmem [resolvable:$true] %s45_s21  ;;  %s27_s24 = int_to_ptr.hbm [resolvable:$true] %s26_s24 }
   0x3   :  { %s3382_s25 = smov 192   ;;  %s3383_s26 = smov 12  }
   0x4   :  { %51 = dma.hbm_to_vmem [thread:$0]  %s44_s19, 3072, %s46_s21, [#allocation6], %s3382_s25, %s3382_s25, %s3383_s26  }
   0x5   :  { %s3384_s27 = smov [#allocation3]   ;;  %s56_s12 = sshll.u32 %s4689_s6, 4  ;;  %s57_s12 = int_to_ptr.hbm [resolvable:$true] %s56_s12 }
   0x6   :  { %s28_s28 = sshll.u32 %s3384_s27, 4  ;;  %s3385_s5 = smov [#allocation7]   ;;  %s29_s28 = int_to_ptr.vmem [resolvable:$true] %s28_s28 }
   0x7   :  { %34 = dma.hbm_to_vmem [thread:$0]  %s27_s24, 3072, %s29_s28, [#allocation4], %s3382_s25, %s3382_s25, %s3383_s26  }
   0x8   :  { %s58_s13 = sshll.u32 %s3385_s5, 4  ;;  %s59_s13 = int_to_ptr.vmem [resolvable:$true] %s58_s13 }
   0x9   :  { %64 = dma.hbm_to_vmem [thread:$0]  %s57_s12, 3072, %s59_s13, [#allocation6], %s3382_s25, %s3382_s25, %s3383_s26  }
   0xa   :  { %3377 = dma.done.wait [#allocation4], 3072  }
   0xb   :  { %3378 = vsyncadd [#allocation4], 4294964224 }
   0xc   :  { %3379 = dma.done.wait [#allocation6], 6144  }
   0xd   :  { %3380 = vsyncadd [#allocation6], 4294961152  ;;  %v4697_v0 = vmov 0   ;;  %v2725_v1 = vld [vmem:[#allocation7 + $0xa8] sm:$0xf]  ;;  %v3505_v49 = vld [vmem:[%s4683_s0] sm:$0xff]  }
   0xe   :  { %3125 = vset.pattern.permute.xlu0 %v4697_v0  ;;  %3127 = vset.pattern.permute.xlu1 %v4697_v0  ;;  %v3034_v2 = vld [vmem:[#allocation7 + $0xb0] sm:$0xf0]  ;;  %v2789_v3 = vld [vmem:[#allocation3 + $0xa8] sm:$0xf]  ;;  %v3057_v6 = vld [vmem:[#allocation3 + $0xac] sm:$0xf]  ;;  %v3101_v53 = vunpack.c.l.bf16 %v3505_v49 }
   0xf   :  { %3129 = vset.pattern.permute.xlu2 %v4697_v0  ;;  %v3460_v4 = vor.u32 %v3034_v2, %v2725_v1  ;;  %v3058_v5 = vld [vmem:[#allocation3 + $0xb0] sm:$0xf0]  ;;  %v2791_v7 = vld [vmem:[#allocation3 + $0xb4] sm:$0xf0]  ;;  %v2717_v10 = vld [vmem:[#allocation7 + $0x90] sm:$0xf] }
  0x10   :  { %v3462_v8 = vor.u32 %v3058_v5, %v2789_v3  ;;  %v3464_v9 = vor.u32 %v3057_v6, %v2791_v7  ;;  %v3032_v11 = vld [vmem:[#allocation7 + $0x98] sm:$0xf0]  ;;  %v2781_v12 = vld [vmem:[#allocation3 + $0x90] sm:$0xf]  ;;  %v3055_v15 = vld [vmem:[#allocation3 + $0x94] sm:$0xf]  ;;  %114 = vperm.xlu0 %3125, %v3101_v53  }
  0x11   :  { %435 = vmatpush.bf16.msra.mxu0 %v3460_v4  ;;  %v3467_v13 = vor.u32 %v3032_v11, %v2717_v10  ;;  %v3056_v14 = vld [vmem:[#allocation3 + $0x98] sm:$0xf0]  ;;  %v2783_v16 = vld [vmem:[#allocation3 + $0x9c] sm:$0xf0]  ;;  %v2709_v19 = vld [vmem:[#allocation7 + $0x78] sm:$0xf] }
  0x12   :  { %4845 = vst [vmem:[#allocation10_spill] sm:$0xff] %v3464_v9  ;;  %579 = vmatpush.bf16.msra.mxu2 %v3462_v8  ;;  %592 = vmatpush.bf16.msra.mxu3 %v3464_v9  ;;  %v3471_v17 = vor.u32 %v3056_v14, %v2781_v12  ;;  %v3473_v18 = vor.u32 %v3055_v15, %v2783_v16  ;;  %v3030_v20 = vld [vmem:[#allocation7 + $0x80] sm:$0xf0]  ;;  %v2773_v21 = vld [vmem:[#allocation3 + $0x78] sm:$0xf]  ;;  %v4695_v16 = vmov 1  }
  0x13   :  { %4846 = vst [vmem:[#allocation11_spill] sm:$0xff] %v3467_v13  ;;  %v3054_v22 = vld [vmem:[#allocation3 + $0x80] sm:$0xf0]  ;;  %v3053_v23 = vld [vmem:[#allocation3 + $0x7c] sm:$0xf]  ;;  %v3476_v25 = vor.u32 %v3030_v20, %v2709_v19 }
  0x14   :  { %4847 = vst [vmem:[#allocation12_spill] sm:$0xff] %v3473_v18  ;;  %v2775_v24 = vld [vmem:[#allocation3 + $0x84] sm:$0xf0]  ;;  %v3480_v26 = vor.u32 %v3054_v22, %v2773_v21  ;;  %v2701_v28 = vld [vmem:[#allocation7 + $0x60] sm:$0xf] }
  0x15   :  { %436 = vmatpush.bf16.msra.mxu0 %v3467_v13  ;;  %v3482_v27 = vor.u32 %v3053_v23, %v2775_v24  ;;  %v3028_v29 = vld [vmem:[#allocation7 + $0x68] sm:$0xf0]  ;;  %v2765_v30 = vld [vmem:[#allocation3 + $0x60] sm:$0xf]  ;;  %v3051_v32 = vld [vmem:[#allocation3 + $0x64] sm:$0xf] }
  0x16   :  { %580 = vmatpush.bf16.msra.mxu2 %v3471_v17  ;;  %593 = vmatpush.bf16.msra.mxu3 %v3473_v18  ;;  %v3052_v31 = vld [vmem:[#allocation3 + $0x68] sm:$0xf0]  ;;  %v2767_v33 = vld [vmem:[#allocation3 + $0x6c] sm:$0xf0]  ;;  %v3485_v34 = vor.u32 %v3028_v29, %v2701_v28  ;;  %v2693_v37 = vld [vmem:[#allocation7 + $0x48] sm:$0xf] }
  0x17   :  { %4848 = vst [vmem:[#allocation13_spill] sm:$0xff] %v3482_v27  ;;  %v3489_v35 = vor.u32 %v3052_v31, %v2765_v30  ;;  %v3491_v36 = vor.u32 %v3051_v32, %v2767_v33  ;;  %v3026_v38 = vld [vmem:[#allocation7 + $0x50] sm:$0xf0]  ;;  %v2757_v39 = vld [vmem:[#allocation3 + $0x48] sm:$0xf] }
  0x18   :  { %v3050_v40 = vld [vmem:[#allocation3 + $0x50] sm:$0xf0]  ;;  %v3049_v41 = vld [vmem:[#allocation3 + $0x4c] sm:$0xf]  ;;  %v2759_v42 = vld [vmem:[#allocation3 + $0x54] sm:$0xf0]  ;;  %v3494_v43 = vor.u32 %v3026_v38, %v2693_v37  ;;  %3126 = vset.pattern.permute.xlu0 %v4695_v16 }
  0x19   :  { %437 = vmatpush.bf16.msra.mxu0 %v3476_v25  ;;  %4849 = vst [vmem:[#allocation14_spill] sm:$0xff] %v3491_v36  ;;  %v2685_v44 = vld [vmem:[#allocation7 + $0x30] sm:$0xf]  ;;  %v3498_v45 = vor.u32 %v3050_v40, %v2757_v39  ;;  %v3500_v46 = vor.u32 %v3049_v41, %v2759_v42  ;;  %v3024_v47 = vld [vmem:[#allocation7 + $0x38] sm:$0xf0]  ;;  %211 = vperm.xlu0 %3126, %v3101_v53  }
  0x1a   :  { %581 = vmatpush.bf16.msra.mxu2 %v3480_v26  ;;  %594 = vmatpush.bf16.msra.mxu3 %v3482_v27  ;;  %v2749_v48 = vld [vmem:[#allocation3 + $0x30] sm:$0xf]  ;;  %v3048_v50 = vld [vmem:[#allocation3 + $0x38] sm:$0xf0]  ;;  %v3047_v51 = vld [vmem:[#allocation3 + $0x34] sm:$0xf]  ;;  %v3509_v54 = vor.u32 %v3024_v47, %v2685_v44 }
  0x1b   :  { %4850 = vst [vmem:[#allocation15_spill] sm:$0xff] %v3498_v45  ;;  %v2751_v52 = vld [vmem:[#allocation3 + $0x3c] sm:$0xf0]  ;;  %v2677_v55 = vld [vmem:[#allocation7 + $0x18] sm:$0xf]  ;;  %v3513_v58 = vor.u32 %v3048_v50, %v2749_v48 }
  0x1c   :  { %4851 = vst [vmem:[#allocation16_spill] sm:$0xff] %v3500_v46  ;;  %v3022_v56 = vld [vmem:[#allocation7 + $0x20] sm:$0xf0]  ;;  %v2741_v57 = vld [vmem:[#allocation3 + $0x18] sm:$0xf]  ;;  %v3515_v59 = vor.u32 %v3047_v51, %v2751_v52 }
  0x1d   :  { %438 = vmatpush.bf16.msra.mxu0 %v3485_v34  ;;  %4852 = vst [vmem:[#allocation17_spill] sm:$0xff] %v3513_v58  ;;  %v3046_v60 = vld [vmem:[#allocation3 + $0x20] sm:$0xf0]  ;;  %v3045_v61 = vld [vmem:[#allocation3 + $0x1c] sm:$0xf]  ;;  %v3518_v63 = vor.u32 %v3022_v56, %v2677_v55 }
  0x1e   :  { %582 = vmatpush.bf16.msra.mxu2 %v3489_v35  ;;  %595 = vmatpush.bf16.msra.mxu3 %v3491_v36  ;;  %4853 = vst [vmem:[#allocation18_spill] sm:$0xff] %v3515_v59  ;;  %v2743_v62 = vld [vmem:[#allocation3 + $0x24] sm:$0xf0]  ;;  %v2669_v1 = vld [vmem:[#allocation7] sm:$0xf]  ;;  %v3522_v2 = vor.u32 %v3046_v60, %v2741_v57 }
  0x1f   :  { %4854 = vst [vmem:[#allocation19_spill] sm:$0xff] %v3518_v63  ;;  %v3524_v3 = vor.u32 %v3045_v61, %v2743_v62  ;;  %v3020_v5 = vld [vmem:[#allocation7 + $0x8] sm:$0xf0]  ;;  %v2733_v6 = vld [vmem:[#allocation3] sm:$0xf] }
  0x20   :  { %4855 = vst [vmem:[#allocation20_spill] sm:$0xff] %v3522_v2  ;;  %v3044_v7 = vld [vmem:[#allocation3 + $0x8] sm:$0xf0]  ;;  %v3043_v10 = vld [vmem:[#allocation3 + $0x4] sm:$0xf]  ;;  %v3527_v15 = vor.u32 %v3020_v5, %v2669_v1 }
  0x21   :  { %439 = vmatpush.bf16.msra.mxu0 %v3494_v43  ;;  %4856 = vst [vmem:[#allocation21_spill] sm:$0xff] %v3524_v3  ;;  %v2735_v11 = vld [vmem:[#allocation3 + $0xc] sm:$0xf0]  ;;  %v3066_v14 = vld [vmem:[#allocation3 + $0xb8] sm:$0xf0]  ;;  %v3532_v19 = vor.u32 %v3044_v7, %v2733_v6  ;;  %3132 = vset.pattern.permute.xlu0 %v4697_v0 }
  0x22   :  { %583 = vmatpush.bf16.msra.mxu2 %v3498_v45  ;;  %596 = vmatpush.bf16.msra.mxu3 %v3500_v46  ;;  %v2827_v12 = vld [vmem:[#allocation3 + $0xb0] sm:$0xf]  ;;  %4857 = vst [vmem:[#allocation22_spill] sm:$0xff] %v3527_v15  ;;  %v3534_v20 = vor.u32 %v3043_v10, %v2735_v11  ;;  %v2823_v22 = vld [vmem:[#allocation3 + $0x98] sm:$0xf] }
  0x23   :  { %4858 = vst [vmem:[#allocation23_spill] sm:$0xff] %v3532_v19  ;;  %v3536_v21 = vor.u32 %v3066_v14, %v2827_v12  ;;  %v3065_v23 = vld [vmem:[#allocation3 + $0xa0] sm:$0xf0]  ;;  %v2819_v28 = vld [vmem:[#allocation3 + $0x80] sm:$0xf] }
  0x24   :  { %4859 = vst [vmem:[#allocation24_spill] sm:$0xff] %v3534_v20  ;;  %v3542_v24 = vor.u32 %v3065_v23, %v2823_v22  ;;  %v3064_v29 = vld [vmem:[#allocation3 + $0x88] sm:$0xf0]  ;;  %v2815_v31 = vld [vmem:[#allocation3 + $0x68] sm:$0xf] }
  0x25   :  { %440 = vmatpush.bf16.msra.mxu0 %v3509_v54  ;;  %v3548_v30 = vor.u32 %v3064_v29, %v2819_v28  ;;  %v3063_v32 = vld [vmem:[#allocation3 + $0x70] sm:$0xf0]  ;;  %v2811_v37 = vld [vmem:[#allocation3 + $0x50] sm:$0xf]  ;;  %v3062_v38 = vld [vmem:[#allocation3 + $0x58] sm:$0xf0] }
  0x26   :  { %584 = vmatpush.bf16.msra.mxu2 %v3513_v58  ;;  %597 = vmatpush.bf16.msra.mxu3 %v3515_v59  ;;  %4860 = vst [vmem:[#allocation25_spill] sm:$0xff] %v3542_v24  ;;  %v3552_v33 = vor.u32 %v3063_v32, %v2815_v31  ;;  %v3555_v39 = vor.u32 %v3062_v38, %v2811_v37  ;;  %v2807_v40 = vld [vmem:[#allocation3 + $0x38] sm:$0xf]  ;;  %v3061_v41 = vld [vmem:[#allocation3 + $0x40] sm:$0xf0] }
  0x27   :  { %4861 = vst [vmem:[#allocation26_spill] sm:$0xff] %v3548_v30  ;;  %v3558_v42 = vor.u32 %v3061_v41, %v2807_v40  ;;  %v2803_v44 = vld [vmem:[#allocation3 + $0x20] sm:$0xf]  ;;  %v3060_v47 = vld [vmem:[#allocation3 + $0x28] sm:$0xf0] }
  0x28   :  { %4862 = vst [vmem:[#allocation27_spill] sm:$0xff] %v3552_v33  ;;  %v3561_v48 = vor.u32 %v3060_v47, %v2803_v44  ;;  %v2799_v50 = vld [vmem:[#allocation3 + $0x8] sm:$0xf]  ;;  %v3059_v51 = vld [vmem:[#allocation3 + $0x10] sm:$0xf0] }
  0x29   :  { %441 = vmatpush.bf16.msra.mxu0 %v3518_v63  ;;  %4863 = vst [vmem:[#allocation28_spill] sm:$0xff] %v3555_v39  ;;  %v3564_v52 = vor.u32 %v3059_v51, %v2799_v50  ;;  %v3033_v53 = vld [vmem:[#allocation7 + $0xac] sm:$0xf]  ;;  %v2727_v55 = vld [vmem:[#allocation7 + $0xb4] sm:$0xf0] }
  0x2a   :  { %585 = vmatpush.bf16.msra.mxu2 %v3522_v2  ;;  %598 = vmatpush.bf16.msra.mxu3 %v3524_v3  ;;  %4864 = vst [vmem:[#allocation29_spill] sm:$0xff] %v3558_v42  ;;  %v2957_v56 = vld [vmem:[#allocation7 + $0xb0] sm:$0xf]  ;;  %v3568_v57 = vor.u32 %v3033_v53, %v2727_v55  ;;  %v3042_v60 = vld [vmem:[#allocation7 + $0xb8] sm:$0xf0] }
  0x2b   :  { %4865 = vst [vmem:[#allocation30_spill] sm:$0xff] %v3561_v48  ;;  %v3570_v61 = vor.u32 %v3042_v60, %v2957_v56  ;;  %v3031_v62 = vld [vmem:[#allocation7 + $0x94] sm:$0xf]  ;;  %v2719_v1 = vld [vmem:[#allocation7 + $0x9c] sm:$0xf0] }
  0x2c   :  { %4866 = vst [vmem:[#allocation31_spill] sm:$0xff] %v3564_v52  ;;  %448 = vmatpush.bf16.msra.mxu1 %v3568_v57  ;;  %v2953_v5 = vld [vmem:[#allocation7 + $0x98] sm:$0xf]  ;;  %v3574_v6 = vor.u32 %v3031_v62, %v2719_v1  ;;  %v3041_v7 = vld [vmem:[#allocation7 + $0xa0] sm:$0xf0] }
  0x2d   :  { %442 = vmatpush.bf16.msra.mxu0 %v3527_v15  ;;  %4867 = vst [vmem:[#allocation32_spill] sm:$0xff] %v3568_v57  ;;  %v3029_v10 = vld [vmem:[#allocation7 + $0x7c] sm:$0xf]  ;;  %v2711_v11 = vld [vmem:[#allocation7 + $0x84] sm:$0xf0]  ;;  %v3576_v12 = vor.u32 %v3041_v7, %v2953_v5 }
  0x2e   :  { %586 = vmatpush.bf16.msra.mxu2 %v3532_v19  ;;  %599 = vmatpush.bf16.msra.mxu3 %v3534_v20  ;;  %4868 = vst [vmem:[#allocation33_spill] sm:$0xff] %v3570_v61  ;;  %v2949_v14 = vld [vmem:[#allocation7 + $0x80] sm:$0xf]  ;;  %v3040_v22 = vld [vmem:[#allocation7 + $0x88] sm:$0xf0]  ;;  %v3579_v23 = vor.u32 %v3029_v10, %v2711_v11 }
  0x2f   :  { %4869 = vst [vmem:[#allocation34_spill] sm:$0xff] %v3574_v6  ;;  %v3582_v28 = vor.u32 %v3040_v22, %v2949_v14  ;;  %v3027_v29 = vld [vmem:[#allocation7 + $0x64] sm:$0xf]  ;;  %v2703_v31 = vld [vmem:[#allocation7 + $0x6c] sm:$0xf0] }
  0x30   :  { %443 = vmatmul.bf16.vlgmr.msra.gmra.mxu0 %v4697_v0  ;;  %4870 = vst [vmem:[#allocation35_spill] sm:$0xff] %v3576_v12  ;;  %449 = vmatpush.bf16.msra.mxu1 %v3574_v6  ;;  %v3585_v32 = vor.u32 %v3027_v29, %v2703_v31  ;;  %v2945_v37 = vld [vmem:[#allocation7 + $0x68] sm:$0xf]  ;;  %v3039_v38 = vld [vmem:[#allocation7 + $0x70] sm:$0xf0] }
  0x31   :  { %709 = vmatpush.bf16.msrb.mxu0 %v3536_v21  ;;  %587 = vmatmul.bf16.vlgmr.msra.gmra.mxu2 %v4697_v0  ;;  %4871 = vst [vmem:[#allocation36_spill] sm:$0xff] %v3579_v23  ;;  %v3589_v40 = vor.u32 %v3039_v38, %v2945_v37  ;;  %v3025_v41 = vld [vmem:[#allocation7 + $0x4c] sm:$0xf]  ;;  %v2695_v44 = vld [vmem:[#allocation7 + $0x54] sm:$0xf0] }
  0x32   :  { %600 = vmatmul.bf16.vlgmr.msra.gmra.mxu3 %v4697_v0  ;;  %4872 = vst [vmem:[#allocation37_spill] sm:$0xff] %v3582_v28  ;;  %v2923_v47 = vld [vmem:[#allocation5 + $0xb0] sm:$0xf]  ;;  %v3592_v50 = vor.u32 %v3025_v41, %v2695_v44  ;;  %v3090_v51 = vld [vmem:[#allocation5 + $0xb8] sm:$0xf0] }
  0x33   :  { %4873 = vst [vmem:[#allocation38_spill] sm:$0xff] %v3585_v32  ;;  %v2941_v53 = vld [vmem:[#allocation7 + $0x50] sm:$0xf]  ;;  %v3038_v55 = vld [vmem:[#allocation7 + $0x58] sm:$0xf0]  ;;  %v3594_v56 = vor.u32 %v3090_v51, %v2923_v47 }
  0x34   :  { %450 = vmatpush.bf16.msra.mxu1 %v3579_v23  ;;  %4874 = vst [vmem:[#allocation39_spill] sm:$0xff] %v3589_v40  ;;  %v3596_v60 = vor.u32 %v3038_v55, %v2941_v53  ;;  %v102_v62 = vld [vmem:[%s4684_s1] sm:$0x7]  ;;  %v3023_v1 = vld [vmem:[#allocation7 + $0x34] sm:$0xf] }
  0x35   :  { %710 = vmatpush.bf16.msrb.mxu0 %v3542_v24  ;;  %4875 = vst [vmem:[#allocation40_spill] sm:$0xff] %v3592_v50  ;;  %916 = vmatpush.bf16.msrb.mxu3 %v3594_v56  ;;  %v2687_v5 = vld [vmem:[#allocation7 + $0x3c] sm:$0xf0]  ;;  %v2911_v7 = vld [vmem:[#allocation5 + $0x98] sm:$0xf]  ;;  %v3610_v37 = vunpack.c.l.bf16 %v102_v62 }
  0x36   :  { %4876 = vst [vmem:[#allocation41_spill] sm:$0xff] %v3594_v56  ;;  %v3604_v10 = vor.u32 %v3023_v1, %v2687_v5  ;;  %v3087_v11 = vld [vmem:[#allocation5 + $0xa0] sm:$0xf0]  ;;  %v2937_v14 = vld [vmem:[#allocation7 + $0x38] sm:$0xf] }
  0x37   :  { %4877 = vst [vmem:[#allocation42_spill] sm:$0xff] %v3596_v60  ;;  %v3037_v22 = vld [vmem:[#allocation7 + $0x40] sm:$0xf0]  ;;  %v3606_v29 = vor.u32 %v3087_v11, %v2911_v7  ;;  %v3021_v38 = vld [vmem:[#allocation7 + $0x1c] sm:$0xf]  ;;  %v153_v5 = vperm.slane %v3610_v37, 0 }
  0x38   :  { %451 = vmatpush.bf16.msra.mxu1 %v3585_v32  ;;  %4878 = vst [vmem:[#allocation43_spill] sm:$0xff] %v3604_v10  ;;  %v3608_v31 = vor.u32 %v3037_v22, %v2937_v14  ;;  %v2679_v41 = vld [vmem:[#allocation7 + $0x24] sm:$0xf0]  ;;  %v2899_v44 = vld [vmem:[#allocation5 + $0x80] sm:$0xf]  ;;  %v154_v62 = vperm.slane %v3610_v37, 2 }
  0x39   :  { %711 = vmatpush.bf16.msrb.mxu0 %v3548_v30  ;;  %4879 = vst [vmem:[#allocation44_spill] sm:$0xff] %v3606_v29  ;;  %917 = vmatpush.bf16.msrb.mxu3 %v3606_v29  ;;  %v3615_v47 = vor.u32 %v3021_v38, %v2679_v41  ;;  %v3084_v51 = vld [vmem:[#allocation5 + $0x88] sm:$0xf0]  ;;  %v2933_v53 = vld [vmem:[#allocation7 + $0x20] sm:$0xf] }
  0x3a   :  { %4880 = vst [vmem:[#allocation45_spill] sm:$0xff] %v3608_v31  ;;  %v3036_v55 = vld [vmem:[#allocation7 + $0x28] sm:$0xf0]  ;;  %v3617_v1 = vor.u32 %v3084_v51, %v2899_v44  ;;  %v3019_v14 = vld [vmem:[#allocation7 + $0x4] sm:$0xf] }
  0x3b   :  { %4881 = vst [vmem:[#allocation46_spill] sm:$0xff] %v3615_v47  ;;  %v3622_v7 = vor.u32 %v3036_v55, %v2933_v53  ;;  %v2671_v22 = vld [vmem:[#allocation7 + $0xc] sm:$0xf0]  ;;  %v2887_v38 = vld [vmem:[#allocation5 + $0x68] sm:$0xf] }
  0x3c   :  { %452 = vmatpush.bf16.msra.mxu1 %v3592_v50  ;;  %4882 = vst [vmem:[#allocation47_spill] sm:$0xff] %v3617_v1  ;;  %v3628_v41 = vor.u32 %v3019_v14, %v2671_v22  ;;  %v3081_v44 = vld [vmem:[#allocation5 + $0x70] sm:$0xf0]  ;;  %v2929_v51 = vld [vmem:[#allocation7 + $0x8] sm:$0xf]  ;;  %v243_v14 = vperm.slane %v3610_v37, 3 }
  0x3d   :  { %712 = vmatpush.bf16.msrb.mxu0 %v3552_v33  ;;  %4883 = vst [vmem:[#allocation48_spill] sm:$0xff] %v3622_v7  ;;  %918 = vmatpush.bf16.msrb.mxu3 %v3617_v1  ;;  %v3035_v16 = vld [vmem:[#allocation7 + $0x10] sm:$0xf0]  ;;  %v2915_v53 = vld [vmem:[#allocation5 + $0xa8] sm:$0xf] }
  0x3e   :  { %4884 = vst [vmem:[#allocation49_spill] sm:$0xff] %v3628_v41  ;;  %v3089_v55 = vld [vmem:[#allocation5 + $0xb0] sm:$0xf0]  ;;  %v2893_v33 = vld [vmem:[#allocation5 + $0x84] sm:$0xf0] }
  0x3f   :  { %v3642_v22 = vor.u32 %v3089_v55, %v2915_v53  ;;  %v3086_v53 = vld [vmem:[#allocation5 + $0x98] sm:$0xf0]  ;;  %v3085_v55 = vld [vmem:[#allocation5 + $0x94] sm:$0xf] }
  0x40   :  { %453 = vmatpush.bf16.msra.mxu1 %v3604_v10 }
  0x41   :  { %713 = vmatpush.bf16.msrb.mxu0 %v3555_v39 }
  0x44   :  { %454 = vmatpush.bf16.msra.mxu1 %v3615_v47 }
  0x45   :  { %714 = vmatpush.bf16.msrb.mxu0 %v3558_v42 }
  0x48   :  { %455 = vmatpush.bf16.msra.mxu1 %v3628_v41 }
  0x49   :  { %715 = vmatpush.bf16.msrb.mxu0 %v3561_v48 }
  0x4c   :  { %890 = vmatpush.bf16.msrb.mxu1 %v3642_v22 }
  0x4d   :  { %716 = vmatpush.bf16.msrb.mxu0 %v3564_v52  ;;  %v2903_v52 = vld [vmem:[#allocation5 + $0x90] sm:$0xf] }
  0x50   :  { %717 = vmatmul.bf16.vlgmr.msrb.gmra.mxu0 %v4697_v0  ;;  %v3630_v0 = vor.u32 %v3081_v44, %v2887_v38  ;;  %v2917_v38 = vld [vmem:[#allocation5 + $0xb4] sm:$0xf0]  ;;  %v3644_v44 = vperm.slane %v153_v5, 0  ;;  %v3657_v5 = vor.u32 %v3086_v53, %v2903_v52 }
  0x51   :  { %1017 = vmatpush.bf16.msra.mxu0 %v3570_v61  ;;  %v2863_v52 = vld [vmem:[#allocation5 + $0x38] sm:$0xf] }
  0x52   :  { %4885 = vst [vmem:[#allocation50_spill] sm:$0xff] %v3630_v0  ;;  %919 = vmatpush.bf16.msrb.mxu3 %v3630_v0  ;;  %891 = vmatpush.bf16.msrb.mxu1 %v3657_v5 }
  0x53   :  { %4887 = vst [vmem:[#allocation52_spill] sm:$0xff] %v3644_v44 }
  0x54   :  { %4891 = vst [vmem:[#allocation56_spill] sm:$0xff] %v3657_v5 }
  0x55   :  { %1018 = vmatpush.bf16.msra.mxu0 %v3576_v12  ;;  %v3078_v12 = vld [vmem:[#allocation5 + $0x58] sm:$0xf0] }
  0x59   :  { %1019 = vmatpush.bf16.msra.mxu0 %v3582_v28  ;;  %v242_v28 = vperm.slane %v3610_v37, 1 }
  0x5d   :  { %1020 = vmatpush.bf16.msra.mxu0 %v3589_v40  ;;  %v3637_v40 = vld [vmem:[%s4686_s3] sm:$0x7] }
  0x5e   :  { %v3672_v42 = vperm.slane %v3637_v40, 1 }
  0x60   :  { %4897 = vst [vmem:[#allocation61_spill] sm:$0xff] %v3672_v42 }
  0x61   :  { %1021 = vmatpush.bf16.msra.mxu0 %v3596_v60  ;;  %v3088_v60 = vld [vmem:[#allocation5 + $0xac] sm:$0xf] }
  0x65   :  { %1022 = vmatpush.bf16.msra.mxu0 %v3608_v31  ;;  %v3632_v31 = vor.u32 %v3035_v16, %v2929_v51  ;;  %v3646_v16 = vperm.slane %v154_v62, 0  ;;  %v3649_v51 = vor.u32 %v3088_v60, %v2917_v38  ;;  %v2905_v62 = vld [vmem:[#allocation5 + $0x9c] sm:$0xf0]  ;;  %v3659_v60 = vperm.slane %v242_v28, 1  ;;  %v3075_v28 = vld [vmem:[#allocation5 + $0x40] sm:$0xf0] }
  0x66   :  { %v3661_v38 = vperm.slane %v243_v14, 1  ;;  %v3663_v48 = vor.u32 %v3085_v55, %v2905_v62  ;;  %v3679_v53 = vor.u32 %v3075_v28, %v2863_v52  ;;  %v2891_v55 = vld [vmem:[#allocation5 + $0x78] sm:$0xf]  ;;  %v3083_v62 = vld [vmem:[#allocation5 + $0x80] sm:$0xf0] }
  0x67   :  { %4886 = vst [vmem:[#allocation51_spill] sm:$0xff] %v3632_v31  ;;  %903 = vmatpush.bf16.msrb.mxu2 %v3649_v51  ;;  %v3685_v39 = vor.u32 %v3083_v62, %v2891_v55  ;;  %v2851_v52 = vld [vmem:[#allocation5 + $0x20] sm:$0xf]  ;;  %v3072_v28 = vld [vmem:[#allocation5 + $0x28] sm:$0xf0] }
  0x68   :  { %4888 = vst [vmem:[#allocation53_spill] sm:$0xff] %v3646_v16  ;;  %v3699_v62 = vor.u32 %v3072_v28, %v2851_v52  ;;  %v2867_v28 = vld [vmem:[#allocation5 + $0x48] sm:$0xf] }
  0x69   :  { %1023 = vmatpush.bf16.msra.mxu0 %v3622_v7  ;;  %4889 = vst [vmem:[#allocation54_spill] sm:$0xff] %v3649_v51  ;;  %v2875_v7 = vld [vmem:[#allocation5 + $0x50] sm:$0xf]  ;;  %892 = vmatpush.bf16.msrb.mxu1 %v3685_v39 }
  0x6a   :  { %v3653_v61 = vor.u32 %v3078_v12, %v2875_v7  ;;  %4892 = vst [vmem:[#allocation57_spill] sm:$0xff] %v3659_v60  ;;  %v3669_v7 = vperm.slane %v3637_v40, 0 }
  0x6b   :  { %4893 = vst [vmem:[#allocation58_spill] sm:$0xff] %v3661_v38  ;;  %904 = vmatpush.bf16.msrb.mxu2 %v3663_v48 }
  0x6c   :  { %4890 = vst [vmem:[#allocation55_spill] sm:$0xff] %v3653_v61  ;;  %920 = vmatpush.bf16.msrb.mxu3 %v3653_v61 }
  0x6d   :  { %1024 = vmatpush.bf16.msra.mxu0 %v3632_v31  ;;  %4894 = vst [vmem:[#allocation59_spill] sm:$0xff] %v3663_v48  ;;  %v4895_v31 = vmov 0  }
  0x6e   :  { %456 = vmatmul.bf16.vlgmr.msra.gmra.mxu1 %v4895_v31  ;;  %4896 = vst [vmem:[#allocation60_spill] sm:$0xff] %v3669_v7 }
  0x6f   :  { %4898 = vst [vmem:[#allocation62_spill] sm:$0xff] %v3679_v53 }
  0x70   :  { %1025 = vmatmul.bf16.vlgmr.msra.gmra.mxu0 %v4895_v31  ;;  %4899 = vst [vmem:[#allocation63_spill] sm:$0xff] %v3685_v39  ;;  %921 = vmatpush.bf16.msrb.mxu3 %v3679_v53  ;;  %v3077_v39 = vld [vmem:[#allocation5 + $0x50] sm:$0xf0] }
  0x71   :  { %1083 = vmatpush.bf16.msrb.mxu0 %v3464_v9  ;;  %4902 = vst [vmem:[#allocation66_spill] sm:$0xff] %v3699_v62 }
  0x74   :  { %922 = vmatpush.bf16.msrb.mxu3 %v3699_v62 }
  0x75   :  { %1084 = vmatpush.bf16.msrb.mxu0 %v3473_v18  ;;  %v3079_v18 = vld [vmem:[#allocation5 + $0x64] sm:$0xf] }
  0x79   :  { %1085 = vmatpush.bf16.msrb.mxu0 %v3482_v27 }
  0x7d   :  { %1086 = vmatpush.bf16.msrb.mxu0 %v3491_v36  ;;  %v4914_v36 = vmov 1  }
  0x81   :  { %1087 = vmatpush.bf16.msrb.mxu0 %v3500_v46 }
  0x82   :  { %v3624_v11 = vpop.permute.xlu0 %114 }
  0x83   :  { %v162_v12 = vmul.f32 %v3644_v44, %v3624_v11  ;;  %v163_v14 = vmul.f32 %v3646_v16, %v3624_v11  ;;  %v3082_v44 = vld [vmem:[#allocation5 + $0x7c] sm:$0xf] }
  0x84   :  { %v3689_v24 = vor.u32 %v3082_v44, %v2893_v33  ;;  %v2879_v33 = vld [vmem:[#allocation5 + $0x60] sm:$0xf]  ;;  %v3080_v44 = vld [vmem:[#allocation5 + $0x68] sm:$0xf0] }
  0x85   :  { %v186_v16 = vadd.f32 %v162_v12, %v3669_v7  ;;  %v187_v55 = vadd.f32 %v163_v14, %v3672_v42  ;;  %v3703_v12 = vor.u32 %v3080_v44, %v2879_v33  ;;  %v2881_v7 = vld [vmem:[#allocation5 + $0x6c] sm:$0xf0]  ;;  %v3069_v14 = vld [vmem:[#allocation5 + $0x10] sm:$0xf0]  ;;  %1088 = vmatpush.bf16.msrb.mxu0 %v3515_v59  ;;  %v155_v59 = vperm.slane %v3610_v37, 4 }
  0x86   :  { %4901 = vst [vmem:[#allocation65_spill] sm:$0xff] %v3689_v24  ;;  %905 = vmatpush.bf16.msrb.mxu2 %v3689_v24  ;;  %v3076_v24 = vld [vmem:[#allocation5 + $0x4c] sm:$0xf] }
  0x87   :  { %893 = vmatpush.bf16.msrb.mxu1 %v3703_v12 }
  0x89   :  { %1089 = vmatpush.bf16.msrb.mxu0 %v3524_v3 }
  0x8b   :  { %v3681_v9 = vpop.permute.xlu0 %211 }
  0x8c   :  { %v251_v5 = vmul.f32 %v3659_v60, %v3681_v9  ;;  %v252_v48 = vmul.f32 %v3661_v38, %v3681_v9  ;;  %v3705_v60 = vor.u32 %v3079_v18, %v2881_v7  ;;  %v2839_v38 = vld [vmem:[#allocation5 + $0x8] sm:$0xf]  ;;  %v3713_v18 = vor.u32 %v3077_v39, %v2867_v28  ;;  %v2869_v7 = vld [vmem:[#allocation5 + $0x54] sm:$0xf0]  ;;  %v3074_v39 = vld [vmem:[#allocation5 + $0x38] sm:$0xf0] }
  0x8d   :  { %v3709_v52 = vor.u32 %v3069_v14, %v2839_v38  ;;  %v3073_v14 = vld [vmem:[#allocation5 + $0x34] sm:$0xf]  ;;  %v3070_v28 = vld [vmem:[#allocation5 + $0x1c] sm:$0xf]  ;;  %1090 = vmatpush.bf16.msrb.mxu0 %v3534_v20 }
  0x8e   :  { %v275_v42 = vadd.f32 %v251_v5, %v186_v16  ;;  %906 = vmatpush.bf16.msrb.mxu2 %v3705_v60  ;;  %894 = vmatpush.bf16.msrb.mxu1 %v3713_v18 }
  0x8f   :  { %4903 = vst [vmem:[#allocation67_spill] sm:$0xff] %v3709_v52  ;;  %923 = vmatpush.bf16.msrb.mxu3 %v3709_v52 }
  0x91   :  { %1183 = vmatpush.bf16.msra.mxu0 %v3594_v56  ;;  %v3772_v56 = vld [vmem:[%s4687_s4] ss:$0 sm:$0xff] }
  0x93   :  { %1070 = vmatpush.bf16.msra.mxu3 %v3462_v8 }
  0x95   :  { %1184 = vmatpush.bf16.msra.mxu0 %v3606_v29 }
  0x97   :  { %1071 = vmatpush.bf16.msra.mxu3 %v3471_v17 }
  0x99   :  { %1185 = vmatpush.bf16.msra.mxu0 %v3617_v1 }
  0x9b   :  { %1072 = vmatpush.bf16.msra.mxu3 %v3480_v26 }
  0x9d   :  { %1186 = vmatpush.bf16.msra.mxu0 %v3630_v0 }
  0x9f   :  { %1073 = vmatpush.bf16.msra.mxu3 %v3489_v35 }
  0xa1   :  { %1187 = vmatpush.bf16.msra.mxu0 %v3653_v61 }
  0xa3   :  { %1074 = vmatpush.bf16.msra.mxu3 %v3498_v45 }
  0xa5   :  { %1188 = vmatpush.bf16.msra.mxu0 %v3679_v53 }
  0xa7   :  { %1075 = vmatpush.bf16.msra.mxu3 %v3513_v58 }
  0xa9   :  { %1189 = vmatpush.bf16.msra.mxu0 %v3699_v62 }
  0xab   :  { %1076 = vmatpush.bf16.msra.mxu3 %v3522_v2 }
  0xad   :  { %v3687_v30 = vpop.f32.mrf.mxu0  ;;  %1190 = vmatpush.bf16.msra.mxu0 %v3709_v52 }
  0xae   :  { %4900 = vst [vmem:[#allocation64_spill] sm:$0xff] %v3687_v30  ;;  %v276_v30 = vadd.f32 %v252_v48, %v187_v55  ;;  %v3715_v48 = vor.u32 %v3076_v24, %v2869_v7  ;;  %v2855_v55 = vld [vmem:[#allocation5 + $0x30] sm:$0xf] }
  0xaf   :  { %1077 = vmatpush.bf16.msra.mxu3 %v3532_v19 }
  0xb0   :  { %4904 = vst [vmem:[#allocation68_spill] sm:$0xff] %v3715_v48  ;;  %907 = vmatpush.bf16.msrb.mxu2 %v3715_v48 }
  0xb4   :  { %v588_v51 = vpop.f32.mrf.mxu2 }
  0xb5   :  { %v601_v27 = vpop.f32.mrf.mxu3  ;;  %v621_v33 = vadd.f32 %v588_v51, %v275_v42  ;;  %v446_v16 = vpop.f32.mrf.mxu0  ;;  %v2857_v42 = vld [vmem:[#allocation5 + $0x3c] sm:$0xf0]  ;;  %v3071_v51 = vld [vmem:[#allocation5 + $0x20] sm:$0xf0] }
  0xb6   :  { %v641_v44 = vadd.f32 %v601_v27, %v276_v30  ;;  %v3722_v27 = vor.u32 %v3074_v39, %v2855_v55  ;;  %v3724_v24 = vor.u32 %v3073_v14, %v2857_v42  ;;  %v2843_v30 = vld [vmem:[#allocation5 + $0x18] sm:$0xf]  ;;  %v2845_v16 = vld [vmem:[#allocation5 + $0x24] sm:$0xf0]  ;;  %v3068_v39 = vld [vmem:[#allocation5 + $0x8] sm:$0xf0] }
  0xb7   :  { %v2795_v5 = vmul.f32 -1.442695, %v621_v33  ;;  %v3067_v14 = vld [vmem:[#allocation5 + $0x4] sm:$0xf] }
  0xb8   :  { %v2796_v38 = vmul.f32 -1.442695, %v641_v44  ;;  %4905 = vst [vmem:[#allocation69_spill] sm:$0xff] %v3722_v27  ;;  %895 = vmatpush.bf16.msrb.mxu1 %v3722_v27  ;;  %908 = vmatpush.bf16.msrb.mxu2 %v3724_v24  ;;  %v3730_v44 = vor.u32 %v3071_v51, %v2843_v30  ;;  %v2833_v30 = vld [vmem:[#allocation5 + $0xc] sm:$0xf0] }
  0xb9   :  { %3141 = vpow2.f32 %v2795_v5  ;;  %4906 = vst [vmem:[#allocation70_spill] sm:$0xff] %v3724_v24  ;;  %v3732_v5 = vor.u32 %v3070_v28, %v2845_v16  ;;  %v3742_v28 = vor.u32 %v3067_v14, %v2833_v30  ;;  %v3102_v16 = vunpack.c.h.bf16 %v3505_v49 }
  0xba   :  { %3143 = vpow2.f32 %v2796_v38  ;;  %4907 = vst [vmem:[#allocation71_spill] sm:$0xff] %v3730_v44  ;;  %v2831_v38 = vld [vmem:[#allocation5] sm:$0xf]  ;;  %v244_v49 = vperm.slane %v3610_v37, 5 }
  0xbb   :  { %4908 = vst [vmem:[#allocation72_spill] sm:$0xff] %v3732_v5  ;;  %119 = vperm.xlu1 %3127, %v3102_v16  }
  0xbc   :  { %v590_v7 = vpop.f32.mrf.mxu2  ;;  %896 = vmatpush.bf16.msrb.mxu1 %v3730_v44  ;;  %909 = vmatpush.bf16.msrb.mxu2 %v3732_v5  ;;  %4910 = vst [vmem:[#allocation74_spill] sm:$0xff] %v3742_v28  ;;  %v3767_v37 = vperm.slane %v244_v49, 1 }
  0xbd   :  { %v603_v33 = vpop.f32.mrf.mxu3 }
  0xbe   :  { %v3738_v33 = vor.u32 %v3068_v39, %v2831_v38  ;;  %4913 = vst [vmem:[#allocation77_spill] sm:$0xff] %v3767_v37 }
  0xbf   :  { %v3142_v55 = vpop.eup %3141 }
  0xc0   :  { %v3144_v42 = vpop.eup %3143  ;;  %v625_v7 = vadd.f32 1.0, %v3142_v55  ;;  %4909 = vst [vmem:[#allocation73_spill] sm:$0xff] %v3738_v33  ;;  %897 = vmatpush.bf16.msrb.mxu1 %v3738_v33  ;;  %910 = vmatpush.bf16.msrb.mxu2 %v3742_v28  ;;  %v3752_v55 = vperm.slane %v155_v59, 0 }
  0xc1   :  { %v3740_v51 = vadd.f32 1.0, %v3144_v42  ;;  %v3760_v42 = vperm.slane %v3637_v40, 2 }
  0xc2   :  { %3145 = vrcp.f32 %v625_v7  ;;  %4911 = vst [vmem:[#allocation75_spill] sm:$0xff] %v3752_v55  ;;  %v164_v59 = vmul.f32 %v3752_v55, %v3624_v11  ;;  %v637_v46 = vand.u32 2147483648, %v625_v7  ;;  %v635_v55 = vand.u32 2147483647, %v625_v7 }
  0xc3   :  { %3147 = vrcp.f32 %v3740_v51  ;;  %4912 = vst [vmem:[#allocation76_spill] sm:$0xff] %v3760_v42  ;;  %3128 = vset.pattern.permute.xlu1 %v4914_v36  ;;  %vm631_vm1 = vweird.f32 %v625_v7  ;;  %vm651_vm5 = vweird.f32 %v3740_v51 }
  0xc4   :  { %1038 = vmatpush.bf16.msra.mxu1 %v3460_v4  ;;  %1051 = vmatpush.bf16.msra.mxu2 %v3568_v57  ;;  %v188_v49 = vadd.f32 %v164_v59, %v3760_v42  ;;  %vm636_vm3 = vcmp.eq.f32.partialorder %v635_v55, 8.507059e+37 }
  0xc5   :  { %215 = vperm.xlu1 %3128, %v3102_v16  }
  0xc8   :  { %v3146_v38 = vpop.eup %3145  ;;  %1039 = vmatpush.bf16.msra.mxu1 %v3467_v13  ;;  %1052 = vmatpush.bf16.msra.mxu2 %v3574_v6 }
  0xc9   :  { %v3148_v39 = vpop.eup %3147  ;;  %v627_v14 = vmul.f32 %v3146_v38, %v625_v7  ;;  %vm632_vm0 = vweird.f32 %v3146_v38  ;;  %v657_v7 = vand.u32 2147483648, %v3740_v51 }
  0xca   :  { %v647_v30 = vmul.f32 %v3148_v39, %v3740_v51  ;;  %vm633_vm2 = vmor %vm631_vm1, %vm632_vm0  ;;  %vm652_vm4 = vweird.f32 %v3148_v39 }
  0xcb   :  { %v628_v20 = vsub.f32 1.0, %v627_v14  ;;  %v253_v14 = vmul.f32 %v3767_v37, %v3681_v9  ;;  %vm653_vm6 = vmor %vm651_vm5, %vm652_vm4 }
  0xcc   :  { %v648_v40 = vsub.f32 1.0, %v647_v30  ;;  %1040 = vmatpush.bf16.msra.mxu1 %v3476_v25  ;;  %1053 = vmatpush.bf16.msra.mxu2 %v3579_v23 }
  0xcd   :  { %v718_v3 = vpop.f32.mrf.mxu0  ;;  %v629_v11 = vmul.f32 %v3146_v38, %v628_v20  ;;  %v638_v20 = vor.u32 1.1754944e-38, %v637_v46  ;;  %v277_v9 = vadd.f32 %v253_v14, %v188_v49  ;;  %3131 = vset.pattern.permute.xlu1 %v4895_v31 }
  0xce   :  { %v649_v29 = vmul.f32 %v3148_v39, %v648_v40  ;;  %v719_v30 = vadd.f32 %v3772_v56, %v718_v3 }
  0xcf   :  { %v630_v13 = vadd.f32 %v3146_v38, %v629_v11 }
  0xd0   :  { %1041 = vmatpush.bf16.msra.mxu1 %v3485_v34  ;;  %v650_v16 = vadd.f32 %v3148_v39, %v649_v29  ;;  %1054 = vmatpush.bf16.msra.mxu2 %v3585_v32  ;;  %v658_v29 = vor.u32 1.1754944e-38, %v657_v7  ;;  %v4920_v7 = vld [vmem:[#allocation63_spill] sm:$0xff] }
  0xd1   :  { %v634_v36 = vsel %vm633_vm2, %v3146_v38, %v630_v13  ;;  %v655_v13 = vand.u32 2147483647, %v3740_v51 }
  0xd2   :  { %v639_v59 = vsel %vm636_vm3, %v638_v20, %v634_v36  ;;  %v654_v36 = vsel %vm653_vm6, %v3148_v39, %v650_v16  ;;  %v4916_v20 = vld [vmem:[#allocation25_spill] sm:$0xff]  ;;  %v4917_v16 = vld [vmem:[#allocation56_spill] sm:$0xff] }
  0xd3   :  { %v722_v40 = vmul.f32 %v719_v30, %v639_v59  ;;  %vm656_vm7 = vcmp.eq.f32.partialorder %v655_v13, 8.507059e+37  ;;  %v4915_v30 = vld [vmem:[#allocation54_spill] sm:$0xff]  ;;  %v4918_v59 = vld [vmem:[#allocation59_spill] sm:$0xff]  ;;  %v4923_v13 = vld [vmem:[#allocation28_spill] sm:$0xff] }
  0xd4   :  { %1042 = vmatpush.bf16.msra.mxu1 %v3494_v43  ;;  %1055 = vmatpush.bf16.msra.mxu2 %v3592_v50  ;;  %v659_v55 = vsel %vm656_vm7, %v658_v29, %v654_v36  ;;  %v4925_v36 = vld [vmem:[#allocation30_spill] sm:$0xff]  ;;  %v4926_v29 = vld [vmem:[#allocation31_spill] sm:$0xff] }
  0xd5   :  { %v720_v3 = vpop.f32.mrf.mxu0  ;;  %v723_v46 = vadd.f32 %v722_v40, %v277_v9  ;;  %v725_v51 = vsub.f32 1.0, %v659_v55  ;;  %v727_v11 = vmul.f32 0.0, %v659_v55  ;;  %v4919_v9 = vld [vmem:[#allocation26_spill] sm:$0xff]  ;;  %v4921_v40 = vld [vmem:[#allocation65_spill] sm:$0xff] }
  0xd6   :  { %v4922_v3 = vld [vmem:[#allocation27_spill] sm:$0xff] }
  0xd7   :  { %3149 = vtanh.f32 %v723_v46  ;;  %v4924_v46 = vld [vmem:[#allocation29_spill] sm:$0xff] }
  0xd8   :  { %1043 = vmatpush.bf16.msra.mxu1 %v3509_v54  ;;  %1056 = vmatpush.bf16.msra.mxu2 %v3604_v10 }
  0xdc   :  { %1044 = vmatpush.bf16.msra.mxu1 %v3518_v63  ;;  %1057 = vmatpush.bf16.msra.mxu2 %v3615_v47 }
  0xdd   :  { %v3150_v38 = vpop.eup %3149 }
  0xde   :  { %v726_v39 = vmul.f32 %v3150_v38, %v725_v51 }
  0xe0   :  { %v3801_v49 = vadd.f32 %v727_v11, %v726_v39  ;;  %1045 = vmatpush.bf16.msra.mxu1 %v3527_v15  ;;  %1058 = vmatpush.bf16.msra.mxu2 %v3628_v41  ;;  %v331_v11 = vld [vmem:[%s4690_s7] sm:$0x7] }
  0xe2   :  { %v3806_v14 = vpack.c.bf16 %v3801_v49, %v3801_v49 }
  0xe4   :  { %898 = vmatmul.bf16.vlgmr.msrb.gmra.mxu1 %v3806_v14  ;;  %911 = vmatmul.bf16.vlgmr.msrb.gmra.mxu2 %v3806_v14 }
  0xe5   :  { %924 = vmatmul.bf16.vlgmr.msrb.gmra.mxu3 %v3806_v14  ;;  %1091 = vmatmul.bf16.vlgmr.msrb.gmra.mxu0 %v3806_v14 }
  0xe6   :  { %1136 = vmatpush.bf16.msrb.mxu1 %v3536_v21  ;;  %1157 = vmatpush.bf16.msrb.mxu2 %v3642_v22 }
  0xe7   :  { %1170 = vmatpush.bf16.msrb.mxu3 %v4915_v30  ;;  %1289 = vmatpush.bf16.msrb.mxu0 %v3462_v8 }
  0xea   :  { %1137 = vmatpush.bf16.msrb.mxu1 %v4916_v20  ;;  %1158 = vmatpush.bf16.msrb.mxu2 %v4917_v16 }
  0xeb   :  { %1171 = vmatpush.bf16.msrb.mxu3 %v4918_v59  ;;  %1290 = vmatpush.bf16.msrb.mxu0 %v3471_v17  ;;  %v457_v55 = vpop.f32.mrf.mxu1 }
  0xed   :  { %v1026_v51 = vpop.f32.mrf.mxu0 }
  0xee   :  { %1138 = vmatpush.bf16.msrb.mxu1 %v4919_v9  ;;  %1159 = vmatpush.bf16.msrb.mxu2 %v4920_v7 }
  0xef   :  { %1172 = vmatpush.bf16.msrb.mxu3 %v4921_v40  ;;  %1291 = vmatpush.bf16.msrb.mxu0 %v3480_v26 }
  0xf2   :  { %1139 = vmatpush.bf16.msrb.mxu1 %v4922_v3  ;;  %1160 = vmatpush.bf16.msrb.mxu2 %v3703_v12 }
  0xf3   :  { %1173 = vmatpush.bf16.msrb.mxu3 %v3705_v60  ;;  %1292 = vmatpush.bf16.msrb.mxu0 %v3489_v35  ;;  %v459_v38 = vpop.f32.mrf.mxu1 }
  0xf5   :  { %1078 = vmatmul.bf16.vlgmr.msra.gmra.mxu3 %v3806_v14  ;;  %v1028_v39 = vpop.f32.mrf.mxu0 }
  0xf6   :  { %1140 = vmatpush.bf16.msrb.mxu1 %v4923_v13  ;;  %1161 = vmatpush.bf16.msrb.mxu2 %v3713_v18 }
  0xf7   :  { %1174 = vmatpush.bf16.msrb.mxu3 %v3715_v48  ;;  %1293 = vmatpush.bf16.msrb.mxu0 %v3498_v45 }
  0xfa   :  { %1141 = vmatpush.bf16.msrb.mxu1 %v4924_v46  ;;  %1162 = vmatpush.bf16.msrb.mxu2 %v3722_v27 }
  0xfb   :  { %1175 = vmatpush.bf16.msrb.mxu3 %v3724_v24  ;;  %1294 = vmatpush.bf16.msrb.mxu0 %v3513_v58 }
  0xfe   :  { %1142 = vmatpush.bf16.msrb.mxu1 %v4925_v36  ;;  %1163 = vmatpush.bf16.msrb.mxu2 %v3730_v44 }
  0xff   :  { %1176 = vmatpush.bf16.msrb.mxu3 %v3732_v5  ;;  %1295 = vmatpush.bf16.msrb.mxu0 %v3522_v2 }
 0x102   :  { %1143 = vmatpush.bf16.msrb.mxu1 %v4926_v29  ;;  %1164 = vmatpush.bf16.msrb.mxu2 %v3738_v33 }
 0x103   :  { %1177 = vmatpush.bf16.msrb.mxu3 %v3742_v28  ;;  %1296 = vmatpush.bf16.msrb.mxu0 %v3532_v19 }
 0x107   :  { %1270 = vmatpush.bf16.msra.mxu3 %v3568_v57 }
 0x10b   :  { %1271 = vmatpush.bf16.msra.mxu3 %v3574_v6  ;;  %v3858_v6 = vperm.slane %v331_v11, 0 }
 0x10d   :  { %4927 = vst [vmem:[#allocation54_spill] sm:$0xff] %v3858_v6 }
 0x10f   :  { %1272 = vmatpush.bf16.msra.mxu3 %v3579_v23 }
 0x113   :  { %1273 = vmatpush.bf16.msra.mxu3 %v3585_v32 }
 0x117   :  { %1274 = vmatpush.bf16.msra.mxu3 %v3592_v50 }
 0x11b   :  { %1275 = vmatpush.bf16.msra.mxu3 %v3604_v10  ;;  %v4928_v10 = vld [vmem:[#allocation64_spill] sm:$0xff] }
 0x11f   :  { %1276 = vmatpush.bf16.msra.mxu3 %v3615_v47  ;;  %v3864_v47 = vperm.slane %v331_v11, 1 }
 0x121   :  { %4929 = vst [vmem:[#allocation25_spill] sm:$0xff] %v3864_v47 }
 0x123   :  { %1277 = vmatpush.bf16.msra.mxu3 %v3628_v41 }
 0x161   :  { %v899_v23 = vpop.f32.mrf.mxu1 }
 0x162   :  { %v900_v32 = vadd.f32 %v899_v23, %v3858_v6  ;;  %v3861_v50 = vpop.f32.mrf.mxu0 }
 0x164   :  { %v929_v57 = vadd.f32 %v900_v32, %v4928_v10 }
 0x166   :  { %v2925_v41 = vmul.f32 -1.442695, %v929_v57 }
 0x167   :  { %v912_v19 = vpop.f32.mrf.mxu2 }
 0x168   :  { %3151 = vpow2.f32 %v2925_v41  ;;  %v913_v38 = vadd.f32 %v912_v19, %v3864_v47  ;;  %v925_v39 = vpop.f32.mrf.mxu3  ;;  %v3872_v19 = vld [vmem:[%s4691_s8] ss:$0 sm:$0xff] }
 0x169   :  { %v901_v28 = vpop.f32.mrf.mxu1 }
 0x16a   :  { %v949_v33 = vadd.f32 %v913_v38, %v457_v55  ;;  %v1094_v29 = vpop.f32.mrf.mxu0 }
 0x16c   :  { %v2926_v2 = vmul.f32 -1.442695, %v949_v33 }
 0x16e   :  { %v3152_v5 = vpop.eup %3151  ;;  %3153 = vpow2.f32 %v2926_v2 }
 0x16f   :  { %v933_v44 = vadd.f32 1.0, %v3152_v5  ;;  %v914_v23 = vpop.f32.mrf.mxu2 }
 0x170   :  { %v927_v6 = vpop.f32.mrf.mxu3 }
 0x171   :  { %3155 = vrcp.f32 %v933_v44  ;;  %v945_v33 = vand.u32 2147483648, %v933_v44  ;;  %v943_v2 = vand.u32 2147483647, %v933_v44  ;;  %v3874_v6 = vperm.slane %v331_v11, 2 }
 0x172   :  { %vm939_vm9 = vweird.f32 %v933_v44 }
 0x173   :  { %v946_v38 = vor.u32 1.1754944e-38, %v945_v33  ;;  %vm944_vm11 = vcmp.eq.f32.partialorder %v943_v2, 8.507059e+37 }
 0x174   :  { %v3154_v36 = vpop.eup %3153 }
 0x175   :  { %v953_v32 = vadd.f32 1.0, %v3154_v36  ;;  %v1027_v36 = vadd.f32 %v3872_v19, %v1026_v51 }
 0x177   :  { %v3156_v10 = vpop.eup %3155  ;;  %3157 = vrcp.f32 %v953_v32  ;;  %v965_v46 = vand.u32 2147483648, %v953_v32  ;;  %v963_v11 = vand.u32 2147483647, %v953_v32  ;;  %vm959_vm13 = vweird.f32 %v953_v32 }
 0x178   :  { %v935_v57 = vmul.f32 %v3156_v10, %v933_v44  ;;  %v3867_v58 = vpop.f32.mrf.mxu3  ;;  %vm940_vm8 = vweird.f32 %v3156_v10 }
 0x179   :  { %vm941_vm10 = vmor %vm939_vm9, %vm940_vm8  ;;  %v966_v44 = vor.u32 1.1754944e-38, %v965_v46  ;;  %vm964_vm15 = vcmp.eq.f32.partialorder %v963_v11, 8.507059e+37  ;;  %v4933_v46 = vld [vmem:[#allocation37_spill] sm:$0xff]  ;;  %v4943_v11 = vld [vmem:[#allocation16_spill] sm:$0xff] }
 0x17a   :  { %v936_v41 = vsub.f32 1.0, %v935_v57  ;;  %v926_v57 = vadd.f32 %v925_v39, %v3874_v6 }
 0x17c   :  { %v937_v28 = vmul.f32 %v3156_v10, %v936_v41 }
 0x17d   :  { %v3158_v5 = vpop.eup %3157 }
 0x17e   :  { %v955_v29 = vmul.f32 %v3158_v5, %v953_v32  ;;  %v938_v55 = vadd.f32 %v3156_v10, %v937_v28  ;;  %vm960_vm12 = vweird.f32 %v3158_v5  ;;  %v4934_v32 = vld [vmem:[#allocation39_spill] sm:$0xff] }
 0x17f   :  { %vm961_vm14 = vmor %vm959_vm13, %vm960_vm12 }
 0x180   :  { %v956_v23 = vsub.f32 1.0, %v955_v29  ;;  %v942_v47 = vsel %vm941_vm10, %v3156_v10, %v938_v55  ;;  %v1081_v24 = vpop.f32.mrf.mxu3  ;;  %v4937_v55 = vld [vmem:[#allocation48_spill] sm:$0xff] }
 0x181   :  { %v947_v27 = vsel %vm944_vm11, %v946_v38, %v942_v47  ;;  %v4938_v38 = vld [vmem:[#allocation51_spill] sm:$0xff] }
 0x182   :  { %v957_v41 = vmul.f32 %v3158_v5, %v956_v23  ;;  %v1030_v45 = vmul.f32 %v1027_v36, %v947_v27  ;;  %v4930_v27 = vld [vmem:[#allocation33_spill] sm:$0xff]  ;;  %v4939_v23 = vld [vmem:[#allocation10_spill] sm:$0xff] }
 0x183   :  { %v4936_v36 = vld [vmem:[#allocation45_spill] sm:$0xff] }
 0x184   :  { %v958_v48 = vadd.f32 %v3158_v5, %v957_v41  ;;  %v1031_v51 = vadd.f32 %v1030_v45, %v926_v57  ;;  %v4931_v45 = vld [vmem:[#allocation35_spill] sm:$0xff]  ;;  %v4941_v57 = vld [vmem:[#allocation13_spill] sm:$0xff]  ;;  %v4942_v41 = vld [vmem:[#allocation14_spill] sm:$0xff] }
 0x186   :  { %v962_v28 = vsel %vm961_vm14, %v3158_v5, %v958_v48  ;;  %3159 = vtanh.f32 %v1031_v51  ;;  %v4932_v48 = vld [vmem:[#allocation11_spill] sm:$0xff]  ;;  %v4935_v5 = vld [vmem:[#allocation42_spill] sm:$0xff] }
 0x187   :  { %v967_v33 = vsel %vm964_vm15, %v966_v44, %v962_v28  ;;  %v4944_v51 = vld [vmem:[#allocation18_spill] sm:$0xff]  ;;  %v4945_v28 = vld [vmem:[#allocation21_spill] sm:$0xff]  ;;  %v4946_v44 = vld [vmem:[#allocation24_spill] sm:$0xff] }
 0x188   :  { %v1033_v10 = vsub.f32 1.0, %v967_v33  ;;  %v1035_v29 = vmul.f32 0.0, %v967_v33  ;;  %v4947_v33 = vld [vmem:[#allocation41_spill] sm:$0xff] }
 0x18c   :  { %v3160_v2 = vpop.eup %3159 }
 0x18d   :  { %v1034_v24 = vmul.f32 %v3160_v2, %v1033_v10  ;;  %v4948_v10 = vld [vmem:[#allocation44_spill] sm:$0xff]  ;;  %v120_v2 = vpop.permute.xlu1 %119 }
 0x18f   :  { %v3878_v39 = vadd.f32 %v1035_v29, %v1034_v24  ;;  %v4949_v24 = vld [vmem:[#allocation52_spill] sm:$0xff] }
 0x190   :  { %v165_v29 = vmul.f32 %v4949_v24, %v120_v2 }
 0x191   :  { %v1037_v47 = vpack.c.bf16 %v3878_v39, %v3878_v39 }
 0x193   :  { %1046 = vmatmul.bf16.vlgmr.msra.gmra.mxu1 %v1037_v47  ;;  %1059 = vmatmul.bf16.vlgmr.msra.gmra.mxu2 %v1037_v47 }
 0x194   :  { %1236 = vmatpush.bf16.msra.mxu1 %v4930_v27  ;;  %1257 = vmatpush.bf16.msra.mxu2 %v3460_v4 }
 0x198   :  { %1237 = vmatpush.bf16.msra.mxu1 %v4931_v45  ;;  %1258 = vmatpush.bf16.msra.mxu2 %v4932_v48 }
 0x19c   :  { %1238 = vmatpush.bf16.msra.mxu1 %v4933_v46  ;;  %1259 = vmatpush.bf16.msra.mxu2 %v3476_v25 }
 0x1a0   :  { %1239 = vmatpush.bf16.msra.mxu1 %v4934_v32  ;;  %1260 = vmatpush.bf16.msra.mxu2 %v3485_v34 }
 0x1a3   :  { %1144 = vmatmul.bf16.vlgmr.msrb.gmra.mxu1 %v3806_v14  ;;  %v4940_v14 = vld [vmem:[#allocation12_spill] sm:$0xff] }
 0x1a4   :  { %1240 = vmatpush.bf16.msra.mxu1 %v4935_v5  ;;  %1261 = vmatpush.bf16.msra.mxu2 %v3494_v43 }
 0x1a8   :  { %1241 = vmatpush.bf16.msra.mxu1 %v4936_v36  ;;  %1262 = vmatpush.bf16.msra.mxu2 %v3509_v54 }
 0x1ac   :  { %1242 = vmatpush.bf16.msra.mxu1 %v4937_v55  ;;  %1263 = vmatpush.bf16.msra.mxu2 %v3518_v63 }
 0x1b0   :  { %1243 = vmatpush.bf16.msra.mxu1 %v4938_v38  ;;  %1264 = vmatpush.bf16.msra.mxu2 %v3527_v15 }
 0x1b3   :  { %1244 = vmatmul.bf16.vlgmr.msra.gmra.mxu1 %v1037_v47  ;;  %v216_v47 = vpop.permute.xlu1 %215 }
 0x1b4   :  { %1302 = vmatpush.bf16.msrb.mxu1 %v4939_v23 }
 0x1b8   :  { %1303 = vmatpush.bf16.msrb.mxu1 %v4940_v14 }
 0x1bc   :  { %1304 = vmatpush.bf16.msrb.mxu1 %v4941_v57  ;;  %v4954_v57 = vld [vmem:[#allocation61_spill] sm:$0xff] }
 0x1c0   :  { %1305 = vmatpush.bf16.msrb.mxu1 %v4942_v41 }
 0x1c4   :  { %1306 = vmatpush.bf16.msrb.mxu1 %v4943_v11 }
 0x1c8   :  { %1307 = vmatpush.bf16.msrb.mxu1 %v4944_v51  ;;  %v4951_v51 = vld [vmem:[#allocation60_spill] sm:$0xff] }
 0x1cc   :  { %1308 = vmatpush.bf16.msrb.mxu1 %v4945_v28  ;;  %v4950_v28 = vld [vmem:[#allocation57_spill] sm:$0xff] }
 0x1d0   :  { %1309 = vmatpush.bf16.msrb.mxu1 %v4946_v44  ;;  %v254_v44 = vmul.f32 %v4950_v28, %v216_v47 }
 0x1d4   :  { %1402 = vmatpush.bf16.msra.mxu1 %v4947_v33  ;;  %v189_v33 = vadd.f32 %v165_v29, %v4951_v51 }
 0x1d6   :  { %v278_v11 = vadd.f32 %v254_v44, %v189_v33 }
 0x1d8   :  { %1403 = vmatpush.bf16.msra.mxu1 %v4948_v10  ;;  %v4952_v10 = vld [vmem:[#allocation53_spill] sm:$0xff] }
 0x1dc   :  { %1404 = vmatpush.bf16.msra.mxu1 %v3617_v1  ;;  %v166_v1 = vmul.f32 %v4952_v10, %v120_v2 }
 0x1e0   :  { %1405 = vmatpush.bf16.msra.mxu1 %v3630_v0  ;;  %v4953_v0 = vld [vmem:[#allocation58_spill] sm:$0xff] }
 0x1e1   :  { %v255_v41 = vmul.f32 %v4953_v0, %v216_v47 }
 0x1e4   :  { %1406 = vmatpush.bf16.msra.mxu1 %v3653_v61  ;;  %v190_v61 = vadd.f32 %v166_v1, %v4954_v57 }
 0x1e6   :  { %v279_v14 = vadd.f32 %v255_v41, %v190_v61 }
 0x1e8   :  { %1407 = vmatpush.bf16.msra.mxu1 %v3679_v53  ;;  %v1096_v53 = vadd.f32 %v3867_v58, %v278_v11 }
 0x1ea   :  { %v2959_v24 = vmul.f32 -1.442695, %v1096_v53 }
 0x1ec   :  { %1408 = vmatpush.bf16.msra.mxu1 %v3699_v62  ;;  %v1116_v62 = vadd.f32 %v3861_v50, %v279_v14  ;;  %3161 = vpow2.f32 %v2959_v24 }
 0x1ee   :  { %v2960_v15 = vmul.f32 -1.442695, %v1116_v62  ;;  %v4955_v62 = vld [vmem:[#allocation75_spill] sm:$0xff] }
 0x1ef   :  { %v167_v41 = vmul.f32 %v4955_v62, %v120_v2 }
 0x1f0   :  { %1409 = vmatpush.bf16.msra.mxu1 %v3709_v52  ;;  %3163 = vpow2.f32 %v2960_v15 }
 0x1f1   :  { %v191_v0 = vadd.f32 %v167_v41, %v3760_v42 }
 0x1f2   :  { %v3162_v28 = vpop.eup %3161 }
 0x1f3   :  { %v1100_v29 = vadd.f32 1.0, %v3162_v28 }
 0x1f5   :  { %3165 = vrcp.f32 %v1100_v29  ;;  %v1112_v11 = vand.u32 2147483648, %v1100_v29  ;;  %vm1106_vm1 = vweird.f32 %v1100_v29 }
 0x1f6   :  { %v3164_v51 = vpop.eup %3163 }
 0x1f7   :  { %v1120_v52 = vadd.f32 1.0, %v3164_v51  ;;  %v1110_v51 = vand.u32 2147483647, %v1100_v29  ;;  %v1113_v38 = vor.u32 1.1754944e-38, %v1112_v11 }
 0x1f9   :  { %3167 = vrcp.f32 %v1120_v52  ;;  %vm1111_vm3 = vcmp.eq.f32.partialorder %v1110_v51, 8.507059e+37  ;;  %vm1126_vm5 = vweird.f32 %v1120_v52 }
 0x1fb   :  { %v3166_v10 = vpop.eup %3165 }
 0x1fc   :  { %v1102_v44 = vmul.f32 %v3166_v10, %v1100_v29  ;;  %vm1107_vm0 = vweird.f32 %v3166_v10  ;;  %v1130_v29 = vand.u32 2147483647, %v1120_v52 }
 0x1fd   :  { %vm1108_vm2 = vmor %vm1106_vm1, %vm1107_vm0 }
 0x1fe   :  { %v1103_v57 = vsub.f32 1.0, %v1102_v44  ;;  %v256_v44 = vmul.f32 %v3767_v37, %v216_v47  ;;  %v3115_v47 = vld [vmem:[%s4683_s0 + $0x8] sm:$0xff]   ;;  %vm1131_vm7 = vcmp.eq.f32.partialorder %v1130_v29, 8.507059e+37  ;;  %v4963_v29 = vld [vmem:[#allocation30_spill] sm:$0xff] }
 0x1ff   :  { %v3168_v1 = vpop.eup %3167  ;;  %v3105_v41 = vunpack.c.l.bf16 %v3115_v47 }
 0x200   :  { %v1122_v58 = vmul.f32 %v3168_v1, %v1120_v52  ;;  %v1104_v53 = vmul.f32 %v3166_v10, %v1103_v57  ;;  %vm1127_vm4 = vweird.f32 %v3168_v1 }
 0x201   :  { %vm1128_vm6 = vmor %vm1126_vm5, %vm1127_vm4  ;;  %124 = vperm.xlu2 %3129, %v3105_v41  }
 0x202   :  { %v1123_v14 = vsub.f32 1.0, %v1122_v58  ;;  %v1105_v15 = vadd.f32 %v3166_v10, %v1104_v53  ;;  %v280_v53 = vadd.f32 %v256_v44, %v191_v0  ;;  %v4957_v44 = vld [vmem:[#allocation68_spill] sm:$0xff] }
 0x204   :  { %v1124_v28 = vmul.f32 %v3168_v1, %v1123_v14  ;;  %v1109_v23 = vsel %vm1108_vm2, %v3166_v10, %v1105_v15  ;;  %v3106_v15 = vunpack.c.h.bf16 %v3115_v47  ;;  %v4965_v47 = vld [vmem:[#allocation72_spill] sm:$0xff] }
 0x205   :  { %v1114_v2 = vsel %vm1111_vm3, %v1113_v38, %v1109_v23 }
 0x206   :  { %v1125_v58 = vadd.f32 %v3168_v1, %v1124_v28  ;;  %129 = vperm.xlu1 %3131, %v3106_v15  }
 0x208   :  { %v1129_v10 = vsel %vm1128_vm6, %v3168_v1, %v1125_v58  ;;  %v4959_v58 = vld [vmem:[#allocation29_spill] sm:$0xff] }
 0x210   :  { %v3923_v33 = vpop.f32.mrf.mxu1 }
 0x216   :  { %v3925_v61 = vpop.f32.mrf.mxu2 }
 0x218   :  { %v1049_v50 = vpop.f32.mrf.mxu1 }
 0x219   :  { %v1132_v50 = vand.u32 2147483648, %v1120_v52 }
 0x21b   :  { %v1133_v11 = vor.u32 1.1754944e-38, %v1132_v50  ;;  %v4962_v50 = vld [vmem:[#allocation17_spill] sm:$0xff] }
 0x21d   :  { %v1134_v0 = vsel %vm1131_vm7, %v1133_v11, %v1129_v10  ;;  %v4966_v10 = vld [vmem:[#allocation20_spill] sm:$0xff]  ;;  %v4969_v11 = vld [vmem:[#allocation74_spill] sm:$0xff] }
 0x21e   :  { %v1062_v24 = vpop.f32.mrf.mxu2  ;;  %v1152_v38 = vsub.f32 1.0, %v1134_v0  ;;  %v1154_v52 = vmul.f32 %v1134_v0, %v3801_v49  ;;  %v4971_v0 = vld [vmem:[#allocation32_spill] sm:$0xff] }
 0x21f   :  { %v4956_v24 = vmov 1  }
 0x220   :  { %v1145_v63 = vpop.f32.mrf.mxu1  ;;  %3130 = vset.pattern.permute.xlu2 %v4956_v24  ;;  %3133 = vset.pattern.permute.xlu1 %v4956_v24  ;;  %v4978_v24 = vld [vmem:[#allocation49_spill] sm:$0xff] }
 0x221   :  { %v1146_v57 = vadd.f32 %v3772_v56, %v1145_v63  ;;  %219 = vperm.xlu2 %3130, %v3105_v41   ;;  %v4967_v41 = vld [vmem:[#allocation31_spill] sm:$0xff] }
 0x223   :  { %v1149_v62 = vmul.f32 %v1146_v57, %v1114_v2  ;;  %v4958_v57 = vld [vmem:[#allocation15_spill] sm:$0xff]  ;;  %v4960_v2 = vld [vmem:[#allocation69_spill] sm:$0xff] }
 0x225   :  { %v1150_v14 = vadd.f32 %v1149_v62, %v280_v53  ;;  %v4961_v53 = vld [vmem:[#allocation70_spill] sm:$0xff] }
 0x227   :  { %3169 = vtanh.f32 %v1150_v14  ;;  %v4964_v14 = vld [vmem:[#allocation71_spill] sm:$0xff] }
 0x228   :  { %v1147_v63 = vpop.f32.mrf.mxu1 }
 0x229   :  { %223 = vperm.xlu2 %3130, %v3106_v15   ;;  %v4968_v15 = vld [vmem:[#allocation73_spill] sm:$0xff]  ;;  %v4970_v63 = vld [vmem:[#allocation23_spill] sm:$0xff] }
 0x22d   :  { %v3170_v23 = vpop.eup %3169 }
 0x22e   :  { %v1153_v51 = vmul.f32 %v3170_v23, %v1152_v38  ;;  %v4972_v38 = vld [vmem:[#allocation34_spill] sm:$0xff]  ;;  %v4973_v23 = vld [vmem:[#allocation36_spill] sm:$0xff] }
 0x230   :  { %v3935_v62 = vadd.f32 %v1154_v52, %v1153_v51  ;;  %v3937_v28 = vpop.f32.mrf.mxu1  ;;  %v4974_v51 = vld [vmem:[#allocation38_spill] sm:$0xff]  ;;  %v4975_v52 = vld [vmem:[#allocation40_spill] sm:$0xff] }
 0x231   :  { %3134 = vset.pattern.permute.xlu2 %v4895_v31  ;;  %v4977_v31 = vld [vmem:[#allocation46_spill] sm:$0xff] }
 0x232   :  { %v3943_v1 = vpack.c.bf16 %v3935_v62, %v3935_v62 }
 0x234   :  { %1165 = vmatmul.bf16.vlgmr.msrb.gmra.mxu2 %v3943_v1  ;;  %1178 = vmatmul.bf16.vlgmr.msrb.gmra.mxu3 %v3943_v1 }
 0x235   :  { %1191 = vmatmul.bf16.vlgmr.msra.gmra.mxu0 %v3943_v1  ;;  %1310 = vmatmul.bf16.vlgmr.msrb.gmra.mxu1 %v3943_v1 }
 0x236   :  { %1355 = vmatpush.bf16.msrb.mxu2 %v3536_v21  ;;  %1376 = vmatpush.bf16.msrb.mxu3 %v3642_v22 }
 0x237   :  { %1389 = vmatpush.bf16.msra.mxu0 %v4915_v30  ;;  %1508 = vmatpush.bf16.msrb.mxu1 %v3462_v8 }
 0x238   :  { %v1247_v49 = vpop.f32.mrf.mxu1 }
 0x239   :  { %v4976_v49 = vld [vmem:[#allocation43_spill] sm:$0xff] }
 0x23a   :  { %1356 = vmatpush.bf16.msrb.mxu2 %v4916_v20  ;;  %1377 = vmatpush.bf16.msrb.mxu3 %v4917_v16 }
 0x23b   :  { %1390 = vmatpush.bf16.msra.mxu0 %v4918_v59  ;;  %1509 = vmatpush.bf16.msrb.mxu1 %v3471_v17 }
 0x23e   :  { %1357 = vmatpush.bf16.msrb.mxu2 %v4919_v9  ;;  %1378 = vmatpush.bf16.msrb.mxu3 %v4920_v7 }
 0x23f   :  { %1391 = vmatpush.bf16.msra.mxu0 %v4921_v40  ;;  %1510 = vmatpush.bf16.msrb.mxu1 %v3480_v26 }
 0x242   :  { %1358 = vmatpush.bf16.msrb.mxu2 %v4922_v3  ;;  %1379 = vmatpush.bf16.msrb.mxu3 %v3703_v12 }
 0x243   :  { %1392 = vmatpush.bf16.msra.mxu0 %v3705_v60  ;;  %1511 = vmatpush.bf16.msrb.mxu1 %v3489_v35 }
 0x245   :  { %1297 = vmatmul.bf16.vlgmr.msrb.gmra.mxu0 %v3943_v1 }
 0x246   :  { %1359 = vmatpush.bf16.msrb.mxu2 %v4923_v13  ;;  %1380 = vmatpush.bf16.msrb.mxu3 %v3713_v18 }
 0x247   :  { %1393 = vmatpush.bf16.msra.mxu0 %v4957_v44  ;;  %1512 = vmatpush.bf16.msrb.mxu1 %v4958_v57 }
 0x24a   :  { %1360 = vmatpush.bf16.msrb.mxu2 %v4959_v58  ;;  %1381 = vmatpush.bf16.msrb.mxu3 %v4960_v2 }
 0x24b   :  { %1394 = vmatpush.bf16.msra.mxu0 %v4961_v53  ;;  %1513 = vmatpush.bf16.msrb.mxu1 %v4962_v50 }
 0x24e   :  { %1361 = vmatpush.bf16.msrb.mxu2 %v4963_v29  ;;  %1382 = vmatpush.bf16.msrb.mxu3 %v4964_v14 }
 0x24f   :  { %1395 = vmatpush.bf16.msra.mxu0 %v4965_v47  ;;  %1514 = vmatpush.bf16.msrb.mxu1 %v4966_v10 }
 0x252   :  { %1362 = vmatpush.bf16.msrb.mxu2 %v4967_v41  ;;  %1383 = vmatpush.bf16.msrb.mxu3 %v4968_v15 }
 0x253   :  { %1396 = vmatpush.bf16.msra.mxu0 %v4969_v11  ;;  %1515 = vmatpush.bf16.msrb.mxu1 %v4970_v63 }
 0x257   :  { %1489 = vmatpush.bf16.msrb.mxu0 %v4971_v0  ;;  %v4979_v0 = vld [vmem:[#allocation54_spill] sm:$0xff] }
 0x25b   :  { %1490 = vmatpush.bf16.msrb.mxu0 %v4972_v38  ;;  %v4980_v38 = vld [vmem:[#allocation25_spill] sm:$0xff] }
 0x25f   :  { %1491 = vmatpush.bf16.msrb.mxu0 %v4973_v23 }
 0x263   :  { %1492 = vmatpush.bf16.msrb.mxu0 %v4974_v51 }
 0x267   :  { %1493 = vmatpush.bf16.msrb.mxu0 %v4975_v52 }
 0x26b   :  { %1494 = vmatpush.bf16.msrb.mxu0 %v4976_v49 }
 0x26f   :  { %1495 = vmatpush.bf16.msrb.mxu0 %v4977_v31 }
 0x273   :  { %1496 = vmatpush.bf16.msrb.mxu0 %v4978_v24 }
 0x2b2   :  { %v1192_v15 = vpop.f32.mrf.mxu0  ;;  %v3991_v11 = vpop.f32.mrf.mxu1 }
 0x2b7   :  { %v1166_v63 = vpop.f32.mrf.mxu2  ;;  %v1179_v41 = vpop.f32.mrf.mxu3 }
 0x2b8   :  { %v1167_v10 = vadd.f32 %v1166_v63, %v4979_v0  ;;  %v1180_v47 = vadd.f32 %v1179_v41, %v4980_v38 }
 0x2ba   :  { %v1196_v23 = vadd.f32 %v1167_v10, %v3923_v33  ;;  %v1216_v51 = vadd.f32 %v1180_v47, %v3925_v61  ;;  %v1194_v52 = vpop.f32.mrf.mxu0  ;;  %v1313_v14 = vpop.f32.mrf.mxu1 }
 0x2bc   :  { %v2961_v49 = vmul.f32 -1.442695, %v1196_v23  ;;  %v2962_v29 = vmul.f32 -1.442695, %v1216_v51 }
 0x2be   :  { %3171 = vpow2.f32 %v2961_v49 }
 0x2bf   :  { %3173 = vpow2.f32 %v2962_v29  ;;  %v1168_v24 = vpop.f32.mrf.mxu2  ;;  %v1181_v31 = vpop.f32.mrf.mxu3 }
 0x2c2   :  { %v3997_v50 = vpop.f32.mrf.mxu0 }
 0x2c4   :  { %v3172_v53 = vpop.eup %3171 }
 0x2c5   :  { %v3174_v2 = vpop.eup %3173  ;;  %v1200_v58 = vadd.f32 1.0, %v3172_v53 }
 0x2c6   :  { %v1220_v63 = vadd.f32 1.0, %v3174_v2  ;;  %v1246_v2 = vadd.f32 %v3872_v19, %v3937_v28 }
 0x2c7   :  { %3175 = vrcp.f32 %v1200_v58  ;;  %v1212_v23 = vand.u32 2147483648, %v1200_v58  ;;  %v1210_v24 = vand.u32 2147483647, %v1200_v58  ;;  %vm1206_vm9 = vweird.f32 %v1200_v58 }
 0x2c8   :  { %3177 = vrcp.f32 %v1220_v63  ;;  %v1232_v38 = vand.u32 2147483648, %v1220_v63  ;;  %vm1226_vm13 = vweird.f32 %v1220_v63 }
 0x2c9   :  { %v1213_v49 = vor.u32 1.1754944e-38, %v1212_v23  ;;  %vm1211_vm11 = vcmp.eq.f32.partialorder %v1210_v24, 8.507059e+37 }
 0x2ca   :  { %v1300_v41 = vpop.f32.mrf.mxu0 }
 0x2cd   :  { %v3176_v33 = vpop.eup %3175 }
 0x2ce   :  { %v3178_v10 = vpop.eup %3177  ;;  %v1202_v61 = vmul.f32 %v3176_v33, %v1200_v58  ;;  %vm1207_vm8 = vweird.f32 %v3176_v33  ;;  %v1233_v58 = vor.u32 1.1754944e-38, %v1232_v38  ;;  %v4984_v38 = vld [vmem:[#allocation22_spill] sm:$0xff] }
 0x2cf   :  { %v1222_v47 = vmul.f32 %v3178_v10, %v1220_v63  ;;  %vm1208_vm10 = vmor %vm1206_vm9, %vm1207_vm8  ;;  %vm1227_vm12 = vweird.f32 %v3178_v10 }
 0x2d0   :  { %v1203_v14 = vsub.f32 1.0, %v1202_v61  ;;  %v1193_v61 = vadd.f32 %v1192_v15, %v3874_v6  ;;  %vm1228_vm14 = vmor %vm1226_vm13, %vm1227_vm12 }
 0x2d1   :  { %v1223_v51 = vsub.f32 1.0, %v1222_v47 }
 0x2d2   :  { %v1204_v52 = vmul.f32 %v3176_v33, %v1203_v14  ;;  %v1230_v14 = vand.u32 2147483647, %v1220_v63  ;;  %v4986_v63 = vld [vmem:[#allocation13_spill] sm:$0xff] }
 0x2d3   :  { %v1224_v31 = vmul.f32 %v3178_v10, %v1223_v51 }
 0x2d4   :  { %v1205_v29 = vadd.f32 %v3176_v33, %v1204_v52  ;;  %vm1231_vm15 = vcmp.eq.f32.partialorder %v1230_v14, 8.507059e+37  ;;  %v4995_v14 = vld [vmem:[#allocation50_spill] sm:$0xff] }
 0x2d5   :  { %v1225_v0 = vadd.f32 %v3178_v10, %v1224_v31 }
 0x2d6   :  { %v1209_v53 = vsel %vm1208_vm10, %v3176_v33, %v1205_v29  ;;  %v4988_v29 = vld [vmem:[#allocation16_spill] sm:$0xff] }
 0x2d7   :  { %v1214_v41 = vsel %vm1211_vm11, %v1213_v49, %v1209_v53  ;;  %v1229_v52 = vsel %vm1228_vm14, %v3178_v10, %v1225_v0  ;;  %v4983_v0 = vld [vmem:[#allocation10_spill] sm:$0xff]  ;;  %v4991_v53 = vld [vmem:[#allocation24_spill] sm:$0xff] }
 0x2d8   :  { %v1249_v47 = vmul.f32 %v1246_v2, %v1214_v41  ;;  %v1234_v23 = vsel %vm1231_vm15, %v1233_v58, %v1229_v52  ;;  %v4987_v10 = vld [vmem:[#allocation14_spill] sm:$0xff]  ;;  %v4990_v2 = vld [vmem:[#allocation21_spill] sm:$0xff]  ;;  %v125_v58 = vpop.permute.xlu2 %124 }
 0x2d9   :  { %v1252_v57 = vsub.f32 1.0, %v1234_v23  ;;  %v1254_v24 = vmul.f32 %v1234_v23, %v3878_v39  ;;  %v4981_v39 = vld [vmem:[#allocation19_spill] sm:$0xff]  ;;  %v4989_v49 = vld [vmem:[#allocation18_spill] sm:$0xff]  ;;  %v4992_v41 = vld [vmem:[#allocation41_spill] sm:$0xff] }
 0x2da   :  { %v1250_v51 = vadd.f32 %v1249_v47, %v1193_v61  ;;  %v4993_v61 = vld [vmem:[#allocation44_spill] sm:$0xff]  ;;  %v4994_v47 = vld [vmem:[#allocation47_spill] sm:$0xff]  ;;  %v4997_v52 = vld [vmem:[#allocation62_spill] sm:$0xff] }
 0x2db   :  { %v4998_v23 = vld [vmem:[#allocation66_spill] sm:$0xff] }
 0x2dc   :  { %3179 = vtanh.f32 %v1250_v51  ;;  %v4996_v51 = vld [vmem:[#allocation55_spill] sm:$0xff] }
 0x2e2   :  { %v3180_v28 = vpop.eup %3179 }
 0x2e3   :  { %v1253_v33 = vmul.f32 %v3180_v28, %v1252_v57  ;;  %v4982_v57 = vld [vmem:[#allocation51_spill] sm:$0xff] }
 0x2e4   :  { %v4999_v28 = vld [vmem:[#allocation67_spill] sm:$0xff] }
 0x2e5   :  { %v4003_v31 = vadd.f32 %v1254_v24, %v1253_v33  ;;  %v5000_v33 = vld [vmem:[#allocation52_spill] sm:$0xff] }
 0x2e6   :  { %v168_v24 = vmul.f32 %v5000_v33, %v125_v58 }
 0x2e7   :  { %v1256_v15 = vpack.c.bf16 %v4003_v31, %v4003_v31 }
 0x2e9   :  { %1265 = vmatmul.bf16.vlgmr.msra.gmra.mxu2 %v1256_v15  ;;  %1278 = vmatmul.bf16.vlgmr.msra.gmra.mxu3 %v1256_v15 }
 0x2ea   :  { %1455 = vmatpush.bf16.msra.mxu2 %v4930_v27  ;;  %1476 = vmatpush.bf16.msra.mxu3 %v3460_v4 }
 0x2ee   :  { %1456 = vmatpush.bf16.msra.mxu2 %v4931_v45  ;;  %1477 = vmatpush.bf16.msra.mxu3 %v4932_v48 }
 0x2f2   :  { %1457 = vmatpush.bf16.msra.mxu2 %v4933_v46  ;;  %1478 = vmatpush.bf16.msra.mxu3 %v3476_v25 }
 0x2f6   :  { %1458 = vmatpush.bf16.msra.mxu2 %v4934_v32  ;;  %1479 = vmatpush.bf16.msra.mxu3 %v3485_v34 }
 0x2f9   :  { %1363 = vmatmul.bf16.vlgmr.msrb.gmra.mxu2 %v3943_v1  ;;  %v4985_v1 = vld [vmem:[#allocation12_spill] sm:$0xff] }
 0x2fa   :  { %1459 = vmatpush.bf16.msra.mxu2 %v4935_v5  ;;  %1480 = vmatpush.bf16.msra.mxu3 %v3494_v43 }
 0x2fe   :  { %1460 = vmatpush.bf16.msra.mxu2 %v4936_v36  ;;  %1481 = vmatpush.bf16.msra.mxu3 %v3509_v54 }
 0x302   :  { %1461 = vmatpush.bf16.msra.mxu2 %v4937_v55  ;;  %1482 = vmatpush.bf16.msra.mxu3 %v4981_v39 }
 0x306   :  { %1462 = vmatpush.bf16.msra.mxu2 %v4982_v57  ;;  %1483 = vmatpush.bf16.msra.mxu3 %v4984_v38 }
 0x309   :  { %1463 = vmatmul.bf16.vlgmr.msra.gmra.mxu2 %v1256_v15  ;;  %v220_v15 = vpop.permute.xlu2 %219 }
 0x30a   :  { %1521 = vmatpush.bf16.msrb.mxu2 %v4983_v0 }
 0x30e   :  { %1522 = vmatpush.bf16.msrb.mxu2 %v4985_v1 }
 0x312   :  { %1523 = vmatpush.bf16.msrb.mxu2 %v4986_v63 }
 0x316   :  { %1524 = vmatpush.bf16.msrb.mxu2 %v4987_v10 }
 0x31a   :  { %1525 = vmatpush.bf16.msrb.mxu2 %v4988_v29 }
 0x31e   :  { %1526 = vmatpush.bf16.msrb.mxu2 %v4989_v49  ;;  %v5003_v49 = vld [vmem:[#allocation53_spill] sm:$0xff] }
 0x322   :  { %1527 = vmatpush.bf16.msrb.mxu2 %v4990_v2  ;;  %v5002_v2 = vld [vmem:[#allocation60_spill] sm:$0xff] }
 0x326   :  { %1528 = vmatpush.bf16.msrb.mxu2 %v4991_v53  ;;  %v5001_v53 = vld [vmem:[#allocation57_spill] sm:$0xff] }
 0x32a   :  { %1621 = vmatpush.bf16.msra.mxu2 %v4992_v41  ;;  %v257_v41 = vmul.f32 %v5001_v53, %v220_v15 }
 0x32e   :  { %1622 = vmatpush.bf16.msra.mxu2 %v4993_v61  ;;  %v192_v61 = vadd.f32 %v168_v24, %v5002_v2  ;;  %v259_v2 = vmul.f32 %v3767_v37, %v220_v15 }
 0x330   :  { %v281_v29 = vadd.f32 %v257_v41, %v192_v61 }
 0x332   :  { %1623 = vmatpush.bf16.msra.mxu2 %v4994_v47  ;;  %v169_v47 = vmul.f32 %v5003_v49, %v125_v58 }
 0x336   :  { %1624 = vmatpush.bf16.msra.mxu2 %v4995_v14  ;;  %v5004_v14 = vld [vmem:[#allocation58_spill] sm:$0xff] }
 0x337   :  { %v258_v10 = vmul.f32 %v5004_v14, %v220_v15 }
 0x33a   :  { %1625 = vmatpush.bf16.msra.mxu2 %v4996_v51  ;;  %v5005_v51 = vld [vmem:[#allocation61_spill] sm:$0xff] }
 0x33b   :  { %v193_v63 = vadd.f32 %v169_v47, %v5005_v51 }
 0x33d   :  { %v282_v1 = vadd.f32 %v258_v10, %v193_v63 }
 0x33e   :  { %1626 = vmatpush.bf16.msra.mxu2 %v4997_v52  ;;  %v1315_v52 = vadd.f32 %v3997_v50, %v281_v29 }
 0x342   :  { %1627 = vmatpush.bf16.msra.mxu2 %v4998_v23  ;;  %v2963_v23 = vmul.f32 -1.442695, %v1315_v52 }
 0x344   :  { %3181 = vpow2.f32 %v2963_v23  ;;  %v5006_v23 = vld [vmem:[#allocation75_spill] sm:$0xff] }
 0x346   :  { %1628 = vmatpush.bf16.msra.mxu2 %v4999_v28  ;;  %v1335_v28 = vadd.f32 %v3991_v11, %v282_v1 }
 0x348   :  { %v2964_v33 = vmul.f32 -1.442695, %v1335_v28  ;;  %v170_v28 = vmul.f32 %v5006_v23, %v125_v58 }
 0x34a   :  { %v3182_v0 = vpop.eup %3181  ;;  %3183 = vpow2.f32 %v2964_v33  ;;  %v194_v14 = vadd.f32 %v170_v28, %v3760_v42 }
 0x34b   :  { %v1319_v53 = vadd.f32 1.0, %v3182_v0 }
 0x34d   :  { %3185 = vrcp.f32 %v1319_v53  ;;  %v1331_v33 = vand.u32 2147483648, %v1319_v53  ;;  %vm1325_vm1 = vweird.f32 %v1319_v53 }
 0x350   :  { %v3184_v38 = vpop.eup %3183 }
 0x351   :  { %v1339_v24 = vadd.f32 1.0, %v3184_v38  ;;  %v1329_v38 = vand.u32 2147483647, %v1319_v53 }
 0x353   :  { %v3186_v49 = vpop.eup %3185  ;;  %3187 = vrcp.f32 %v1339_v24  ;;  %vm1330_vm3 = vcmp.eq.f32.partialorder %v1329_v38, 8.507059e+37  ;;  %vm1345_vm5 = vweird.f32 %v1339_v24 }
 0x354   :  { %v1321_v41 = vmul.f32 %v3186_v49, %v1319_v53  ;;  %vm1326_vm0 = vweird.f32 %v3186_v49  ;;  %v1349_v53 = vand.u32 2147483647, %v1339_v24 }
 0x355   :  { %vm1327_vm2 = vmor %vm1325_vm1, %vm1326_vm0 }
 0x356   :  { %v1322_v63 = vsub.f32 1.0, %v1321_v41  ;;  %v1332_v41 = vor.u32 1.1754944e-38, %v1331_v33  ;;  %vm1350_vm7 = vcmp.eq.f32.partialorder %v1349_v53, 8.507059e+37  ;;  %v5019_v53 = vld [vmem:[#allocation23_spill] sm:$0xff] }
 0x358   :  { %v1323_v29 = vmul.f32 %v3186_v49, %v1322_v63 }
 0x359   :  { %v3188_v50 = vpop.eup %3187 }
 0x35a   :  { %v1341_v10 = vmul.f32 %v3188_v50, %v1339_v24  ;;  %v1324_v0 = vadd.f32 %v3186_v49, %v1323_v29  ;;  %vm1346_vm4 = vweird.f32 %v3188_v50  ;;  %v283_v29 = vadd.f32 %v259_v2, %v194_v14  ;;  %v5007_v14 = vld [vmem:[#allocation15_spill] sm:$0xff] }
 0x35b   :  { %vm1347_vm6 = vmor %vm1345_vm5, %vm1346_vm4 }
 0x35c   :  { %v1342_v52 = vsub.f32 1.0, %v1341_v10  ;;  %v1328_v57 = vsel %vm1327_vm2, %v3186_v49, %v1324_v0 }
 0x35d   :  { %v1333_v58 = vsel %vm1330_vm3, %v1332_v41, %v1328_v57  ;;  %v5012_v41 = vld [vmem:[#allocation30_spill] sm:$0xff] }
 0x35e   :  { %v1343_v51 = vmul.f32 %v3188_v50, %v1342_v52 }
 0x360   :  { %v1344_v10 = vadd.f32 %v3188_v50, %v1343_v51  ;;  %v5008_v51 = vld [vmem:[#allocation29_spill] sm:$0xff] }
 0x362   :  { %v1348_v23 = vsel %vm1347_vm6, %v3188_v50, %v1344_v10  ;;  %v5010_v50 = vld [vmem:[#allocation70_spill] sm:$0xff]  ;;  %v5014_v10 = vld [vmem:[#allocation72_spill] sm:$0xff] }
 0x36c   :  { %v4048_v61 = vpop.f32.mrf.mxu2  ;;  %v4050_v47 = vpop.f32.mrf.mxu3 }
 0x374   :  { %v1268_v11 = vpop.f32.mrf.mxu2  ;;  %v1281_v1 = vpop.f32.mrf.mxu3 }
 0x375   :  { %v1351_v11 = vand.u32 2147483648, %v1339_v24  ;;  %v5009_v24 = vld [vmem:[#allocation69_spill] sm:$0xff] }
 0x377   :  { %v1352_v28 = vor.u32 1.1754944e-38, %v1351_v11  ;;  %v5017_v11 = vld [vmem:[#allocation73_spill] sm:$0xff] }
 0x379   :  { %v1353_v15 = vsel %vm1350_vm7, %v1352_v28, %v1348_v23  ;;  %v5011_v23 = vld [vmem:[#allocation17_spill] sm:$0xff]  ;;  %v5021_v28 = vld [vmem:[#allocation34_spill] sm:$0xff] }
 0x37a   :  { %v1371_v0 = vsub.f32 1.0, %v1353_v15 }
 0x37c   :  { %v1364_v39 = vpop.f32.mrf.mxu2 }
 0x37d   :  { %v1365_v63 = vadd.f32 %v3772_v56, %v1364_v39  ;;  %v1373_v56 = vmul.f32 %v1353_v15, %v3935_v62  ;;  %v5023_v15 = vld [vmem:[#allocation38_spill] sm:$0xff] }
 0x37f   :  { %v1368_v1 = vmul.f32 %v1365_v63, %v1333_v58  ;;  %v5013_v63 = vld [vmem:[#allocation71_spill] sm:$0xff]  ;;  %v5015_v58 = vld [vmem:[#allocation20_spill] sm:$0xff] }
 0x381   :  { %v1369_v52 = vadd.f32 %v1368_v1, %v283_v29  ;;  %v5016_v29 = vld [vmem:[#allocation31_spill] sm:$0xff]  ;;  %v5018_v1 = vld [vmem:[#allocation74_spill] sm:$0xff] }
 0x383   :  { %3189 = vtanh.f32 %v1369_v52  ;;  %v5020_v52 = vld [vmem:[#allocation32_spill] sm:$0xff] }
 0x384   :  { %v1366_v49 = vpop.f32.mrf.mxu2 }
 0x385   :  { %v5022_v49 = vld [vmem:[#allocation36_spill] sm:$0xff] }
 0x389   :  { %v3190_v33 = vpop.eup %3189 }
 0x38a   :  { %v1372_v38 = vmul.f32 %v3190_v33, %v1371_v0  ;;  %v5024_v0 = vld [vmem:[#allocation40_spill] sm:$0xff]  ;;  %v5025_v33 = vld [vmem:[#allocation43_spill] sm:$0xff] }
 0x38c   :  { %v4057_v39 = vadd.f32 %v1373_v56, %v1372_v38  ;;  %v4059_v57 = vpop.f32.mrf.mxu2  ;;  %v5026_v38 = vld [vmem:[#allocation46_spill] sm:$0xff]  ;;  %v5027_v56 = vld [vmem:[#allocation49_spill] sm:$0xff] }
 0x38e   :  { %v4063_v2 = vpack.c.bf16 %v4057_v39, %v4057_v39 }
 0x390   :  { %1384 = vmatmul.bf16.vlgmr.msrb.gmra.mxu3 %v4063_v2  ;;  %1397 = vmatmul.bf16.vlgmr.msra.gmra.mxu0 %v4063_v2 }
 0x391   :  { %1410 = vmatmul.bf16.vlgmr.msra.gmra.mxu1 %v4063_v2  ;;  %1529 = vmatmul.bf16.vlgmr.msrb.gmra.mxu2 %v4063_v2 }
 0x392   :  { %1574 = vmatpush.bf16.msrb.mxu3 %v3536_v21  ;;  %1595 = vmatpush.bf16.msra.mxu0 %v3642_v22 }
 0x393   :  { %1608 = vmatpush.bf16.msra.mxu1 %v4915_v30  ;;  %1727 = vmatpush.bf16.msrb.mxu2 %v3462_v8 }
 0x394   :  { %v1466_v62 = vpop.f32.mrf.mxu2 }
 0x396   :  { %1575 = vmatpush.bf16.msrb.mxu3 %v4916_v20  ;;  %1596 = vmatpush.bf16.msra.mxu0 %v4917_v16 }
 0x397   :  { %1609 = vmatpush.bf16.msra.mxu1 %v4918_v59  ;;  %1728 = vmatpush.bf16.msrb.mxu2 %v3471_v17 }
 0x39a   :  { %1576 = vmatpush.bf16.msrb.mxu3 %v4919_v9  ;;  %1597 = vmatpush.bf16.msra.mxu0 %v4920_v7 }
 0x39b   :  { %1610 = vmatpush.bf16.msra.mxu1 %v4921_v40  ;;  %1729 = vmatpush.bf16.msrb.mxu2 %v3480_v26 }
 0x39e   :  { %1577 = vmatpush.bf16.msrb.mxu3 %v4922_v3  ;;  %1598 = vmatpush.bf16.msra.mxu0 %v3703_v12 }
 0x39f   :  { %1611 = vmatpush.bf16.msra.mxu1 %v3705_v60  ;;  %1730 = vmatpush.bf16.msrb.mxu2 %v3489_v35 }
 0x3a1   :  { %1516 = vmatmul.bf16.vlgmr.msrb.gmra.mxu1 %v4063_v2 }
 0x3a2   :  { %1578 = vmatpush.bf16.msrb.mxu3 %v4923_v13  ;;  %1599 = vmatpush.bf16.msra.mxu0 %v3713_v18 }
 0x3a3   :  { %1612 = vmatpush.bf16.msra.mxu1 %v4957_v44  ;;  %1731 = vmatpush.bf16.msrb.mxu2 %v5007_v14 }
 0x3a6   :  { %1579 = vmatpush.bf16.msrb.mxu3 %v5008_v51  ;;  %1600 = vmatpush.bf16.msra.mxu0 %v5009_v24 }
 0x3a7   :  { %1613 = vmatpush.bf16.msra.mxu1 %v5010_v50  ;;  %1732 = vmatpush.bf16.msrb.mxu2 %v5011_v23 }
 0x3aa   :  { %1580 = vmatpush.bf16.msrb.mxu3 %v5012_v41  ;;  %1601 = vmatpush.bf16.msra.mxu0 %v5013_v63 }
 0x3ab   :  { %1614 = vmatpush.bf16.msra.mxu1 %v5014_v10  ;;  %1733 = vmatpush.bf16.msrb.mxu2 %v5015_v58 }
 0x3ae   :  { %1581 = vmatpush.bf16.msrb.mxu3 %v5016_v29  ;;  %1602 = vmatpush.bf16.msra.mxu0 %v5017_v11 }
 0x3af   :  { %1615 = vmatpush.bf16.msra.mxu1 %v5018_v1  ;;  %1734 = vmatpush.bf16.msrb.mxu2 %v5019_v53  ;;  %v5028_v1 = vld [vmem:[#allocation25_spill] sm:$0xff] }
 0x3b3   :  { %1708 = vmatpush.bf16.msrb.mxu1 %v5020_v52 }
 0x3b7   :  { %1709 = vmatpush.bf16.msrb.mxu1 %v5021_v28 }
 0x3bb   :  { %1710 = vmatpush.bf16.msrb.mxu1 %v5022_v49  ;;  %v5029_v49 = vld [vmem:[#allocation54_spill] sm:$0xff] }
 0x3bf   :  { %1711 = vmatpush.bf16.msrb.mxu1 %v5023_v15 }
 0x3c3   :  { %1712 = vmatpush.bf16.msrb.mxu1 %v5024_v0 }
 0x3c7   :  { %1713 = vmatpush.bf16.msrb.mxu1 %v5025_v33 }
 0x3cb   :  { %1714 = vmatpush.bf16.msrb.mxu1 %v5026_v38 }
 0x3cf   :  { %1715 = vmatpush.bf16.msrb.mxu1 %v5027_v56 }
 0x40d   :  { %v1398_v62 = vpop.f32.mrf.mxu0 }
 0x40e   :  { %v1399_v11 = vadd.f32 %v1398_v62, %v5028_v1  ;;  %v1411_v53 = vpop.f32.mrf.mxu1 }
 0x410   :  { %v1435_v52 = vadd.f32 %v1399_v11, %v4050_v47 }
 0x412   :  { %v2966_v29 = vmul.f32 -1.442695, %v1435_v52 }
 0x413   :  { %v1385_v28 = vpop.f32.mrf.mxu3 }
 0x414   :  { %3191 = vpow2.f32 %v2966_v29  ;;  %v1386_v58 = vadd.f32 %v1385_v28, %v5029_v49  ;;  %v4113_v15 = vpop.f32.mrf.mxu2 }
 0x415   :  { %v1400_v0 = vpop.f32.mrf.mxu0 }
 0x416   :  { %v1415_v33 = vadd.f32 %v1386_v58, %v4048_v61  ;;  %v1413_v10 = vpop.f32.mrf.mxu1 }
 0x418   :  { %v2965_v38 = vmul.f32 -1.442695, %v1415_v33 }
 0x41a   :  { %v3192_v63 = vpop.eup %3191  ;;  %3193 = vpow2.f32 %v2965_v38 }
 0x41b   :  { %v1439_v56 = vadd.f32 1.0, %v3192_v63  ;;  %v1387_v41 = vpop.f32.mrf.mxu3 }
 0x41c   :  { %v1532_v62 = vpop.f32.mrf.mxu2 }
 0x41d   :  { %3195 = vrcp.f32 %v1439_v56  ;;  %v1465_v62 = vadd.f32 %v3872_v19, %v4059_v57  ;;  %vm1445_vm13 = vweird.f32 %v1439_v56 }
 0x41e   :  { %v4116_v1 = vpop.f32.mrf.mxu1 }
 0x420   :  { %v3194_v47 = vpop.eup %3193 }
 0x421   :  { %v1419_v11 = vadd.f32 1.0, %v3194_v47 }
 0x423   :  { %3197 = vrcp.f32 %v1419_v11  ;;  %v3196_v29 = vpop.eup %3195  ;;  %v1431_v10 = vand.u32 2147483648, %v1419_v11  ;;  %v1429_v33 = vand.u32 2147483647, %v1419_v11  ;;  %vm1425_vm9 = vweird.f32 %v1419_v11 }
 0x424   :  { %v1441_v28 = vmul.f32 %v3196_v29, %v1439_v56  ;;  %vm1446_vm12 = vweird.f32 %v3196_v29 }
 0x425   :  { %v1432_v38 = vor.u32 1.1754944e-38, %v1431_v10  ;;  %vm1430_vm11 = vcmp.eq.f32.partialorder %v1429_v33, 8.507059e+37  ;;  %vm1447_vm14 = vmor %vm1445_vm13, %vm1446_vm12 }
 0x426   :  { %v1519_v52 = vpop.f32.mrf.mxu1  ;;  %v1442_v23 = vsub.f32 1.0, %v1441_v28  ;;  %v1412_v28 = vadd.f32 %v1411_v53, %v3874_v6 }
 0x428   :  { %v1443_v63 = vmul.f32 %v3196_v29, %v1442_v23 }
 0x429   :  { %v3198_v49 = vpop.eup %3197 }
 0x42a   :  { %v1421_v0 = vmul.f32 %v3198_v49, %v1419_v11  ;;  %vm1426_vm8 = vweird.f32 %v3198_v49  ;;  %v1444_v50 = vadd.f32 %v3196_v29, %v1443_v63  ;;  %v5037_v63 = vld [vmem:[#allocation16_spill] sm:$0xff] }
 0x42b   :  { %vm1427_vm10 = vmor %vm1425_vm9, %vm1426_vm8 }
 0x42c   :  { %v1422_v61 = vsub.f32 1.0, %v1421_v0  ;;  %v1451_v0 = vand.u32 2147483648, %v1439_v56 }
 0x42e   :  { %v1423_v58 = vmul.f32 %v3198_v49, %v1422_v61  ;;  %v1449_v61 = vand.u32 2147483647, %v1439_v56  ;;  %v1452_v11 = vor.u32 1.1754944e-38, %v1451_v0  ;;  %v5035_v56 = vld [vmem:[#allocation13_spill] sm:$0xff]  ;;  %v5044_v0 = vld [vmem:[#allocation50_spill] sm:$0xff] }
 0x430   :  { %v1424_v41 = vadd.f32 %v3198_v49, %v1423_v58  ;;  %v1448_v58 = vsel %vm1447_vm14, %v3196_v29, %v1444_v50  ;;  %vm1450_vm15 = vcmp.eq.f32.partialorder %v1449_v61, 8.507059e+37  ;;  %v5033_v50 = vld [vmem:[#allocation10_spill] sm:$0xff]  ;;  %v5045_v61 = vld [vmem:[#allocation55_spill] sm:$0xff] }
 0x431   :  { %v1453_v10 = vsel %vm1450_vm15, %v1452_v11, %v1448_v58  ;;  %v5036_v29 = vld [vmem:[#allocation14_spill] sm:$0xff]  ;;  %v130_v11 = vpop.permute.xlu1 %129 }
 0x432   :  { %v1428_v47 = vsel %vm1427_vm10, %v3198_v49, %v1424_v41  ;;  %v1471_v51 = vsub.f32 1.0, %v1453_v10  ;;  %v1473_v49 = vmul.f32 %v1453_v10, %v4003_v31  ;;  %v5030_v31 = vld [vmem:[#allocation19_spill] sm:$0xff]  ;;  %v5038_v41 = vld [vmem:[#allocation18_spill] sm:$0xff] }
 0x433   :  { %v1433_v52 = vsel %vm1430_vm11, %v1432_v38, %v1428_v47  ;;  %v5039_v38 = vld [vmem:[#allocation21_spill] sm:$0xff]  ;;  %v5047_v58 = vld [vmem:[#allocation66_spill] sm:$0xff]  ;;  %v5048_v10 = vld [vmem:[#allocation67_spill] sm:$0xff] }
 0x434   :  { %v1468_v24 = vmul.f32 %v1465_v62, %v1433_v52  ;;  %v5040_v62 = vld [vmem:[#allocation24_spill] sm:$0xff]  ;;  %v5041_v47 = vld [vmem:[#allocation41_spill] sm:$0xff] }
 0x435   :  { %v5042_v52 = vld [vmem:[#allocation44_spill] sm:$0xff] }
 0x436   :  { %v1469_v23 = vadd.f32 %v1468_v24, %v1412_v28  ;;  %v5032_v24 = vld [vmem:[#allocation22_spill] sm:$0xff]  ;;  %v5043_v28 = vld [vmem:[#allocation47_spill] sm:$0xff] }
 0x438   :  { %3199 = vtanh.f32 %v1469_v23  ;;  %v5046_v23 = vld [vmem:[#allocation62_spill] sm:$0xff] }
 0x43e   :  { %v3200_v19 = vpop.eup %3199 }
 0x43f   :  { %v1472_v57 = vmul.f32 %v3200_v19, %v1471_v51  ;;  %v5031_v51 = vld [vmem:[#allocation51_spill] sm:$0xff]  ;;  %v5049_v19 = vld [vmem:[#allocation52_spill] sm:$0xff] }
 0x441   :  { %v4122_v33 = vadd.f32 %v1473_v49, %v1472_v57  ;;  %v171_v57 = vmul.f32 %v5049_v19, %v130_v11  ;;  %v224_v49 = vpop.permute.xlu2 %223 }
 0x443   :  { %v1475_v53 = vpack.c.bf16 %v4122_v33, %v4122_v33 }
 0x445   :  { %1484 = vmatmul.bf16.vlgmr.msra.gmra.mxu3 %v1475_v53  ;;  %1497 = vmatmul.bf16.vlgmr.msrb.gmra.mxu0 %v1475_v53 }
 0x446   :  { %1674 = vmatpush.bf16.msra.mxu3 %v4930_v27  ;;  %1695 = vmatpush.bf16.msrb.mxu0 %v3460_v4 }
 0x44a   :  { %1675 = vmatpush.bf16.msra.mxu3 %v4931_v45  ;;  %1696 = vmatpush.bf16.msrb.mxu0 %v4932_v48 }
 0x44e   :  { %1676 = vmatpush.bf16.msra.mxu3 %v4933_v46  ;;  %1697 = vmatpush.bf16.msrb.mxu0 %v3476_v25 }
 0x452   :  { %1677 = vmatpush.bf16.msra.mxu3 %v4934_v32  ;;  %1698 = vmatpush.bf16.msrb.mxu0 %v3485_v34 }
 0x455   :  { %1582 = vmatmul.bf16.vlgmr.msrb.gmra.mxu3 %v4063_v2  ;;  %v5034_v2 = vld [vmem:[#allocation12_spill] sm:$0xff] }
 0x456   :  { %1678 = vmatpush.bf16.msra.mxu3 %v4935_v5  ;;  %1699 = vmatpush.bf16.msrb.mxu0 %v3494_v43 }
 0x45a   :  { %1679 = vmatpush.bf16.msra.mxu3 %v4936_v36  ;;  %1700 = vmatpush.bf16.msrb.mxu0 %v3509_v54 }
 0x45e   :  { %1680 = vmatpush.bf16.msra.mxu3 %v4937_v55  ;;  %1701 = vmatpush.bf16.msrb.mxu0 %v5030_v31 }
 0x462   :  { %1681 = vmatpush.bf16.msra.mxu3 %v5031_v51  ;;  %1702 = vmatpush.bf16.msrb.mxu0 %v5032_v24 }
 0x465   :  { %1682 = vmatmul.bf16.vlgmr.msra.gmra.mxu3 %v1475_v53  ;;  %v5050_v53 = vld [vmem:[#allocation57_spill] sm:$0xff] }
 0x466   :  { %1740 = vmatpush.bf16.msrb.mxu3 %v5033_v50 }
 0x46a   :  { %1741 = vmatpush.bf16.msrb.mxu3 %v5034_v2 }
 0x46e   :  { %1742 = vmatpush.bf16.msrb.mxu3 %v5035_v56 }
 0x472   :  { %1743 = vmatpush.bf16.msrb.mxu3 %v5036_v29 }
 0x476   :  { %1744 = vmatpush.bf16.msrb.mxu3 %v5037_v63 }
 0x47a   :  { %1745 = vmatpush.bf16.msrb.mxu3 %v5038_v41 }
 0x47e   :  { %1746 = vmatpush.bf16.msrb.mxu3 %v5039_v38  ;;  %v5052_v38 = vld [vmem:[#allocation53_spill] sm:$0xff] }
 0x482   :  { %1747 = vmatpush.bf16.msrb.mxu3 %v5040_v62  ;;  %v5051_v62 = vld [vmem:[#allocation60_spill] sm:$0xff] }
 0x486   :  { %1840 = vmatpush.bf16.msra.mxu3 %v5041_v47  ;;  %v260_v47 = vmul.f32 %v5050_v53, %v224_v49 }
 0x48a   :  { %1841 = vmatpush.bf16.msra.mxu3 %v5042_v52  ;;  %v195_v52 = vadd.f32 %v171_v57, %v5051_v62 }
 0x48c   :  { %v284_v41 = vadd.f32 %v260_v47, %v195_v52 }
 0x48e   :  { %1842 = vmatpush.bf16.msra.mxu3 %v5043_v28  ;;  %v172_v28 = vmul.f32 %v5052_v38, %v130_v11 }
 0x492   :  { %1843 = vmatpush.bf16.msra.mxu3 %v5044_v0  ;;  %v1534_v0 = vadd.f32 %v4116_v1, %v284_v41 }
 0x496   :  { %1844 = vmatpush.bf16.msra.mxu3 %v5045_v61  ;;  %v5053_v61 = vld [vmem:[#allocation58_spill] sm:$0xff] }
 0x497   :  { %v261_v63 = vmul.f32 %v5053_v61, %v224_v49 }
 0x49a   :  { %1845 = vmatpush.bf16.msra.mxu3 %v5046_v23  ;;  %v5054_v23 = vld [vmem:[#allocation61_spill] sm:$0xff] }
 0x49b   :  { %v196_v29 = vadd.f32 %v172_v28, %v5054_v23 }
 0x49d   :  { %v285_v56 = vadd.f32 %v261_v63, %v196_v29 }
 0x49e   :  { %1846 = vmatpush.bf16.msra.mxu3 %v5047_v58  ;;  %v2967_v58 = vmul.f32 -1.442695, %v1534_v0 }
 0x4a0   :  { %3201 = vpow2.f32 %v2967_v58  ;;  %v5055_v58 = vld [vmem:[#allocation75_spill] sm:$0xff] }
 0x4a2   :  { %1847 = vmatpush.bf16.msra.mxu3 %v5048_v10  ;;  %v1554_v10 = vadd.f32 %v4113_v15, %v285_v56 }
 0x4a4   :  { %v2968_v19 = vmul.f32 -1.442695, %v1554_v10  ;;  %v173_v10 = vmul.f32 %v5055_v58, %v130_v11  ;;  %v4183_v11 = vld [vmem:[%s4687_s4] ss:$0 sm:$0xff] }
 0x4a6   :  { %v3202_v2 = vpop.eup %3201  ;;  %3203 = vpow2.f32 %v2968_v19 }
 0x4a7   :  { %v1538_v53 = vadd.f32 1.0, %v3202_v2  ;;  %v4174_v2 = vld [vmem:[%s4683_s0 + $0x10] sm:$0xff]  }
 0x4a9   :  { %3205 = vrcp.f32 %v1538_v53  ;;  %vm1544_vm1 = vweird.f32 %v1538_v53 }
 0x4ac   :  { %v3204_v50 = vpop.eup %3203 }
 0x4ad   :  { %v1558_v57 = vadd.f32 1.0, %v3204_v50  ;;  %v3109_v50 = vunpack.c.l.bf16 %v4174_v2 }
 0x4af   :  { %v3206_v47 = vpop.eup %3205  ;;  %3207 = vrcp.f32 %v1558_v57  ;;  %134 = vperm.xlu0 %3132, %v3109_v50   ;;  %227 = vperm.xlu1 %3133, %v3109_v50   ;;  %vm1564_vm5 = vweird.f32 %v1558_v57 }
 0x4b0   :  { %v1540_v1 = vmul.f32 %v3206_v47, %v1538_v53  ;;  %vm1545_vm0 = vweird.f32 %v3206_v47 }
 0x4b1   :  { %vm1546_vm2 = vmor %vm1544_vm1, %vm1545_vm0 }
 0x4b2   :  { %v1541_v29 = vsub.f32 1.0, %v1540_v1  ;;  %v1548_v1 = vand.u32 2147483647, %v1538_v53 }
 0x4b4   :  { %v1542_v15 = vmul.f32 %v3206_v47, %v1541_v29  ;;  %v197_v29 = vadd.f32 %v173_v10, %v3760_v42  ;;  %vm1549_vm3 = vcmp.eq.f32.partialorder %v1548_v1, 8.507059e+37  ;;  %v5056_v10 = vmov 1  }
 0x4b5   :  { %v3208_v28 = vpop.eup %3207 }
 0x4b6   :  { %v1560_v63 = vmul.f32 %v3208_v28, %v1558_v57  ;;  %v1543_v19 = vadd.f32 %v3206_v47, %v1542_v15  ;;  %vm1565_vm4 = vweird.f32 %v3208_v28 }
 0x4b7   :  { %3135 = vset.pattern.permute.xlu0 %v5056_v10  ;;  %vm1566_vm6 = vmor %vm1564_vm5, %vm1565_vm4  ;;  %v5076_v10 = vld [vmem:[#allocation49_spill] sm:$0xff] }
 0x4b8   :  { %v1561_v0 = vsub.f32 1.0, %v1560_v63  ;;  %v1547_v61 = vsel %vm1546_vm2, %v3206_v47, %v1543_v19 }
 0x4ba   :  { %v1562_v23 = vmul.f32 %v3208_v28, %v1561_v0  ;;  %v1570_v0 = vand.u32 2147483648, %v1558_v57 }
 0x4bc   :  { %v1563_v15 = vadd.f32 %v3208_v28, %v1562_v23 }
 0x4be   :  { %v1567_v19 = vsel %vm1566_vm6, %v3208_v28, %v1563_v15  ;;  %v5059_v28 = vld [vmem:[#allocation70_spill] sm:$0xff]  ;;  %v5063_v15 = vld [vmem:[#allocation72_spill] sm:$0xff] }
 0x4c2   :  { %v4167_v38 = vpop.f32.mrf.mxu0 }
 0x4c8   :  { %v4169_v41 = vpop.f32.mrf.mxu3 }
 0x4ca   :  { %v1500_v52 = vpop.f32.mrf.mxu0 }
 0x4cb   :  { %v1550_v52 = vand.u32 2147483648, %v1538_v53 }
 0x4cd   :  { %v1551_v62 = vor.u32 1.1754944e-38, %v1550_v52  ;;  %v1571_v52 = vor.u32 1.1754944e-38, %v1570_v0  ;;  %v5066_v0 = vld [vmem:[#allocation73_spill] sm:$0xff] }
 0x4cf   :  { %v1552_v53 = vsel %vm1549_vm3, %v1551_v62, %v1547_v61 }
 0x4d0   :  { %v1487_v56 = vpop.f32.mrf.mxu3 }
 0x4d1   :  { %v262_v56 = vmul.f32 %v3767_v37, %v224_v49  ;;  %v1568_v49 = vand.u32 2147483647, %v1558_v57 }
 0x4d3   :  { %v286_v50 = vadd.f32 %v262_v56, %v197_v29  ;;  %vm1569_vm7 = vcmp.eq.f32.partialorder %v1568_v49, 8.507059e+37  ;;  %v5061_v56 = vld [vmem:[#allocation30_spill] sm:$0xff] }
 0x4d4   :  { %v1572_v37 = vsel %vm1569_vm7, %v1571_v52, %v1567_v19  ;;  %v5067_v49 = vld [vmem:[#allocation74_spill] sm:$0xff]  ;;  %v5069_v19 = vld [vmem:[#allocation32_spill] sm:$0xff] }
 0x4d5   :  { %v1590_v42 = vsub.f32 1.0, %v1572_v37  ;;  %v1592_v62 = vmul.f32 %v1572_v37, %v4057_v39  ;;  %v5057_v37 = vld [vmem:[#allocation29_spill] sm:$0xff]  ;;  %v5070_v52 = vld [vmem:[#allocation34_spill] sm:$0xff] }
 0x4d6   :  { %v5058_v39 = vld [vmem:[#allocation69_spill] sm:$0xff] }
 0x4d8   :  { %v1583_v24 = vpop.f32.mrf.mxu3 }
 0x4d9   :  { %v1584_v63 = vadd.f32 %v4183_v11, %v1583_v24 }
 0x4db   :  { %v1587_v58 = vmul.f32 %v1584_v63, %v1552_v53  ;;  %v5062_v63 = vld [vmem:[#allocation71_spill] sm:$0xff]  ;;  %v5064_v53 = vld [vmem:[#allocation20_spill] sm:$0xff] }
 0x4dd   :  { %v1588_v47 = vadd.f32 %v1587_v58, %v286_v50  ;;  %v5060_v58 = vld [vmem:[#allocation17_spill] sm:$0xff]  ;;  %v5065_v50 = vld [vmem:[#allocation31_spill] sm:$0xff] }
 0x4df   :  { %3209 = vtanh.f32 %v1588_v47  ;;  %v5068_v47 = vld [vmem:[#allocation23_spill] sm:$0xff] }
 0x4e0   :  { %v1585_v1 = vpop.f32.mrf.mxu3 }
 0x4e1   :  { %v5071_v1 = vld [vmem:[#allocation36_spill] sm:$0xff] }
 0x4e5   :  { %v3210_v24 = vpop.eup %3209 }
 0x4e6   :  { %v1591_v23 = vmul.f32 %v3210_v24, %v1590_v42  ;;  %v5072_v24 = vld [vmem:[#allocation38_spill] sm:$0xff] }
 0x4e8   :  { %v4188_v61 = vadd.f32 %v1592_v62, %v1591_v23  ;;  %v4190_v29 = vpop.f32.mrf.mxu3  ;;  %v5073_v23 = vld [vmem:[#allocation40_spill] sm:$0xff]  ;;  %v5074_v62 = vld [vmem:[#allocation43_spill] sm:$0xff] }
 0x4ea   :  { %v4194_v57 = vpack.c.bf16 %v4188_v61, %v4188_v61 }
 0x4ec   :  { %1603 = vmatmul.bf16.vlgmr.msra.gmra.mxu0 %v4194_v57  ;;  %1616 = vmatmul.bf16.vlgmr.msra.gmra.mxu1 %v4194_v57 }
 0x4ed   :  { %1629 = vmatmul.bf16.vlgmr.msra.gmra.mxu2 %v4194_v57  ;;  %1748 = vmatmul.bf16.vlgmr.msrb.gmra.mxu3 %v4194_v57 }
 0x4ee   :  { %1793 = vmatpush.bf16.msra.mxu0 %v3536_v21  ;;  %1814 = vmatpush.bf16.msra.mxu1 %v3642_v22 }
 0x4ef   :  { %1827 = vmatpush.bf16.msra.mxu2 %v4915_v30  ;;  %1946 = vmatpush.bf16.msrb.mxu3 %v3462_v8 }
 0x4f0   :  { %v1685_v42 = vpop.f32.mrf.mxu3 }
 0x4f1   :  { %v5075_v42 = vld [vmem:[#allocation46_spill] sm:$0xff] }
 0x4f2   :  { %1794 = vmatpush.bf16.msra.mxu0 %v4916_v20  ;;  %1815 = vmatpush.bf16.msra.mxu1 %v4917_v16 }
 0x4f3   :  { %1828 = vmatpush.bf16.msra.mxu2 %v4918_v59  ;;  %1947 = vmatpush.bf16.msrb.mxu3 %v3471_v17 }
 0x4f6   :  { %1795 = vmatpush.bf16.msra.mxu0 %v4919_v9  ;;  %1816 = vmatpush.bf16.msra.mxu1 %v4920_v7 }
 0x4f7   :  { %1829 = vmatpush.bf16.msra.mxu2 %v4921_v40  ;;  %1948 = vmatpush.bf16.msrb.mxu3 %v3480_v26 }
 0x4fa   :  { %1796 = vmatpush.bf16.msra.mxu0 %v4922_v3  ;;  %1817 = vmatpush.bf16.msra.mxu1 %v3703_v12 }
 0x4fb   :  { %1830 = vmatpush.bf16.msra.mxu2 %v3705_v60  ;;  %1949 = vmatpush.bf16.msrb.mxu3 %v3489_v35 }
 0x4fd   :  { %1735 = vmatmul.bf16.vlgmr.msrb.gmra.mxu2 %v4194_v57 }
 0x4fe   :  { %1797 = vmatpush.bf16.msra.mxu0 %v4923_v13  ;;  %1818 = vmatpush.bf16.msra.mxu1 %v3713_v18 }
 0x4ff   :  { %1831 = vmatpush.bf16.msra.mxu2 %v4957_v44  ;;  %1950 = vmatpush.bf16.msrb.mxu3 %v5007_v14 }
 0x502   :  { %1798 = vmatpush.bf16.msra.mxu0 %v5057_v37  ;;  %1819 = vmatpush.bf16.msra.mxu1 %v5058_v39 }
 0x503   :  { %1832 = vmatpush.bf16.msra.mxu2 %v5059_v28  ;;  %1951 = vmatpush.bf16.msrb.mxu3 %v5060_v58 }
 0x506   :  { %1799 = vmatpush.bf16.msra.mxu0 %v5061_v56  ;;  %1820 = vmatpush.bf16.msra.mxu1 %v5062_v63 }
 0x507   :  { %1833 = vmatpush.bf16.msra.mxu2 %v5063_v15  ;;  %1952 = vmatpush.bf16.msrb.mxu3 %v5064_v53  ;;  %v5078_v53 = vld [vmem:[#allocation25_spill] sm:$0xff] }
 0x50a   :  { %1800 = vmatpush.bf16.msra.mxu0 %v5065_v50  ;;  %1821 = vmatpush.bf16.msra.mxu1 %v5066_v0  ;;  %v5077_v50 = vld [vmem:[#allocation54_spill] sm:$0xff] }
 0x50b   :  { %1834 = vmatpush.bf16.msra.mxu2 %v5067_v49  ;;  %1953 = vmatpush.bf16.msrb.mxu3 %v5068_v47 }
 0x50f   :  { %1927 = vmatpush.bf16.msrb.mxu2 %v5069_v19 }
 0x513   :  { %1928 = vmatpush.bf16.msrb.mxu2 %v5070_v52 }
 0x517   :  { %1929 = vmatpush.bf16.msrb.mxu2 %v5071_v1 }
 0x51b   :  { %1930 = vmatpush.bf16.msrb.mxu2 %v5072_v24 }
 0x51f   :  { %1931 = vmatpush.bf16.msrb.mxu2 %v5073_v23 }
 0x523   :  { %1932 = vmatpush.bf16.msrb.mxu2 %v5074_v62 }
 0x527   :  { %1933 = vmatpush.bf16.msrb.mxu2 %v5075_v42 }
 0x52b   :  { %1934 = vmatpush.bf16.msrb.mxu2 %v5076_v10  ;;  %v3110_v10 = vunpack.c.h.bf16 %v4174_v2 }
 0x52d   :  { %231 = vperm.xlu1 %3133, %v3110_v10   ;;  %139 = vperm.xlu2 %3134, %v3110_v10  }
 0x569   :  { %v1604_v0 = vpop.f32.mrf.mxu0  ;;  %v1617_v49 = vpop.f32.mrf.mxu1 }
 0x56a   :  { %v1605_v47 = vadd.f32 %v1604_v0, %v5077_v50  ;;  %v1618_v19 = vadd.f32 %v1617_v49, %v5078_v53 }
 0x56c   :  { %v1634_v52 = vadd.f32 %v1605_v47, %v4169_v41  ;;  %v1654_v1 = vadd.f32 %v1618_v19, %v4167_v38 }
 0x56e   :  { %v2969_v15 = vmul.f32 -1.442695, %v1634_v52  ;;  %v2970_v24 = vmul.f32 -1.442695, %v1654_v1 }
 0x570   :  { %3211 = vpow2.f32 %v2969_v15  ;;  %v1630_v23 = vpop.f32.mrf.mxu2  ;;  %v4245_v63 = vpop.f32.mrf.mxu3  ;;  %v5079_v15 = vmov 0  }
 0x571   :  { %3213 = vpow2.f32 %v2970_v24  ;;  %v1606_v42 = vpop.f32.mrf.mxu0  ;;  %v1619_v62 = vpop.f32.mrf.mxu1  ;;  %3136 = vset.pattern.permute.xlu1 %v5079_v15 }
 0x576   :  { %v3212_v56 = vpop.eup %3211 }
 0x577   :  { %v3214_v58 = vpop.eup %3213  ;;  %v1638_v0 = vadd.f32 1.0, %v3212_v56 }
 0x578   :  { %v1658_v49 = vadd.f32 1.0, %v3214_v58  ;;  %v1632_v41 = vpop.f32.mrf.mxu2  ;;  %v1751_v47 = vpop.f32.mrf.mxu3 }
 0x579   :  { %3215 = vrcp.f32 %v1638_v0  ;;  %v1650_v42 = vand.u32 2147483648, %v1638_v0  ;;  %v1648_v56 = vand.u32 2147483647, %v1638_v0  ;;  %vm1644_vm9 = vweird.f32 %v1638_v0  ;;  %v4254_v47 = vld [vmem:[%s4691_s8] ss:$0 sm:$0xff] }
 0x57a   :  { %3217 = vrcp.f32 %v1658_v49  ;;  %v1684_v15 = vadd.f32 %v4254_v47, %v4190_v29  ;;  %v1670_v28 = vand.u32 2147483648, %v1658_v49  ;;  %vm1664_vm13 = vweird.f32 %v1658_v49 }
 0x57b   :  { %v1651_v41 = vor.u32 1.1754944e-38, %v1650_v42  ;;  %vm1649_vm11 = vcmp.eq.f32.partialorder %v1648_v56, 8.507059e+37 }
 0x57c   :  { %v1671_v37 = vor.u32 1.1754944e-38, %v1670_v28  ;;  %v5085_v28 = vld [vmem:[#allocation16_spill] sm:$0xff] }
 0x57f   :  { %v3216_v38 = vpop.eup %3215 }
 0x580   :  { %v3218_v19 = vpop.eup %3217  ;;  %v1640_v52 = vmul.f32 %v3216_v38, %v1638_v0  ;;  %v4249_v1 = vpop.f32.mrf.mxu2  ;;  %vm1645_vm8 = vweird.f32 %v3216_v38 }
 0x581   :  { %v1660_v24 = vmul.f32 %v3218_v19, %v1658_v49  ;;  %vm1646_vm10 = vmor %vm1644_vm9, %vm1645_vm8  ;;  %vm1665_vm12 = vweird.f32 %v3218_v19 }
 0x582   :  { %v1641_v62 = vsub.f32 1.0, %v1640_v52  ;;  %vm1666_vm14 = vmor %vm1664_vm13, %vm1665_vm12 }
 0x583   :  { %v1661_v2 = vsub.f32 1.0, %v1660_v24 }
 0x584   :  { %v1642_v53 = vmul.f32 %v3216_v38, %v1641_v62 }
 0x585   :  { %v1662_v10 = vmul.f32 %v3218_v19, %v1661_v2  ;;  %v1668_v2 = vand.u32 2147483647, %v1658_v49  ;;  %v5086_v49 = vld [vmem:[#allocation18_spill] sm:$0xff] }
 0x586   :  { %v1643_v58 = vadd.f32 %v3216_v38, %v1642_v53  ;;  %v1631_v53 = vadd.f32 %v1630_v23, %v3874_v6 }
 0x587   :  { %v1663_v62 = vadd.f32 %v3218_v19, %v1662_v10  ;;  %vm1669_vm15 = vcmp.eq.f32.partialorder %v1668_v2, 8.507059e+37  ;;  %v5095_v2 = vld [vmem:[#allocation52_spill] sm:$0xff] }
 0x588   :  { %v1647_v50 = vsel %vm1646_vm10, %v3216_v38, %v1643_v58  ;;  %v1738_v52 = vpop.f32.mrf.mxu2  ;;  %v5088_v58 = vld [vmem:[#allocation24_spill] sm:$0xff] }
 0x589   :  { %v1652_v24 = vsel %vm1649_vm11, %v1651_v41, %v1647_v50  ;;  %v1667_v39 = vsel %vm1666_vm14, %v3218_v19, %v1663_v62  ;;  %v5087_v19 = vld [vmem:[#allocation21_spill] sm:$0xff]  ;;  %v5091_v52 = vld [vmem:[#allocation47_spill] sm:$0xff] }
 0x58a   :  { %v1687_v0 = vmul.f32 %v1684_v15, %v1652_v24  ;;  %v1672_v14 = vsel %vm1669_vm15, %v1671_v37, %v1667_v39  ;;  %v5083_v37 = vld [vmem:[#allocation13_spill] sm:$0xff]  ;;  %v5084_v39 = vld [vmem:[#allocation14_spill] sm:$0xff]  ;;  %v5090_v15 = vld [vmem:[#allocation44_spill] sm:$0xff] }
 0x58b   :  { %v1690_v29 = vsub.f32 1.0, %v1672_v14  ;;  %v1692_v50 = vmul.f32 %v1672_v14, %v4122_v33  ;;  %v5080_v14 = vld [vmem:[#allocation22_spill] sm:$0xff]  ;;  %v5089_v41 = vld [vmem:[#allocation41_spill] sm:$0xff]  ;;  %v5093_v62 = vld [vmem:[#allocation55_spill] sm:$0xff] }
 0x58c   :  { %v1688_v42 = vadd.f32 %v1687_v0, %v1631_v53  ;;  %v5081_v33 = vld [vmem:[#allocation10_spill] sm:$0xff]  ;;  %v135_v0 = vpop.permute.xlu0 %134 }
 0x58d   :  { %v5092_v24 = vld [vmem:[#allocation50_spill] sm:$0xff] }
 0x58e   :  { %3219 = vtanh.f32 %v1688_v42  ;;  %v5094_v53 = vld [vmem:[#allocation62_spill] sm:$0xff]  ;;  %v174_v42 = vmul.f32 %v5095_v2, %v135_v0 }
 0x594   :  { %v3220_v38 = vpop.eup %3219 }
 0x595   :  { %v1691_v56 = vmul.f32 %v3220_v38, %v1690_v29  ;;  %v5096_v29 = vld [vmem:[#allocation66_spill] sm:$0xff]  ;;  %v228_v38 = vpop.permute.xlu1 %227 }
 0x597   :  { %v4260_v10 = vadd.f32 %v1692_v50, %v1691_v56  ;;  %v5097_v56 = vld [vmem:[#allocation57_spill] sm:$0xff] }
 0x598   :  { %v263_v50 = vmul.f32 %v5097_v56, %v228_v38 }
 0x599   :  { %v1694_v23 = vpack.c.bf16 %v4260_v10, %v4260_v10 }
 0x59b   :  { %1703 = vmatmul.bf16.vlgmr.msrb.gmra.mxu0 %v1694_v23  ;;  %1716 = vmatmul.bf16.vlgmr.msrb.gmra.mxu1 %v1694_v23 }
 0x59c   :  { %1893 = vmatpush.bf16.msrb.mxu0 %v4930_v27  ;;  %1914 = vmatpush.bf16.msrb.mxu1 %v3460_v4 }
 0x5a0   :  { %1894 = vmatpush.bf16.msrb.mxu0 %v4931_v45  ;;  %1915 = vmatpush.bf16.msrb.mxu1 %v4932_v48 }
 0x5a4   :  { %1895 = vmatpush.bf16.msrb.mxu0 %v4933_v46  ;;  %1916 = vmatpush.bf16.msrb.mxu1 %v3476_v25 }
 0x5a8   :  { %1896 = vmatpush.bf16.msrb.mxu0 %v4934_v32  ;;  %1917 = vmatpush.bf16.msrb.mxu1 %v3485_v34 }
 0x5ab   :  { %1801 = vmatmul.bf16.vlgmr.msra.gmra.mxu0 %v4194_v57  ;;  %v5082_v57 = vld [vmem:[#allocation12_spill] sm:$0xff] }
 0x5ac   :  { %1897 = vmatpush.bf16.msrb.mxu0 %v4935_v5  ;;  %1918 = vmatpush.bf16.msrb.mxu1 %v3494_v43 }
 0x5b0   :  { %1898 = vmatpush.bf16.msrb.mxu0 %v4936_v36  ;;  %1919 = vmatpush.bf16.msrb.mxu1 %v3509_v54 }
 0x5b4   :  { %1899 = vmatpush.bf16.msrb.mxu0 %v4937_v55  ;;  %1920 = vmatpush.bf16.msrb.mxu1 %v5030_v31 }
 0x5b8   :  { %1900 = vmatpush.bf16.msrb.mxu0 %v5031_v51  ;;  %1921 = vmatpush.bf16.msrb.mxu1 %v5080_v14 }
 0x5bb   :  { %1901 = vmatmul.bf16.vlgmr.msrb.gmra.mxu0 %v1694_v23  ;;  %v5098_v23 = vld [vmem:[#allocation60_spill] sm:$0xff] }
 0x5bc   :  { %1959 = vmatpush.bf16.msra.mxu0 %v5081_v33  ;;  %v5105_v33 = vld [vmem:[#allocation77_spill] sm:$0xff] }
 0x5bd   :  { %v265_v14 = vmul.f32 %v5105_v33, %v228_v38 }
 0x5c0   :  { %1960 = vmatpush.bf16.msra.mxu0 %v5082_v57 }
 0x5c4   :  { %1961 = vmatpush.bf16.msra.mxu0 %v5083_v37 }
 0x5c8   :  { %1962 = vmatpush.bf16.msra.mxu0 %v5084_v39 }
 0x5cc   :  { %1963 = vmatpush.bf16.msra.mxu0 %v5085_v28 }
 0x5d0   :  { %1964 = vmatpush.bf16.msra.mxu0 %v5086_v49 }
 0x5d4   :  { %1965 = vmatpush.bf16.msra.mxu0 %v5087_v19 }
 0x5d8   :  { %1966 = vmatpush.bf16.msra.mxu0 %v5088_v58  ;;  %v5099_v58 = vld [vmem:[#allocation67_spill] sm:$0xff] }
 0x5dc   :  { %2059 = vmatpush.bf16.msrb.mxu0 %v5089_v41  ;;  %v198_v41 = vadd.f32 %v174_v42, %v5098_v23 }
 0x5de   :  { %v287_v19 = vadd.f32 %v263_v50, %v198_v41 }
 0x5e0   :  { %2060 = vmatpush.bf16.msrb.mxu0 %v5090_v15  ;;  %v5100_v15 = vld [vmem:[#allocation53_spill] sm:$0xff] }
 0x5e4   :  { %2061 = vmatpush.bf16.msrb.mxu0 %v5091_v52  ;;  %v175_v52 = vmul.f32 %v5100_v15, %v135_v0 }
 0x5e8   :  { %2062 = vmatpush.bf16.msrb.mxu0 %v5092_v24  ;;  %v5101_v24 = vld [vmem:[#allocation58_spill] sm:$0xff] }
 0x5e9   :  { %v264_v49 = vmul.f32 %v5101_v24, %v228_v38  ;;  %v5104_v24 = vld [vmem:[#allocation76_spill] sm:$0xff] }
 0x5ec   :  { %2063 = vmatpush.bf16.msrb.mxu0 %v5093_v62  ;;  %v5102_v62 = vld [vmem:[#allocation61_spill] sm:$0xff] }
 0x5ed   :  { %v199_v28 = vadd.f32 %v175_v52, %v5102_v62 }
 0x5ef   :  { %v288_v39 = vadd.f32 %v264_v49, %v199_v28 }
 0x5f0   :  { %2064 = vmatpush.bf16.msrb.mxu0 %v5094_v53  ;;  %v1753_v53 = vadd.f32 %v4249_v1, %v287_v19 }
 0x5f2   :  { %v2971_v2 = vmul.f32 -1.442695, %v1753_v53 }
 0x5f4   :  { %2065 = vmatpush.bf16.msrb.mxu0 %v5096_v29  ;;  %v1773_v29 = vadd.f32 %v4245_v63, %v288_v39  ;;  %3221 = vpow2.f32 %v2971_v2  ;;  %v5103_v2 = vld [vmem:[#allocation75_spill] sm:$0xff] }
 0x5f6   :  { %v2972_v37 = vmul.f32 -1.442695, %v1773_v29 }
 0x5f8   :  { %2066 = vmatpush.bf16.msrb.mxu0 %v5099_v58  ;;  %3223 = vpow2.f32 %v2972_v37  ;;  %v176_v37 = vmul.f32 %v5103_v2, %v135_v0 }
 0x5fa   :  { %v3222_v56 = vpop.eup %3221  ;;  %v200_v57 = vadd.f32 %v176_v37, %v5104_v24 }
 0x5fb   :  { %v1757_v42 = vadd.f32 1.0, %v3222_v56 }
 0x5fd   :  { %3225 = vrcp.f32 %v1757_v42  ;;  %v1769_v56 = vand.u32 2147483648, %v1757_v42  ;;  %vm1763_vm1 = vweird.f32 %v1757_v42 }
 0x5fe   :  { %v3224_v23 = vpop.eup %3223 }
 0x5ff   :  { %v1777_v58 = vadd.f32 1.0, %v3224_v23  ;;  %v1767_v23 = vand.u32 2147483647, %v1757_v42 }
 0x601   :  { %3227 = vrcp.f32 %v1777_v58  ;;  %vm1768_vm3 = vcmp.eq.f32.partialorder %v1767_v23, 8.507059e+37  ;;  %vm1783_vm5 = vweird.f32 %v1777_v58 }
 0x603   :  { %v3226_v15 = vpop.eup %3225 }
 0x604   :  { %v1759_v41 = vmul.f32 %v3226_v15, %v1757_v42  ;;  %vm1764_vm0 = vweird.f32 %v3226_v15  ;;  %v1787_v42 = vand.u32 2147483647, %v1777_v58 }
 0x605   :  { %vm1765_vm2 = vmor %vm1763_vm1, %vm1764_vm0 }
 0x606   :  { %v1760_v28 = vsub.f32 1.0, %v1759_v41  ;;  %v1770_v41 = vor.u32 1.1754944e-38, %v1769_v56  ;;  %vm1788_vm7 = vcmp.eq.f32.partialorder %v1787_v42, 8.507059e+37  ;;  %v5117_v42 = vld [vmem:[#allocation74_spill] sm:$0xff] }
 0x607   :  { %v3228_v1 = vpop.eup %3227 }
 0x608   :  { %v1779_v49 = vmul.f32 %v3228_v1, %v1777_v58  ;;  %v1761_v19 = vmul.f32 %v3226_v15, %v1760_v28  ;;  %vm1784_vm4 = vweird.f32 %v3228_v1 }
 0x609   :  { %vm1785_vm6 = vmor %vm1783_vm5, %vm1784_vm4 }
 0x60a   :  { %v1780_v53 = vsub.f32 1.0, %v1779_v49  ;;  %v1762_v29 = vadd.f32 %v3226_v15, %v1761_v19  ;;  %v289_v19 = vadd.f32 %v265_v14, %v200_v57  ;;  %v5106_v57 = vld [vmem:[#allocation15_spill] sm:$0xff] }
 0x60c   :  { %v1781_v62 = vmul.f32 %v3228_v1, %v1780_v53  ;;  %v1766_v51 = vsel %vm1765_vm2, %v3226_v15, %v1762_v29 }
 0x60d   :  { %v1771_v0 = vsel %vm1768_vm3, %v1770_v41, %v1766_v51  ;;  %v5110_v41 = vld [vmem:[#allocation17_spill] sm:$0xff] }
 0x60e   :  { %v1782_v49 = vadd.f32 %v3228_v1, %v1781_v62 }
 0x610   :  { %v1786_v2 = vsel %vm1785_vm6, %v3228_v1, %v1782_v49  ;;  %v5108_v1 = vld [vmem:[#allocation69_spill] sm:$0xff]  ;;  %v5112_v49 = vld [vmem:[#allocation71_spill] sm:$0xff] }
 0x618   :  { %v4305_v50 = vpop.f32.mrf.mxu0  ;;  %v4307_v52 = vpop.f32.mrf.mxu1 }
 0x620   :  { %v1706_v63 = vpop.f32.mrf.mxu0  ;;  %v1719_v39 = vpop.f32.mrf.mxu1 }
 0x621   :  { %v1789_v63 = vand.u32 2147483648, %v1777_v58  ;;  %v5107_v58 = vld [vmem:[#allocation29_spill] sm:$0xff] }
 0x623   :  { %v1790_v37 = vor.u32 1.1754944e-38, %v1789_v63  ;;  %v5115_v63 = vld [vmem:[#allocation31_spill] sm:$0xff] }
 0x625   :  { %v1791_v38 = vsel %vm1788_vm7, %v1790_v37, %v1786_v2  ;;  %v5109_v2 = vld [vmem:[#allocation70_spill] sm:$0xff]  ;;  %v5119_v37 = vld [vmem:[#allocation32_spill] sm:$0xff] }
 0x626   :  { %v1809_v29 = vsub.f32 1.0, %v1791_v38 }
 0x628   :  { %v1802_v31 = vpop.f32.mrf.mxu0 }
 0x629   :  { %v1803_v28 = vadd.f32 %v4183_v11, %v1802_v31  ;;  %v1811_v31 = vmul.f32 %v1791_v38, %v4188_v61  ;;  %v5121_v38 = vld [vmem:[#allocation36_spill] sm:$0xff] }
 0x62b   :  { %v1806_v39 = vmul.f32 %v1803_v28, %v1771_v0  ;;  %v5111_v28 = vld [vmem:[#allocation30_spill] sm:$0xff]  ;;  %v5113_v0 = vld [vmem:[#allocation72_spill] sm:$0xff] }
 0x62d   :  { %v1807_v53 = vadd.f32 %v1806_v39, %v289_v19  ;;  %v5114_v19 = vld [vmem:[#allocation20_spill] sm:$0xff]  ;;  %v5116_v39 = vld [vmem:[#allocation73_spill] sm:$0xff] }
 0x62f   :  { %3229 = vtanh.f32 %v1807_v53  ;;  %v5118_v53 = vld [vmem:[#allocation23_spill] sm:$0xff] }
 0x630   :  { %v1804_v15 = vpop.f32.mrf.mxu0 }
 0x631   :  { %v5120_v15 = vld [vmem:[#allocation34_spill] sm:$0xff] }
 0x635   :  { %v3230_v56 = vpop.eup %3229 }
 0x636   :  { %v1810_v23 = vmul.f32 %v3230_v56, %v1809_v29  ;;  %v5122_v29 = vld [vmem:[#allocation38_spill] sm:$0xff]  ;;  %v5123_v56 = vld [vmem:[#allocation40_spill] sm:$0xff] }
 0x638   :  { %v4314_v62 = vadd.f32 %v1811_v31, %v1810_v23  ;;  %v4316_v51 = vpop.f32.mrf.mxu0  ;;  %v5124_v23 = vld [vmem:[#allocation43_spill] sm:$0xff]  ;;  %v5125_v31 = vld [vmem:[#allocation46_spill] sm:$0xff] }
 0x63a   :  { %v4320_v14 = vpack.c.bf16 %v4314_v62, %v4314_v62 }
 0x63c   :  { %1822 = vmatmul.bf16.vlgmr.msra.gmra.mxu1 %v4320_v14  ;;  %1835 = vmatmul.bf16.vlgmr.msra.gmra.mxu2 %v4320_v14 }
 0x63d   :  { %1848 = vmatmul.bf16.vlgmr.msra.gmra.mxu3 %v4320_v14  ;;  %1967 = vmatmul.bf16.vlgmr.msra.gmra.mxu0 %v4320_v14 }
 0x63e   :  { %2012 = vmatpush.bf16.msra.mxu1 %v3536_v21  ;;  %2033 = vmatpush.bf16.msra.mxu2 %v3642_v22 }
 0x63f   :  { %2046 = vmatpush.bf16.msra.mxu3 %v4915_v30  ;;  %2165 = vmatpush.bf16.msra.mxu0 %v3462_v8 }
 0x640   :  { %v1904_v61 = vpop.f32.mrf.mxu0 }
 0x641   :  { %v5126_v61 = vld [vmem:[#allocation49_spill] sm:$0xff] }
 0x642   :  { %2013 = vmatpush.bf16.msra.mxu1 %v4916_v20  ;;  %2034 = vmatpush.bf16.msra.mxu2 %v4917_v16 }
 0x643   :  { %2047 = vmatpush.bf16.msra.mxu3 %v4918_v59  ;;  %2166 = vmatpush.bf16.msra.mxu0 %v3471_v17 }
 0x646   :  { %2014 = vmatpush.bf16.msra.mxu1 %v4919_v9  ;;  %2035 = vmatpush.bf16.msra.mxu2 %v4920_v7 }
 0x647   :  { %2048 = vmatpush.bf16.msra.mxu3 %v4921_v40  ;;  %2167 = vmatpush.bf16.msra.mxu0 %v3480_v26 }
 0x64a   :  { %2015 = vmatpush.bf16.msra.mxu1 %v4922_v3  ;;  %2036 = vmatpush.bf16.msra.mxu2 %v3703_v12 }
 0x64b   :  { %2049 = vmatpush.bf16.msra.mxu3 %v3705_v60  ;;  %2168 = vmatpush.bf16.msra.mxu0 %v3489_v35 }
 0x64d   :  { %1954 = vmatmul.bf16.vlgmr.msrb.gmra.mxu3 %v4320_v14 }
 0x64e   :  { %2016 = vmatpush.bf16.msra.mxu1 %v4923_v13  ;;  %2037 = vmatpush.bf16.msra.mxu2 %v3713_v18 }
 0x64f   :  { %2050 = vmatpush.bf16.msra.mxu3 %v4957_v44  ;;  %2169 = vmatpush.bf16.msra.mxu0 %v5106_v57 }
 0x652   :  { %2017 = vmatpush.bf16.msra.mxu1 %v5107_v58  ;;  %2038 = vmatpush.bf16.msra.mxu2 %v5108_v1 }
 0x653   :  { %2051 = vmatpush.bf16.msra.mxu3 %v5109_v2  ;;  %2170 = vmatpush.bf16.msra.mxu0 %v5110_v41 }
 0x656   :  { %2018 = vmatpush.bf16.msra.mxu1 %v5111_v28  ;;  %2039 = vmatpush.bf16.msra.mxu2 %v5112_v49 }
 0x657   :  { %2052 = vmatpush.bf16.msra.mxu3 %v5113_v0  ;;  %2171 = vmatpush.bf16.msra.mxu0 %v5114_v19 }
 0x65a   :  { %2019 = vmatpush.bf16.msra.mxu1 %v5115_v63  ;;  %2040 = vmatpush.bf16.msra.mxu2 %v5116_v39 }
 0x65b   :  { %2053 = vmatpush.bf16.msra.mxu3 %v5117_v42  ;;  %2172 = vmatpush.bf16.msra.mxu0 %v5118_v53  ;;  %v5127_v42 = vld [vmem:[#allocation54_spill] sm:$0xff] }
 0x65f   :  { %2146 = vmatpush.bf16.msrb.mxu3 %v5119_v37 }
 0x663   :  { %2147 = vmatpush.bf16.msrb.mxu3 %v5120_v15 }
 0x667   :  { %2148 = vmatpush.bf16.msrb.mxu3 %v5121_v38  ;;  %v5128_v38 = vld [vmem:[#allocation25_spill] sm:$0xff] }
 0x66b   :  { %2149 = vmatpush.bf16.msrb.mxu3 %v5122_v29 }
 0x66f   :  { %2150 = vmatpush.bf16.msrb.mxu3 %v5123_v56 }
 0x673   :  { %2151 = vmatpush.bf16.msrb.mxu3 %v5124_v23 }
 0x677   :  { %2152 = vmatpush.bf16.msrb.mxu3 %v5125_v31 }
 0x67b   :  { %2153 = vmatpush.bf16.msrb.mxu3 %v5126_v61  ;;  %v4376_v61 = vld [vmem:[%s4683_s0 + $0x18] sm:$0xff]  }
 0x67c   :  { %5129 = vst [vmem:[#allocation56_spill] sm:$0xff] %v4376_v61 }
 0x6b9   :  { %v1823_v39 = vpop.f32.mrf.mxu1 }
 0x6ba   :  { %v1824_v63 = vadd.f32 %v1823_v39, %v5127_v42  ;;  %v4368_v53 = vpop.f32.mrf.mxu0 }
 0x6bc   :  { %v1853_v37 = vadd.f32 %v1824_v63, %v4305_v50  ;;  %v3113_v50 = vunpack.c.l.bf16 %v4376_v61 }
 0x6be   :  { %v2973_v15 = vmul.f32 -1.442695, %v1853_v37  ;;  %235 = vperm.xlu0 %3135, %v3113_v50   ;;  %144 = vperm.xlu2 %3134, %v3113_v50  }
 0x6bf   :  { %v1836_v19 = vpop.f32.mrf.mxu2 }
 0x6c0   :  { %3231 = vpow2.f32 %v2973_v15  ;;  %v1837_v29 = vadd.f32 %v1836_v19, %v5128_v38  ;;  %v1849_v0 = vpop.f32.mrf.mxu3 }
 0x6c1   :  { %v1825_v56 = vpop.f32.mrf.mxu1 }
 0x6c2   :  { %v1873_v23 = vadd.f32 %v1837_v29, %v4307_v52  ;;  %v1970_v49 = vpop.f32.mrf.mxu0 }
 0x6c4   :  { %v2974_v31 = vmul.f32 -1.442695, %v1873_v23  ;;  %v5130_v23 = vmov 1  }
 0x6c6   :  { %v3232_v39 = vpop.eup %3231  ;;  %3233 = vpow2.f32 %v2974_v31  ;;  %3137 = vset.pattern.permute.xlu2 %v5130_v23  ;;  %v1850_v23 = vadd.f32 %v1849_v0, %v3874_v6 }
 0x6c7   :  { %v1857_v63 = vadd.f32 1.0, %v3232_v39  ;;  %v1838_v37 = vpop.f32.mrf.mxu2 }
 0x6c8   :  { %v1851_v15 = vpop.f32.mrf.mxu3 }
 0x6c9   :  { %3235 = vrcp.f32 %v1857_v63  ;;  %v1869_v42 = vand.u32 2147483648, %v1857_v63  ;;  %v1867_v61 = vand.u32 2147483647, %v1857_v63  ;;  %vm1863_vm9 = vweird.f32 %v1857_v63 }
 0x6cb   :  { %v1870_v50 = vor.u32 1.1754944e-38, %v1869_v42  ;;  %vm1868_vm11 = vcmp.eq.f32.partialorder %v1867_v61, 8.507059e+37 }
 0x6cc   :  { %v3234_v19 = vpop.eup %3233 }
 0x6cd   :  { %v1877_v56 = vadd.f32 1.0, %v3234_v19  ;;  %v1903_v19 = vadd.f32 %v4254_v47, %v4316_v51 }
 0x6cf   :  { %v3236_v52 = vpop.eup %3235  ;;  %3237 = vrcp.f32 %v1877_v56  ;;  %v1887_v57 = vand.u32 2147483647, %v1877_v56  ;;  %vm1883_vm13 = vweird.f32 %v1877_v56 }
 0x6d0   :  { %v1859_v49 = vmul.f32 %v3236_v52, %v1857_v63  ;;  %v4379_v29 = vpop.f32.mrf.mxu3  ;;  %vm1864_vm8 = vweird.f32 %v3236_v52 }
 0x6d1   :  { %vm1865_vm10 = vmor %vm1863_vm9, %vm1864_vm8  ;;  %vm1888_vm15 = vcmp.eq.f32.partialorder %v1887_v57, 8.507059e+37  ;;  %v5133_v57 = vld [vmem:[#allocation22_spill] sm:$0xff] }
 0x6d2   :  { %v1860_v38 = vsub.f32 1.0, %v1859_v49 }
 0x6d4   :  { %v1861_v31 = vmul.f32 %v3236_v52, %v1860_v38  ;;  %v1889_v38 = vand.u32 2147483648, %v1877_v56 }
 0x6d5   :  { %v3238_v39 = vpop.eup %3237 }
 0x6d6   :  { %v1879_v37 = vmul.f32 %v3238_v39, %v1877_v56  ;;  %v1862_v15 = vadd.f32 %v3236_v52, %v1861_v31  ;;  %vm1884_vm12 = vweird.f32 %v3238_v39  ;;  %v1890_v44 = vor.u32 1.1754944e-38, %v1889_v38  ;;  %v5137_v56 = vld [vmem:[#allocation14_spill] sm:$0xff] }
 0x6d7   :  { %vm1885_vm14 = vmor %vm1883_vm13, %vm1884_vm12  ;;  %v5145_v38 = vld [vmem:[#allocation50_spill] sm:$0xff] }
 0x6d8   :  { %v1880_v28 = vsub.f32 1.0, %v1879_v37  ;;  %v1866_v41 = vsel %vm1865_vm10, %v3236_v52, %v1862_v15  ;;  %v1957_v2 = vpop.f32.mrf.mxu3  ;;  %v5139_v37 = vld [vmem:[#allocation18_spill] sm:$0xff]  ;;  %v5140_v15 = vld [vmem:[#allocation21_spill] sm:$0xff] }
 0x6d9   :  { %v1871_v49 = vsel %vm1868_vm11, %v1870_v50, %v1866_v41  ;;  %v5141_v50 = vld [vmem:[#allocation24_spill] sm:$0xff] }
 0x6da   :  { %v1881_v1 = vmul.f32 %v3238_v39, %v1880_v28  ;;  %v1906_v58 = vmul.f32 %v1903_v19, %v1871_v49  ;;  %v5142_v19 = vld [vmem:[#allocation41_spill] sm:$0xff]  ;;  %v5144_v49 = vld [vmem:[#allocation47_spill] sm:$0xff] }
 0x6dc   :  { %v1882_v31 = vadd.f32 %v3238_v39, %v1881_v1  ;;  %v1907_v63 = vadd.f32 %v1906_v58, %v1850_v23  ;;  %v5134_v58 = vld [vmem:[#allocation10_spill] sm:$0xff]  ;;  %v5136_v1 = vld [vmem:[#allocation13_spill] sm:$0xff]  ;;  %v5143_v23 = vld [vmem:[#allocation44_spill] sm:$0xff] }
 0x6de   :  { %v1886_v42 = vsel %vm1885_vm14, %v3238_v39, %v1882_v31  ;;  %3239 = vtanh.f32 %v1907_v63  ;;  %v5138_v39 = vld [vmem:[#allocation16_spill] sm:$0xff]  ;;  %v5146_v31 = vld [vmem:[#allocation55_spill] sm:$0xff]  ;;  %v5147_v63 = vld [vmem:[#allocation62_spill] sm:$0xff] }
 0x6df   :  { %v1891_v51 = vsel %vm1888_vm15, %v1890_v44, %v1886_v42  ;;  %v5131_v44 = vld [vmem:[#allocation19_spill] sm:$0xff]  ;;  %v140_v42 = vpop.permute.xlu2 %139 }
 0x6e0   :  { %v1909_v52 = vsub.f32 1.0, %v1891_v51  ;;  %v1911_v0 = vmul.f32 %v1891_v51, %v4260_v10  ;;  %v5132_v10 = vld [vmem:[#allocation51_spill] sm:$0xff]  ;;  %v5148_v51 = vld [vmem:[#allocation66_spill] sm:$0xff] }
 0x6e4   :  { %v3240_v61 = vpop.eup %3239 }
 0x6e5   :  { %v1910_v2 = vmul.f32 %v3240_v61, %v1909_v52  ;;  %v5149_v52 = vld [vmem:[#allocation52_spill] sm:$0xff] }
 0x6e6   :  { %v177_v61 = vmul.f32 %v5149_v52, %v140_v42 }
 0x6e7   :  { %v4386_v41 = vadd.f32 %v1911_v0, %v1910_v2  ;;  %v232_v2 = vpop.permute.xlu1 %231  ;;  %v5150_v0 = vld [vmem:[#allocation67_spill] sm:$0xff] }
 0x6e9   :  { %v1913_v28 = vpack.c.bf16 %v4386_v41, %v4386_v41 }
 0x6eb   :  { %1922 = vmatmul.bf16.vlgmr.msrb.gmra.mxu1 %v1913_v28  ;;  %1935 = vmatmul.bf16.vlgmr.msrb.gmra.mxu2 %v1913_v28 }
 0x6ec   :  { %2112 = vmatpush.bf16.msrb.mxu1 %v4930_v27  ;;  %2133 = vmatpush.bf16.msrb.mxu2 %v3460_v4 }
 0x6f0   :  { %2113 = vmatpush.bf16.msrb.mxu1 %v4931_v45  ;;  %2134 = vmatpush.bf16.msrb.mxu2 %v4932_v48 }
 0x6f4   :  { %2114 = vmatpush.bf16.msrb.mxu1 %v4933_v46  ;;  %2135 = vmatpush.bf16.msrb.mxu2 %v3476_v25 }
 0x6f8   :  { %2115 = vmatpush.bf16.msrb.mxu1 %v4934_v32  ;;  %2136 = vmatpush.bf16.msrb.mxu2 %v3485_v34 }
 0x6fb   :  { %2020 = vmatmul.bf16.vlgmr.msra.gmra.mxu1 %v4320_v14  ;;  %v5135_v14 = vld [vmem:[#allocation12_spill] sm:$0xff] }
 0x6fc   :  { %2116 = vmatpush.bf16.msrb.mxu1 %v4935_v5  ;;  %2137 = vmatpush.bf16.msrb.mxu2 %v3494_v43 }
 0x700   :  { %2117 = vmatpush.bf16.msrb.mxu1 %v4936_v36  ;;  %2138 = vmatpush.bf16.msrb.mxu2 %v3509_v54 }
 0x704   :  { %2118 = vmatpush.bf16.msrb.mxu1 %v4937_v55  ;;  %2139 = vmatpush.bf16.msrb.mxu2 %v5131_v44 }
 0x708   :  { %2119 = vmatpush.bf16.msrb.mxu1 %v5132_v10  ;;  %2140 = vmatpush.bf16.msrb.mxu2 %v5133_v57 }
 0x70b   :  { %2120 = vmatmul.bf16.vlgmr.msrb.gmra.mxu1 %v1913_v28  ;;  %v5151_v28 = vld [vmem:[#allocation57_spill] sm:$0xff] }
 0x70c   :  { %2178 = vmatpush.bf16.msra.mxu1 %v5134_v58 }
 0x710   :  { %2179 = vmatpush.bf16.msra.mxu1 %v5135_v14 }
 0x714   :  { %2180 = vmatpush.bf16.msra.mxu1 %v5136_v1 }
 0x718   :  { %2181 = vmatpush.bf16.msra.mxu1 %v5137_v56 }
 0x71c   :  { %2182 = vmatpush.bf16.msra.mxu1 %v5138_v39 }
 0x720   :  { %2183 = vmatpush.bf16.msra.mxu1 %v5139_v37 }
 0x724   :  { %2184 = vmatpush.bf16.msra.mxu1 %v5140_v15  ;;  %v5153_v15 = vld [vmem:[#allocation53_spill] sm:$0xff] }
 0x728   :  { %2185 = vmatpush.bf16.msra.mxu1 %v5141_v50  ;;  %v5152_v50 = vld [vmem:[#allocation60_spill] sm:$0xff] }
 0x72c   :  { %2278 = vmatpush.bf16.msrb.mxu1 %v5142_v19  ;;  %v266_v19 = vmul.f32 %v5151_v28, %v232_v2 }
 0x730   :  { %2279 = vmatpush.bf16.msrb.mxu1 %v5143_v23  ;;  %v201_v23 = vadd.f32 %v177_v61, %v5152_v50 }
 0x732   :  { %v290_v37 = vadd.f32 %v266_v19, %v201_v23 }
 0x734   :  { %2280 = vmatpush.bf16.msrb.mxu1 %v5144_v49  ;;  %v178_v49 = vmul.f32 %v5153_v15, %v140_v42 }
 0x738   :  { %2281 = vmatpush.bf16.msrb.mxu1 %v5145_v38  ;;  %v1972_v38 = vadd.f32 %v4379_v29, %v290_v37 }
 0x73a   :  { %v2975_v1 = vmul.f32 -1.442695, %v1972_v38 }
 0x73c   :  { %2282 = vmatpush.bf16.msrb.mxu1 %v5146_v31  ;;  %v5154_v31 = vld [vmem:[#allocation58_spill] sm:$0xff]  ;;  %3241 = vpow2.f32 %v2975_v1 }
 0x73d   :  { %v267_v39 = vmul.f32 %v5154_v31, %v232_v2 }
 0x740   :  { %2283 = vmatpush.bf16.msrb.mxu1 %v5147_v63  ;;  %v5155_v63 = vld [vmem:[#allocation61_spill] sm:$0xff] }
 0x741   :  { %v202_v56 = vadd.f32 %v178_v49, %v5155_v63 }
 0x744   :  { %2284 = vmatpush.bf16.msrb.mxu1 %v5148_v51  ;;  %v291_v51 = vadd.f32 %v267_v39, %v202_v56  ;;  %v5156_v39 = vld [vmem:[#allocation75_spill] sm:$0xff] }
 0x746   :  { %v1992_v52 = vadd.f32 %v4368_v53, %v291_v51  ;;  %v179_v51 = vmul.f32 %v5156_v39, %v140_v42 }
 0x748   :  { %2285 = vmatpush.bf16.msrb.mxu1 %v5150_v0  ;;  %v2976_v14 = vmul.f32 -1.442695, %v1992_v52  ;;  %v3242_v0 = vpop.eup %3241  ;;  %v203_v31 = vadd.f32 %v179_v51, %v5104_v24 }
 0x749   :  { %v1976_v28 = vadd.f32 1.0, %v3242_v0 }
 0x74a   :  { %3243 = vpow2.f32 %v2976_v14 }
 0x74b   :  { %3245 = vrcp.f32 %v1976_v28  ;;  %v1988_v52 = vand.u32 2147483648, %v1976_v28  ;;  %vm1982_vm1 = vweird.f32 %v1976_v28 }
 0x74d   :  { %v1989_v57 = vor.u32 1.1754944e-38, %v1988_v52 }
 0x750   :  { %v3244_v58 = vpop.eup %3243 }
 0x751   :  { %v1996_v61 = vadd.f32 1.0, %v3244_v58  ;;  %v3246_v15 = vpop.eup %3245  ;;  %v1986_v58 = vand.u32 2147483647, %v1976_v28 }
 0x752   :  { %v1978_v19 = vmul.f32 %v3246_v15, %v1976_v28  ;;  %vm1983_vm0 = vweird.f32 %v3246_v15 }
 0x753   :  { %3247 = vrcp.f32 %v1996_v61  ;;  %vm1984_vm2 = vmor %vm1982_vm1, %vm1983_vm0  ;;  %vm1987_vm3 = vcmp.eq.f32.partialorder %v1986_v58, 8.507059e+37  ;;  %vm2002_vm5 = vweird.f32 %v1996_v61  ;;  %v2006_v28 = vand.u32 2147483647, %v1996_v61 }
 0x754   :  { %v1979_v23 = vsub.f32 1.0, %v1978_v19  ;;  %v268_v19 = vmul.f32 %v5105_v33, %v232_v2 }
 0x755   :  { %vm2007_vm7 = vcmp.eq.f32.partialorder %v2006_v28, 8.507059e+37  ;;  %v5172_v28 = vld [vmem:[#allocation34_spill] sm:$0xff] }
 0x756   :  { %v1980_v56 = vmul.f32 %v3246_v15, %v1979_v23 }
 0x758   :  { %v1981_v14 = vadd.f32 %v3246_v15, %v1980_v56  ;;  %v292_v56 = vadd.f32 %v268_v19, %v203_v31  ;;  %v5159_v31 = vld [vmem:[#allocation29_spill] sm:$0xff]  ;;  %v5166_v19 = vld [vmem:[#allocation20_spill] sm:$0xff] }
 0x759   :  { %v3248_v37 = vpop.eup %3247 }
 0x75a   :  { %v1998_v49 = vmul.f32 %v3248_v37, %v1996_v61  ;;  %v1985_v50 = vsel %vm1984_vm2, %v3246_v15, %v1981_v14  ;;  %vm2003_vm4 = vweird.f32 %v3248_v37 }
 0x75b   :  { %v1990_v42 = vsel %vm1987_vm3, %v1989_v57, %v1985_v50  ;;  %vm2004_vm6 = vmor %vm2002_vm5, %vm2003_vm4 }
 0x75c   :  { %v1999_v1 = vsub.f32 1.0, %v1998_v49 }
 0x75e   :  { %v2000_v0 = vmul.f32 %v3248_v37, %v1999_v1 }
 0x760   :  { %v2001_v49 = vadd.f32 %v3248_v37, %v2000_v0  ;;  %v5165_v0 = vld [vmem:[#allocation72_spill] sm:$0xff] }
 0x762   :  { %v2005_v1 = vsel %vm2004_vm6, %v3248_v37, %v2001_v49  ;;  %v5162_v37 = vld [vmem:[#allocation17_spill] sm:$0xff] }
 0x763   :  { %v5168_v49 = vld [vmem:[#allocation73_spill] sm:$0xff] }
 0x768   :  { %v4431_v29 = vpop.f32.mrf.mxu1 }
 0x76e   :  { %v4433_v38 = vpop.f32.mrf.mxu2 }
 0x770   :  { %v1925_v53 = vpop.f32.mrf.mxu1 }
 0x771   :  { %v2008_v53 = vand.u32 2147483648, %v1996_v61  ;;  %v5161_v61 = vld [vmem:[#allocation70_spill] sm:$0xff] }
 0x773   :  { %v2009_v51 = vor.u32 1.1754944e-38, %v2008_v53  ;;  %v5171_v53 = vld [vmem:[#allocation32_spill] sm:$0xff] }
 0x775   :  { %v2010_v2 = vsel %vm2007_vm7, %v2009_v51, %v2005_v1  ;;  %v5174_v1 = vld [vmem:[#allocation38_spill] sm:$0xff]  ;;  %v5175_v51 = vld [vmem:[#allocation40_spill] sm:$0xff] }
 0x776   :  { %v1938_v63 = vpop.f32.mrf.mxu2  ;;  %v2028_v14 = vsub.f32 1.0, %v2010_v2 }
 0x778   :  { %v2021_v10 = vpop.f32.mrf.mxu1 }
 0x779   :  { %v2022_v23 = vadd.f32 %v4183_v11, %v2021_v10  ;;  %v2030_v11 = vmul.f32 %v2010_v2, %v4314_v62  ;;  %v5177_v2 = vld [vmem:[#allocation46_spill] sm:$0xff] }
 0x77b   :  { %v2025_v39 = vmul.f32 %v2022_v23, %v1990_v42  ;;  %v5167_v23 = vld [vmem:[#allocation31_spill] sm:$0xff]  ;;  %v5169_v42 = vld [vmem:[#allocation74_spill] sm:$0xff] }
 0x77d   :  { %v2026_v63 = vadd.f32 %v2025_v39, %v292_v56  ;;  %v5163_v39 = vld [vmem:[#allocation30_spill] sm:$0xff]  ;;  %v5170_v56 = vld [vmem:[#allocation23_spill] sm:$0xff] }
 0x77f   :  { %3249 = vtanh.f32 %v2026_v63  ;;  %v5173_v63 = vld [vmem:[#allocation36_spill] sm:$0xff] }
 0x780   :  { %v2023_v15 = vpop.f32.mrf.mxu1 }
 0x781   :  { %v5176_v15 = vld [vmem:[#allocation43_spill] sm:$0xff] }
 0x785   :  { %v3250_v52 = vpop.eup %3249 }
 0x786   :  { %v2029_v58 = vmul.f32 %v3250_v52, %v2028_v14  ;;  %v5178_v14 = vld [vmem:[#allocation49_spill] sm:$0xff] }
 0x788   :  { %v4440_v10 = vadd.f32 %v2030_v11, %v2029_v58  ;;  %v4442_v57 = vpop.f32.mrf.mxu1 }
 0x78a   :  { %v4446_v50 = vpack.c.bf16 %v4440_v10, %v4440_v10 }
 0x78c   :  { %2041 = vmatmul.bf16.vlgmr.msra.gmra.mxu2 %v4446_v50  ;;  %2054 = vmatmul.bf16.vlgmr.msra.gmra.mxu3 %v4446_v50 }
 0x78d   :  { %2067 = vmatmul.bf16.vlgmr.msrb.gmra.mxu0 %v4446_v50  ;;  %2186 = vmatmul.bf16.vlgmr.msra.gmra.mxu1 %v4446_v50 }
 0x78e   :  { %2231 = vmatpush.bf16.msra.mxu2 %v3536_v21  ;;  %2252 = vmatpush.bf16.msra.mxu3 %v3642_v22 }
 0x78f   :  { %2265 = vmatpush.bf16.msrb.mxu0 %v4915_v30  ;;  %2384 = vmatpush.bf16.msra.mxu1 %v3462_v8  ;;  %v5157_v8 = vld [vmem:[#allocation68_spill] sm:$0xff] }
 0x790   :  { %v2123_v62 = vpop.f32.mrf.mxu1 }
 0x792   :  { %2232 = vmatpush.bf16.msra.mxu2 %v4916_v20  ;;  %2253 = vmatpush.bf16.msra.mxu3 %v4917_v16 }
 0x793   :  { %2266 = vmatpush.bf16.msrb.mxu0 %v4918_v59  ;;  %2385 = vmatpush.bf16.msra.mxu1 %v3471_v17  ;;  %v5158_v17 = vld [vmem:[#allocation15_spill] sm:$0xff] }
 0x796   :  { %2233 = vmatpush.bf16.msra.mxu2 %v4919_v9  ;;  %2254 = vmatpush.bf16.msra.mxu3 %v4920_v7 }
 0x797   :  { %2267 = vmatpush.bf16.msrb.mxu0 %v4921_v40  ;;  %2386 = vmatpush.bf16.msra.mxu1 %v3480_v26  ;;  %v5160_v26 = vld [vmem:[#allocation69_spill] sm:$0xff] }
 0x79a   :  { %2234 = vmatpush.bf16.msra.mxu2 %v4922_v3  ;;  %2255 = vmatpush.bf16.msra.mxu3 %v3703_v12 }
 0x79b   :  { %2268 = vmatpush.bf16.msrb.mxu0 %v3705_v60  ;;  %2387 = vmatpush.bf16.msra.mxu1 %v3489_v35  ;;  %v5164_v35 = vld [vmem:[#allocation71_spill] sm:$0xff] }
 0x79d   :  { %2173 = vmatmul.bf16.vlgmr.msra.gmra.mxu0 %v4446_v50 }
 0x79e   :  { %2235 = vmatpush.bf16.msra.mxu2 %v4923_v13  ;;  %2256 = vmatpush.bf16.msra.mxu3 %v3713_v18 }
 0x79f   :  { %2269 = vmatpush.bf16.msrb.mxu0 %v5157_v8  ;;  %2388 = vmatpush.bf16.msra.mxu1 %v5158_v17  ;;  %v5179_v17 = vld [vmem:[#allocation54_spill] sm:$0xff] }
 0x7a2   :  { %2236 = vmatpush.bf16.msra.mxu2 %v5159_v31  ;;  %2257 = vmatpush.bf16.msra.mxu3 %v5160_v26 }
 0x7a3   :  { %2270 = vmatpush.bf16.msrb.mxu0 %v5161_v61  ;;  %2389 = vmatpush.bf16.msra.mxu1 %v5162_v37 }
 0x7a6   :  { %2237 = vmatpush.bf16.msra.mxu2 %v5163_v39  ;;  %2258 = vmatpush.bf16.msra.mxu3 %v5164_v35 }
 0x7a7   :  { %2271 = vmatpush.bf16.msrb.mxu0 %v5165_v0  ;;  %2390 = vmatpush.bf16.msra.mxu1 %v5166_v19  ;;  %v5180_v19 = vld [vmem:[#allocation25_spill] sm:$0xff] }
 0x7aa   :  { %2238 = vmatpush.bf16.msra.mxu2 %v5167_v23  ;;  %2259 = vmatpush.bf16.msra.mxu3 %v5168_v49 }
 0x7ab   :  { %2272 = vmatpush.bf16.msrb.mxu0 %v5169_v42  ;;  %2391 = vmatpush.bf16.msra.mxu1 %v5170_v56 }
 0x7af   :  { %2365 = vmatpush.bf16.msra.mxu0 %v5171_v53 }
 0x7b3   :  { %2366 = vmatpush.bf16.msra.mxu0 %v5172_v28 }
 0x7b7   :  { %2367 = vmatpush.bf16.msra.mxu0 %v5173_v63 }
 0x7bb   :  { %2368 = vmatpush.bf16.msra.mxu0 %v5174_v1 }
 0x7bf   :  { %2369 = vmatpush.bf16.msra.mxu0 %v5175_v51 }
 0x7c3   :  { %2370 = vmatpush.bf16.msra.mxu0 %v5176_v15 }
 0x7c7   :  { %2371 = vmatpush.bf16.msra.mxu0 %v5177_v2 }
 0x7cb   :  { %2372 = vmatpush.bf16.msra.mxu0 %v5178_v14 }
 0x80a   :  { %v2068_v52 = vpop.f32.mrf.mxu0  ;;  %v4493_v58 = vpop.f32.mrf.mxu1 }
 0x80f   :  { %v2042_v11 = vpop.f32.mrf.mxu2  ;;  %v2055_v62 = vpop.f32.mrf.mxu3 }
 0x810   :  { %v2043_v37 = vadd.f32 %v2042_v11, %v5179_v17  ;;  %v2056_v56 = vadd.f32 %v2055_v62, %v5180_v19 }
 0x812   :  { %v2072_v53 = vadd.f32 %v2043_v37, %v4431_v29  ;;  %v2092_v28 = vadd.f32 %v2056_v56, %v4433_v38  ;;  %v2070_v63 = vpop.f32.mrf.mxu0  ;;  %v2189_v1 = vpop.f32.mrf.mxu1 }
 0x814   :  { %v2977_v51 = vmul.f32 -1.442695, %v2072_v53  ;;  %v2978_v15 = vmul.f32 -1.442695, %v2092_v28 }
 0x816   :  { %3251 = vpow2.f32 %v2977_v51 }
 0x817   :  { %3253 = vpow2.f32 %v2978_v15  ;;  %v2044_v2 = vpop.f32.mrf.mxu2  ;;  %v2057_v14 = vpop.f32.mrf.mxu3 }
 0x81a   :  { %v4499_v42 = vpop.f32.mrf.mxu0 }
 0x81c   :  { %v3252_v49 = vpop.eup %3251 }
 0x81d   :  { %v3254_v23 = vpop.eup %3253  ;;  %v2076_v0 = vadd.f32 1.0, %v3252_v49 }
 0x81e   :  { %v2096_v11 = vadd.f32 1.0, %v3254_v23  ;;  %v2122_v23 = vadd.f32 %v4254_v47, %v4442_v57 }
 0x81f   :  { %3255 = vrcp.f32 %v2076_v0  ;;  %v2088_v53 = vand.u32 2147483648, %v2076_v0  ;;  %v2086_v51 = vand.u32 2147483647, %v2076_v0  ;;  %vm2082_vm9 = vweird.f32 %v2076_v0 }
 0x820   :  { %3257 = vrcp.f32 %v2096_v11  ;;  %vm2102_vm13 = vweird.f32 %v2096_v11 }
 0x821   :  { %v2089_v14 = vor.u32 1.1754944e-38, %v2088_v53  ;;  %vm2087_vm11 = vcmp.eq.f32.partialorder %v2086_v51, 8.507059e+37 }
 0x822   :  { %v2176_v62 = vpop.f32.mrf.mxu0 }
 0x825   :  { %v3256_v29 = vpop.eup %3255 }
 0x826   :  { %v3258_v37 = vpop.eup %3257  ;;  %v2078_v38 = vmul.f32 %v3256_v29, %v2076_v0  ;;  %vm2083_vm8 = vweird.f32 %v3256_v29 }
 0x827   :  { %v2098_v56 = vmul.f32 %v3258_v37, %v2096_v11  ;;  %vm2084_vm10 = vmor %vm2082_vm9, %vm2083_vm8  ;;  %vm2103_vm12 = vweird.f32 %v3258_v37 }
 0x828   :  { %v2079_v63 = vsub.f32 1.0, %v2078_v38  ;;  %v2069_v38 = vadd.f32 %v2068_v52, %v3874_v6  ;;  %vm2104_vm14 = vmor %vm2102_vm13, %vm2103_vm12 }
 0x829   :  { %v2099_v28 = vsub.f32 1.0, %v2098_v56  ;;  %v2108_v56 = vand.u32 2147483648, %v2096_v11 }
 0x82a   :  { %v2080_v1 = vmul.f32 %v3256_v29, %v2079_v63  ;;  %v2106_v63 = vand.u32 2147483647, %v2096_v11  ;;  %v5193_v11 = vld [vmem:[#allocation47_spill] sm:$0xff] }
 0x82b   :  { %v2100_v15 = vmul.f32 %v3258_v37, %v2099_v28  ;;  %v2109_v0 = vor.u32 1.1754944e-38, %v2108_v56  ;;  %v236_v56 = vpop.permute.xlu0 %235 }
 0x82c   :  { %v2081_v2 = vadd.f32 %v3256_v29, %v2080_v1  ;;  %vm2107_vm15 = vcmp.eq.f32.partialorder %v2106_v63, 8.507059e+37  ;;  %v5200_v63 = vld [vmem:[#allocation57_spill] sm:$0xff] }
 0x82d   :  { %v2101_v17 = vadd.f32 %v3258_v37, %v2100_v15  ;;  %v5195_v15 = vld [vmem:[#allocation55_spill] sm:$0xff] }
 0x82e   :  { %v2085_v49 = vsel %vm2084_vm10, %v3256_v29, %v2081_v2  ;;  %v5196_v2 = vld [vmem:[#allocation62_spill] sm:$0xff] }
 0x82f   :  { %v2090_v62 = vsel %vm2087_vm11, %v2089_v14, %v2085_v49  ;;  %v2105_v1 = vsel %vm2104_vm14, %v3258_v37, %v2101_v17  ;;  %v5191_v17 = vld [vmem:[#allocation41_spill] sm:$0xff]  ;;  %v5194_v37 = vld [vmem:[#allocation50_spill] sm:$0xff]  ;;  %v5198_v49 = vld [vmem:[#allocation67_spill] sm:$0xff] }
 0x830   :  { %v2125_v19 = vmul.f32 %v2122_v23, %v2090_v62  ;;  %v2110_v53 = vsel %vm2107_vm15, %v2109_v0, %v2105_v1  ;;  %v5197_v14 = vld [vmem:[#allocation66_spill] sm:$0xff]  ;;  %v145_v23 = vpop.permute.xlu2 %144  ;;  %v5199_v62 = vld [vmem:[#allocation52_spill] sm:$0xff] }
 0x831   :  { %v2128_v35 = vsub.f32 1.0, %v2110_v53  ;;  %v2130_v29 = vmul.f32 %v2110_v53, %v4386_v41  ;;  %v5185_v41 = vld [vmem:[#allocation13_spill] sm:$0xff]  ;;  %v5201_v1 = vld [vmem:[#allocation60_spill] sm:$0xff] }
 0x832   :  { %v2126_v28 = vadd.f32 %v2125_v19, %v2069_v38  ;;  %v5192_v19 = vld [vmem:[#allocation44_spill] sm:$0xff]  ;;  %v180_v38 = vmul.f32 %v5199_v62, %v145_v23  ;;  %v5202_v53 = vld [vmem:[#allocation53_spill] sm:$0xff] }
 0x834   :  { %3259 = vtanh.f32 %v2126_v28  ;;  %v269_v28 = vmul.f32 %v5200_v63, %v236_v56  ;;  %v204_v0 = vadd.f32 %v180_v38, %v5201_v1 }
 0x83a   :  { %v3260_v47 = vpop.eup %3259 }
 0x83b   :  { %v2129_v57 = vmul.f32 %v3260_v47, %v2128_v35  ;;  %v5189_v35 = vld [vmem:[#allocation21_spill] sm:$0xff]  ;;  %v181_v47 = vmul.f32 %v5202_v53, %v145_v23 }
 0x83d   :  { %v4505_v51 = vadd.f32 %v2130_v29, %v2129_v57  ;;  %v293_v57 = vadd.f32 %v269_v28, %v204_v0  ;;  %v5205_v0 = vld [vmem:[#allocation56_spill] sm:$0xff] }
 0x83f   :  { %v2132_v52 = vpack.c.bf16 %v4505_v51, %v4505_v51  ;;  %v2191_v29 = vadd.f32 %v4499_v42, %v293_v57 }
 0x841   :  { %2141 = vmatmul.bf16.vlgmr.msrb.gmra.mxu2 %v2132_v52  ;;  %2154 = vmatmul.bf16.vlgmr.msrb.gmra.mxu3 %v2132_v52 }
 0x842   :  { %2331 = vmatpush.bf16.msrb.mxu2 %v4930_v27  ;;  %2352 = vmatpush.bf16.msrb.mxu3 %v3460_v4  ;;  %v5181_v4 = vld [vmem:[#allocation51_spill] sm:$0xff] }
 0x846   :  { %2332 = vmatpush.bf16.msrb.mxu2 %v4931_v45  ;;  %2353 = vmatpush.bf16.msrb.mxu3 %v4932_v48  ;;  %v5183_v48 = vld [vmem:[#allocation10_spill] sm:$0xff] }
 0x84a   :  { %2333 = vmatpush.bf16.msrb.mxu2 %v4933_v46  ;;  %2354 = vmatpush.bf16.msrb.mxu3 %v3476_v25  ;;  %v5182_v25 = vld [vmem:[#allocation22_spill] sm:$0xff] }
 0x84e   :  { %2334 = vmatpush.bf16.msrb.mxu2 %v4934_v32  ;;  %2355 = vmatpush.bf16.msrb.mxu3 %v3485_v34  ;;  %v5184_v34 = vld [vmem:[#allocation12_spill] sm:$0xff] }
 0x851   :  { %2239 = vmatmul.bf16.vlgmr.msra.gmra.mxu2 %v4446_v50  ;;  %v5187_v50 = vld [vmem:[#allocation16_spill] sm:$0xff] }
 0x852   :  { %2335 = vmatpush.bf16.msrb.mxu2 %v4935_v5  ;;  %2356 = vmatpush.bf16.msrb.mxu3 %v3494_v43  ;;  %v5186_v43 = vld [vmem:[#allocation14_spill] sm:$0xff] }
 0x856   :  { %2336 = vmatpush.bf16.msrb.mxu2 %v4936_v36  ;;  %2357 = vmatpush.bf16.msrb.mxu3 %v3509_v54  ;;  %v5188_v54 = vld [vmem:[#allocation18_spill] sm:$0xff] }
 0x85a   :  { %2337 = vmatpush.bf16.msrb.mxu2 %v4937_v55  ;;  %2358 = vmatpush.bf16.msrb.mxu3 %v5131_v44  ;;  %v5190_v44 = vld [vmem:[#allocation24_spill] sm:$0xff] }
 0x85e   :  { %2338 = vmatpush.bf16.msrb.mxu2 %v5181_v4  ;;  %2359 = vmatpush.bf16.msrb.mxu3 %v5182_v25 }
 0x861   :  { %2339 = vmatmul.bf16.vlgmr.msrb.gmra.mxu2 %v2132_v52  ;;  %v5203_v52 = vld [vmem:[#allocation58_spill] sm:$0xff] }
 0x862   :  { %2397 = vmatpush.bf16.msra.mxu2 %v5183_v48  ;;  %v270_v25 = vmul.f32 %v5203_v52, %v236_v56  ;;  %v5204_v48 = vld [vmem:[#allocation61_spill] sm:$0xff] }
 0x866   :  { %2398 = vmatpush.bf16.msra.mxu2 %v5184_v34  ;;  %v205_v34 = vadd.f32 %v181_v47, %v5204_v48  ;;  %v3114_v47 = vunpack.c.h.bf16 %v5205_v0 }
 0x868   :  { %149 = vperm.xlu1 %3136, %v3114_v47   ;;  %239 = vperm.xlu2 %3137, %v3114_v47  }
 0x86a   :  { %2399 = vmatpush.bf16.msra.mxu2 %v5185_v41  ;;  %v2979_v41 = vmul.f32 -1.442695, %v2191_v29  ;;  %v5206_v29 = vld [vmem:[#allocation75_spill] sm:$0xff] }
 0x86c   :  { %3261 = vpow2.f32 %v2979_v41 }
 0x86e   :  { %2400 = vmatpush.bf16.msra.mxu2 %v5186_v43  ;;  %v294_v43 = vadd.f32 %v270_v25, %v205_v34  ;;  %v182_v25 = vmul.f32 %v5206_v29, %v145_v23 }
 0x872   :  { %2401 = vmatpush.bf16.msra.mxu2 %v5187_v50  ;;  %v2211_v50 = vadd.f32 %v4493_v58, %v294_v43 }
 0x876   :  { %2402 = vmatpush.bf16.msra.mxu2 %v5188_v54  ;;  %v2980_v54 = vmul.f32 -1.442695, %v2211_v50 }
 0x878   :  { %3263 = vpow2.f32 %v2980_v54  ;;  %v206_v54 = vadd.f32 %v182_v25, %v5104_v24 }
 0x87a   :  { %2403 = vmatpush.bf16.msra.mxu2 %v5189_v35  ;;  %v3262_v35 = vpop.eup %3261 }
 0x87e   :  { %2404 = vmatpush.bf16.msra.mxu2 %v5190_v44  ;;  %v2195_v44 = vadd.f32 1.0, %v3262_v35  ;;  %v271_v35 = vmul.f32 %v5105_v33, %v236_v56 }
 0x880   :  { %3265 = vrcp.f32 %v2195_v44  ;;  %v2207_v41 = vand.u32 2147483648, %v2195_v44  ;;  %vm2201_vm1 = vweird.f32 %v2195_v44  ;;  %v2205_v43 = vand.u32 2147483647, %v2195_v44 }
 0x882   :  { %2497 = vmatpush.bf16.msrb.mxu2 %v5191_v17  ;;  %v3264_v17 = vpop.eup %3263  ;;  %vm2206_vm3 = vcmp.eq.f32.partialorder %v2205_v43, 8.507059e+37 }
 0x886   :  { %2498 = vmatpush.bf16.msrb.mxu2 %v5192_v19  ;;  %v2215_v19 = vadd.f32 1.0, %v3264_v17 }
 0x888   :  { %3267 = vrcp.f32 %v2215_v19  ;;  %vm2221_vm5 = vweird.f32 %v2215_v19  ;;  %v2225_v47 = vand.u32 2147483647, %v2215_v19 }
 0x88a   :  { %2499 = vmatpush.bf16.msrb.mxu2 %v5193_v11  ;;  %v3266_v11 = vpop.eup %3265  ;;  %vm2226_vm7 = vcmp.eq.f32.partialorder %v2225_v47, 8.507059e+37 }
 0x88b   :  { %vm2202_vm0 = vweird.f32 %v3266_v11 }
 0x88c   :  { %vm2203_vm2 = vmor %vm2201_vm1, %vm2202_vm0 }
 0x88e   :  { %2500 = vmatpush.bf16.msrb.mxu2 %v5194_v37  ;;  %v2197_v37 = vmul.f32 %v3266_v11, %v2195_v44 }
 0x892   :  { %2501 = vmatpush.bf16.msrb.mxu2 %v5195_v15 }
 0x896   :  { %2502 = vmatpush.bf16.msrb.mxu2 %v5196_v2  ;;  %v3268_v2 = vpop.eup %3267 }
 0x897   :  { %vm2222_vm4 = vweird.f32 %v3268_v2 }
 0x898   :  { %vm2223_vm6 = vmor %vm2221_vm5, %vm2222_vm4 }
 0x89a   :  { %2503 = vmatpush.bf16.msrb.mxu2 %v5197_v14  ;;  %v2198_v14 = vsub.f32 1.0, %v2197_v37  ;;  %v2208_v37 = vor.u32 1.1754944e-38, %v2207_v41 }
 0x89c   :  { %v2199_v38 = vmul.f32 %v3266_v11, %v2198_v14 }
 0x89e   :  { %2504 = vmatpush.bf16.msrb.mxu2 %v5198_v49  ;;  %v2217_v49 = vmul.f32 %v3268_v2, %v2215_v19  ;;  %v2200_v34 = vadd.f32 %v3266_v11, %v2199_v38 }
 0x8a0   :  { %v2218_v57 = vsub.f32 1.0, %v2217_v49  ;;  %v2204_v17 = vsel %vm2203_vm2, %v3266_v11, %v2200_v34  ;;  %v4561_v49 = vld [vmem:[%s4687_s4] ss:$0 sm:$0xff] }
 0x8a1   :  { %v2209_v44 = vsel %vm2206_vm3, %v2208_v37, %v2204_v17 }
 0x8a2   :  { %v2219_v50 = vmul.f32 %v3268_v2, %v2218_v57 }
 0x8a4   :  { %v2220_v38 = vadd.f32 %v3268_v2, %v2219_v50 }
 0x8a6   :  { %v2224_v11 = vsel %vm2223_vm6, %v3268_v2, %v2220_v38 }
 0x8c4   :  { %v4550_v42 = vpop.f32.mrf.mxu2  ;;  %v4552_v15 = vpop.f32.mrf.mxu3 }
 0x8cc   :  { %v2144_v58 = vpop.f32.mrf.mxu2  ;;  %v2157_v28 = vpop.f32.mrf.mxu3 }
 0x8cd   :  { %v295_v58 = vadd.f32 %v271_v35, %v206_v54  ;;  %v2227_v28 = vand.u32 2147483648, %v2215_v19 }
 0x8cf   :  { %v2228_v57 = vor.u32 1.1754944e-38, %v2227_v28 }
 0x8d1   :  { %v2229_v34 = vsel %vm2226_vm7, %v2228_v57, %v2224_v11 }
 0x8d2   :  { %v2247_v41 = vsub.f32 1.0, %v2229_v34  ;;  %v2249_v50 = vmul.f32 %v2229_v34, %v4440_v10 }
 0x8d4   :  { %v2240_v14 = vpop.f32.mrf.mxu2 }
 0x8d5   :  { %v2241_v23 = vadd.f32 %v4561_v49, %v2240_v14 }
 0x8d7   :  { %v2244_v0 = vmul.f32 %v2241_v23, %v2209_v44 }
 0x8d9   :  { %v2245_v56 = vadd.f32 %v2244_v0, %v295_v58 }
 0x8db   :  { %3269 = vtanh.f32 %v2245_v56 }
 0x8dc   :  { %v2242_v25 = vpop.f32.mrf.mxu2 }
 0x8e1   :  { %v3270_v43 = vpop.eup %3269 }
 0x8e2   :  { %v2248_v33 = vmul.f32 %v3270_v43, %v2247_v41  ;;  %v4613_v43 = vld [vmem:[%s4691_s8] ss:$0 sm:$0xff] }
 0x8e4   :  { %v4565_v14 = vadd.f32 %v2249_v50, %v2248_v33  ;;  %v4567_v54 = vpop.f32.mrf.mxu2 }
 0x8e5   :  { %v2341_v50 = vadd.f32 %v4613_v43, %v4567_v54 }
 0x8e6   :  { %v4571_v19 = vpack.c.bf16 %v4565_v14, %v4565_v14 }
 0x8e8   :  { %2260 = vmatmul.bf16.vlgmr.msra.gmra.mxu3 %v4571_v19  ;;  %2273 = vmatmul.bf16.vlgmr.msrb.gmra.mxu0 %v4571_v19 }
 0x8e9   :  { %2286 = vmatmul.bf16.vlgmr.msrb.gmra.mxu1 %v4571_v19  ;;  %2405 = vmatmul.bf16.vlgmr.msra.gmra.mxu2 %v4571_v19 }
 0x8ea   :  { %2450 = vmatpush.bf16.msra.mxu3 %v3536_v21  ;;  %2471 = vmatpush.bf16.msrb.mxu0 %v3642_v22  ;;  %v5207_v21 = vld [vmem:[#allocation71_spill] sm:$0xff]  ;;  %v5208_v22 = vld [vmem:[#allocation72_spill] sm:$0xff] }
 0x8eb   :  { %2484 = vmatpush.bf16.msrb.mxu1 %v4915_v30  ;;  %v5211_v30 = vld [vmem:[#allocation74_spill] sm:$0xff] }
 0x8ec   :  { %v2342_v33 = vpop.f32.mrf.mxu2 }
 0x8ee   :  { %2451 = vmatpush.bf16.msra.mxu3 %v4916_v20  ;;  %2472 = vmatpush.bf16.msrb.mxu0 %v4917_v16  ;;  %v5212_v20 = vld [vmem:[#allocation25_spill] sm:$0xff] }
 0x8ef   :  { %2485 = vmatpush.bf16.msrb.mxu1 %v4918_v59 }
 0x8f2   :  { %2452 = vmatpush.bf16.msra.mxu3 %v4919_v9  ;;  %2473 = vmatpush.bf16.msrb.mxu0 %v4920_v7 }
 0x8f3   :  { %2486 = vmatpush.bf16.msrb.mxu1 %v4921_v40 }
 0x8f6   :  { %2453 = vmatpush.bf16.msra.mxu3 %v4922_v3  ;;  %2474 = vmatpush.bf16.msrb.mxu0 %v3703_v12  ;;  %v5210_v12 = vld [vmem:[#allocation73_spill] sm:$0xff]  ;;  %v5213_v3 = vld [vmem:[#allocation54_spill] sm:$0xff] }
 0x8f7   :  { %2487 = vmatpush.bf16.msrb.mxu1 %v3705_v60  ;;  %v5209_v60 = vld [vmem:[#allocation31_spill] sm:$0xff] }
 0x8f9   :  { %2392 = vmatmul.bf16.vlgmr.msra.gmra.mxu1 %v4571_v19 }
 0x8fa   :  { %2454 = vmatpush.bf16.msra.mxu3 %v4923_v13  ;;  %2475 = vmatpush.bf16.msrb.mxu0 %v3713_v18 }
 0x8fb   :  { %2488 = vmatpush.bf16.msrb.mxu1 %v5157_v8 }
 0x8fe   :  { %2455 = vmatpush.bf16.msra.mxu3 %v5159_v31  ;;  %2476 = vmatpush.bf16.msrb.mxu0 %v5160_v26 }
 0x8ff   :  { %2489 = vmatpush.bf16.msrb.mxu1 %v5161_v61 }
 0x902   :  { %2456 = vmatpush.bf16.msra.mxu3 %v5163_v39  ;;  %2477 = vmatpush.bf16.msrb.mxu0 %v5207_v21 }
 0x903   :  { %2490 = vmatpush.bf16.msrb.mxu1 %v5208_v22 }
 0x906   :  { %2457 = vmatpush.bf16.msra.mxu3 %v5209_v60  ;;  %2478 = vmatpush.bf16.msrb.mxu0 %v5210_v12 }
 0x907   :  { %2491 = vmatpush.bf16.msrb.mxu1 %v5211_v30 }
 0x965   :  { %v2274_v18 = vpop.f32.mrf.mxu0 }
 0x966   :  { %v2275_v16 = vadd.f32 %v2274_v18, %v5212_v20  ;;  %v2287_v59 = vpop.f32.mrf.mxu1 }
 0x967   :  { %v2288_v12 = vadd.f32 %v2287_v59, %v3874_v6 }
 0x968   :  { %v2311_v9 = vadd.f32 %v2275_v16, %v4552_v15 }
 0x96a   :  { %v2982_v7 = vmul.f32 -1.442695, %v2311_v9 }
 0x96b   :  { %v2261_v40 = vpop.f32.mrf.mxu3 }
 0x96c   :  { %3271 = vpow2.f32 %v2982_v7  ;;  %v2262_v13 = vadd.f32 %v2261_v40, %v5213_v3  ;;  %v4605_v10 = vpop.f32.mrf.mxu2 }
 0x96d   :  { %v2276_v8 = vpop.f32.mrf.mxu0 }
 0x96e   :  { %v2291_v31 = vadd.f32 %v2262_v13, %v4550_v42  ;;  %v2289_v26 = vpop.f32.mrf.mxu1 }
 0x970   :  { %v2981_v61 = vmul.f32 -1.442695, %v2291_v31 }
 0x972   :  { %v3272_v39 = vpop.eup %3271  ;;  %3273 = vpow2.f32 %v2981_v61  ;;  %v240_v61 = vpop.permute.xlu2 %239 }
 0x973   :  { %v2315_v2 = vadd.f32 1.0, %v3272_v39  ;;  %v2263_v35 = vpop.f32.mrf.mxu3 }
 0x974   :  { %v2408_v17 = vpop.f32.mrf.mxu2 }
 0x975   :  { %3275 = vrcp.f32 %v2315_v2  ;;  %v2327_v60 = vand.u32 2147483648, %v2315_v2  ;;  %vm2321_vm13 = vweird.f32 %v2315_v2  ;;  %v2325_v18 = vand.u32 2147483647, %v2315_v2 }
 0x976   :  { %v4608_v37 = vpop.f32.mrf.mxu1 }
 0x977   :  { %v2328_v7 = vor.u32 1.1754944e-38, %v2327_v60  ;;  %vm2326_vm15 = vcmp.eq.f32.partialorder %v2325_v18, 8.507059e+37 }
 0x978   :  { %v3274_v15 = vpop.eup %3273 }
 0x979   :  { %v2295_v23 = vadd.f32 1.0, %v3274_v15 }
 0x97b   :  { %3277 = vrcp.f32 %v2295_v23  ;;  %v3276_v38 = vpop.eup %3275  ;;  %v2307_v56 = vand.u32 2147483648, %v2295_v23  ;;  %v2305_v57 = vand.u32 2147483647, %v2295_v23  ;;  %vm2301_vm9 = vweird.f32 %v2295_v23 }
 0x97c   :  { %v2317_v58 = vmul.f32 %v3276_v38, %v2315_v2  ;;  %vm2322_vm12 = vweird.f32 %v3276_v38 }
 0x97d   :  { %v2308_v41 = vor.u32 1.1754944e-38, %v2307_v56  ;;  %vm2306_vm11 = vcmp.eq.f32.partialorder %v2305_v57, 8.507059e+37  ;;  %vm2323_vm14 = vmor %vm2321_vm13, %vm2322_vm12 }
 0x97e   :  { %v2395_v44 = vpop.f32.mrf.mxu1  ;;  %v2318_v47 = vsub.f32 1.0, %v2317_v58 }
 0x980   :  { %v2319_v25 = vmul.f32 %v3276_v38, %v2318_v47 }
 0x981   :  { %v3278_v28 = vpop.eup %3277 }
 0x982   :  { %v2297_v0 = vmul.f32 %v3278_v28, %v2295_v23  ;;  %vm2302_vm8 = vweird.f32 %v3278_v28  ;;  %v2320_v21 = vadd.f32 %v3276_v38, %v2319_v25  ;;  %v5214_v25 = vld [vmem:[#allocation77_spill] sm:$0xff] }
 0x983   :  { %vm2303_vm10 = vmor %vm2301_vm9, %vm2302_vm8 }
 0x984   :  { %v2298_v42 = vsub.f32 1.0, %v2297_v0  ;;  %v2324_v9 = vsel %vm2323_vm14, %v3276_v38, %v2320_v21 }
 0x985   :  { %v2329_v40 = vsel %vm2326_vm15, %v2328_v7, %v2324_v9 }
 0x986   :  { %v2299_v11 = vmul.f32 %v3278_v28, %v2298_v42  ;;  %v2347_v13 = vsub.f32 1.0, %v2329_v40  ;;  %v2349_v31 = vmul.f32 %v2329_v40, %v4505_v51  ;;  %v150_v51 = vpop.permute.xlu1 %149 }
 0x987   :  { %v185_v0 = vmul.f32 %v5206_v29, %v150_v51 }
 0x988   :  { %v2300_v34 = vadd.f32 %v3278_v28, %v2299_v11 }
 0x989   :  { %v209_v57 = vadd.f32 %v185_v0, %v5104_v24 }
 0x98a   :  { %v2304_v33 = vsel %vm2303_vm10, %v3278_v28, %v2300_v34  ;;  %v274_v34 = vmul.f32 %v5214_v25, %v240_v61 }
 0x98b   :  { %v2309_v22 = vsel %vm2306_vm11, %v2308_v41, %v2304_v33 }
 0x98c   :  { %v2344_v30 = vmul.f32 %v2341_v50, %v2309_v22  ;;  %v298_v60 = vadd.f32 %v274_v34, %v209_v57 }
 0x98e   :  { %v2345_v16 = vadd.f32 %v2344_v30, %v2288_v12 }
 0x990   :  { %3279 = vtanh.f32 %v2345_v16 }
 0x996   :  { %v3280_v54 = vpop.eup %3279 }
 0x997   :  { %v2348_v8 = vmul.f32 %v3280_v54, %v2347_v13 }
 0x999   :  { %v4619_v26 = vadd.f32 %v2349_v31, %v2348_v8 }
 0x99b   :  { %v2351_v59 = vpack.c.bf16 %v4619_v26, %v4619_v26 }
 0x99d   :  { %2360 = vmatmul.bf16.vlgmr.msrb.gmra.mxu3 %v2351_v59  ;;  %2373 = vmatmul.bf16.vlgmr.msra.gmra.mxu0 %v2351_v59 }
 0x99e   :  { %2550 = vmatpush.bf16.msrb.mxu3 %v4930_v27  ;;  %v183_v27 = vmul.f32 %v5199_v62, %v150_v51 }
 0x9a2   :  { %2551 = vmatpush.bf16.msrb.mxu3 %v4931_v45  ;;  %v207_v45 = vadd.f32 %v183_v27, %v5201_v1 }
 0x9a6   :  { %2552 = vmatpush.bf16.msrb.mxu3 %v4933_v46  ;;  %v272_v46 = vmul.f32 %v5200_v63, %v240_v61 }
 0x9aa   :  { %2553 = vmatpush.bf16.msrb.mxu3 %v4934_v32  ;;  %v184_v32 = vmul.f32 %v5202_v53, %v150_v51 }
 0x9ad   :  { %2458 = vmatmul.bf16.vlgmr.msra.gmra.mxu3 %v4571_v19  ;;  %v296_v19 = vadd.f32 %v272_v46, %v207_v45  ;;  %v3097_v45 = vld [vmem:[%s4692_s9 + $0x30] sm:$0xff] }
 0x9ae   :  { %2554 = vmatpush.bf16.msrb.mxu3 %v4935_v5  ;;  %v208_v5 = vadd.f32 %v184_v32, %v5204_v48 }
 0x9b2   :  { %2555 = vmatpush.bf16.msrb.mxu3 %v4936_v36  ;;  %v273_v36 = vmul.f32 %v5203_v52, %v240_v61  ;;  %v3098_v61 = vld [vmem:[%s4692_s9 + $0x38] sm:$0xff] }
 0x9b3   :  { %2639 = vmatpush.bf16.msra.mxu0 %v3098_v61 }
 0x9b4   :  { %v297_v39 = vadd.f32 %v273_v36, %v208_v5  ;;  %v3095_v36 = vld [vmem:[%s4692_s9 + $0x20] sm:$0xff] }
 0x9b6   :  { %2556 = vmatpush.bf16.msrb.mxu3 %v4937_v55  ;;  %v2410_v55 = vadd.f32 %v4608_v37, %v296_v19  ;;  %v2430_v2 = vadd.f32 %v4605_v10, %v297_v39 }
 0x9b7   :  { %2640 = vmatpush.bf16.msra.mxu0 %v3097_v45 }
 0x9b8   :  { %v2984_v62 = vmul.f32 -1.442695, %v2430_v2 }
 0x9ba   :  { %2557 = vmatpush.bf16.msrb.mxu3 %v5181_v4  ;;  %v2983_v4 = vmul.f32 -1.442695, %v2410_v55 }
 0x9bc   :  { %3281 = vpow2.f32 %v2983_v4 }
 0x9bd   :  { %2558 = vmatmul.bf16.vlgmr.msrb.gmra.mxu3 %v2351_v59  ;;  %3283 = vpow2.f32 %v2984_v62  ;;  %v3094_v62 = vld [vmem:[%s4692_s9 + $0x18] sm:$0xff] }
 0x9c2   :  { %v3282_v35 = vpop.eup %3281 }
 0x9c3   :  { %v2414_v1 = vadd.f32 1.0, %v3282_v35  ;;  %v3284_v17 = vpop.eup %3283 }
 0x9c4   :  { %v2434_v63 = vadd.f32 1.0, %v3284_v17 }
 0x9c5   :  { %3285 = vrcp.f32 %v2414_v1  ;;  %v2426_v42 = vand.u32 2147483648, %v2414_v1  ;;  %vm2420_vm1 = vweird.f32 %v2414_v1  ;;  %v2424_v56 = vand.u32 2147483647, %v2414_v1 }
 0x9c6   :  { %3287 = vrcp.f32 %v2434_v63  ;;  %v2446_v12 = vand.u32 2147483648, %v2434_v63  ;;  %vm2440_vm5 = vweird.f32 %v2434_v63  ;;  %v2444_v18 = vand.u32 2147483647, %v2434_v63 }
 0x9c7   :  { %v2427_v50 = vor.u32 1.1754944e-38, %v2426_v42  ;;  %vm2425_vm3 = vcmp.eq.f32.partialorder %v2424_v56, 8.507059e+37 }
 0x9c8   :  { %v2447_v24 = vor.u32 1.1754944e-38, %v2446_v12  ;;  %vm2445_vm7 = vcmp.eq.f32.partialorder %v2444_v18, 8.507059e+37 }
 0x9cb   :  { %v3286_v15 = vpop.eup %3285 }
 0x9cc   :  { %v2416_v48 = vmul.f32 %v3286_v15, %v2414_v1  ;;  %v3288_v37 = vpop.eup %3287  ;;  %vm2421_vm0 = vweird.f32 %v3286_v15  ;;  %v3093_v1 = vld [vmem:[%s4692_s9 + $0x10] sm:$0xff] }
 0x9cd   :  { %v2436_v44 = vmul.f32 %v3288_v37, %v2434_v63  ;;  %vm2422_vm2 = vmor %vm2420_vm1, %vm2421_vm0  ;;  %vm2441_vm4 = vweird.f32 %v3288_v37  ;;  %v3092_v63 = vld [vmem:[%s4692_s9 + $0x8] sm:$0xff]  ;;  %vm2652_vm0 = vcmask 23552  }
 0x9ce   :  { %v2417_v38 = vsub.f32 1.0, %v2416_v48  ;;  %vm2442_vm6 = vmor %vm2440_vm5, %vm2441_vm4 }
 0x9cf   :  { %v2437_v28 = vsub.f32 1.0, %v2436_v44 }
 0x9d0   :  { %v2418_v58 = vmul.f32 %v3286_v15, %v2417_v38 }
 0x9d1   :  { %v2438_v11 = vmul.f32 %v3288_v37, %v2437_v28 }
 0x9d2   :  { %v2419_v47 = vadd.f32 %v3286_v15, %v2418_v58 }
 0x9d3   :  { %v2439_v22 = vadd.f32 %v3288_v37, %v2438_v11 }
 0x9d4   :  { %v2423_v41 = vsel %vm2422_vm2, %v3286_v15, %v2419_v47 }
 0x9d5   :  { %v2428_v29 = vsel %vm2425_vm3, %v2427_v50, %v2423_v41  ;;  %v2443_v9 = vsel %vm2442_vm6, %v3288_v37, %v2439_v22 }
 0x9d6   :  { %v2448_v40 = vsel %vm2445_vm7, %v2447_v24, %v2443_v9 }
 0x9d7   :  { %v2466_v13 = vsub.f32 1.0, %v2448_v40 }
 0xa1a   :  { %v4640_v53 = vpop.f32.mrf.mxu0 }
 0xa20   :  { %v2361_v52 = vpop.f32.mrf.mxu3 }
 0xa22   :  { %v2376_v23 = vpop.f32.mrf.mxu0 }
 0xa23   :  { %v3091_v23 = vld [vmem:[%s4692_s9] sm:$0xff] }
 0xa28   :  { %v2363_v10 = vpop.f32.mrf.mxu3 }
 0xa30   :  { %v2459_v33 = vpop.f32.mrf.mxu3 }
 0xa31   :  { %v2460_v21 = vadd.f32 %v4561_v49, %v2459_v33  ;;  %v2468_v49 = vmul.f32 %v2448_v40, %v4565_v14  ;;  %v3096_v14 = vld [vmem:[%s4692_s9 + $0x28] sm:$0xff] }
 0xa32   :  { %2641 = vmatpush.bf16.msra.mxu0 %v3096_v14 }
 0xa33   :  { %v2463_v30 = vmul.f32 %v2460_v21, %v2428_v29 }
 0xa35   :  { %v2464_v16 = vadd.f32 %v2463_v30, %v298_v60 }
 0xa36   :  { %2642 = vmatpush.bf16.msra.mxu0 %v3095_v36 }
 0xa37   :  { %3289 = vtanh.f32 %v2464_v16 }
 0xa38   :  { %v2461_v7 = vpop.f32.mrf.mxu3 }
 0xa3a   :  { %2643 = vmatpush.bf16.msra.mxu0 %v3094_v62 }
 0xa3d   :  { %v3290_v54 = vpop.eup %3289 }
 0xa3e   :  { %v2467_v8 = vmul.f32 %v3290_v54, %v2466_v13  ;;  %2644 = vmatpush.bf16.msra.mxu0 %v3093_v1 }
 0xa40   :  { %v2559_v31 = vpop.f32.mrf.mxu3  ;;  %v2469_v59 = vadd.f32 %v2468_v49, %v2467_v8 }
 0xa41   :  { %v2560_v25 = vadd.f32 %v4613_v43, %v2559_v31 }
 0xa42   :  { %v2470_v51 = vpack.c.bf16 %v2469_v59, %v2469_v59  ;;  %2645 = vmatpush.bf16.msra.mxu0 %v3092_v63 }
 0xa44   :  { %2479 = vmatmul.bf16.vlgmr.msrb.gmra.mxu0 %v2470_v51  ;;  %2492 = vmatmul.bf16.vlgmr.msrb.gmra.mxu1 %v2470_v51 }
 0xa45   :  { %2505 = vmatmul.bf16.vlgmr.msrb.gmra.mxu2 %v2470_v51 }
 0xa46   :  { %2646 = vmatpush.bf16.msra.mxu0 %v3091_v23 }
 0xa48   :  { %v2561_v27 = vpop.f32.mrf.mxu3 }
 0xac1   :  { %v2480_v46 = vpop.f32.mrf.mxu0  ;;  %v2493_v32 = vpop.f32.mrf.mxu1 }
 0xac2   :  { %v2481_v19 = vadd.f32 %v2480_v46, %v5213_v3  ;;  %v2494_v5 = vadd.f32 %v2493_v32, %v5212_v20 }
 0xac4   :  { %v2510_v55 = vadd.f32 %v2481_v19, %v2361_v52  ;;  %v2530_v39 = vadd.f32 %v2494_v5, %v4640_v53 }
 0xac6   :  { %v2985_v4 = vmul.f32 -1.442695, %v2510_v55  ;;  %v2986_v2 = vmul.f32 -1.442695, %v2530_v39 }
 0xac8   :  { %3291 = vpow2.f32 %v2985_v4  ;;  %v2506_v35 = vpop.f32.mrf.mxu2 }
 0xac9   :  { %3293 = vpow2.f32 %v2986_v2  ;;  %v2482_v3 = vpop.f32.mrf.mxu0  ;;  %v2495_v20 = vpop.f32.mrf.mxu1  ;;  %v2507_v21 = vadd.f32 %v2506_v35, %v3874_v6  ;;  %v3140_v6 = vld [vmem:[%s4693_s10] ss:$0 sm:$0xff] }
 0xace   :  { %v3292_v17 = vpop.eup %3291 }
 0xacf   :  { %v3294_v53 = vpop.eup %3293  ;;  %v2514_v15 = vadd.f32 1.0, %v3292_v17 }
 0xad0   :  { %v2534_v48 = vadd.f32 1.0, %v3294_v53  ;;  %v2508_v52 = vpop.f32.mrf.mxu2 }
 0xad1   :  { %3295 = vrcp.f32 %v2514_v15  ;;  %v2526_v0 = vand.u32 2147483648, %v2514_v15  ;;  %v2524_v42 = vand.u32 2147483647, %v2514_v15  ;;  %vm2520_vm9 = vweird.f32 %v2514_v15 }
 0xad2   :  { %3297 = vrcp.f32 %v2534_v48  ;;  %v2546_v33 = vand.u32 2147483648, %v2534_v48  ;;  %vm2540_vm13 = vweird.f32 %v2534_v48  ;;  %v2544_v29 = vand.u32 2147483647, %v2534_v48 }
 0xad3   :  { %v2527_v57 = vor.u32 1.1754944e-38, %v2526_v0  ;;  %vm2525_vm11 = vcmp.eq.f32.partialorder %v2524_v42, 8.507059e+37 }
 0xad4   :  { %v2547_v30 = vor.u32 1.1754944e-38, %v2546_v33  ;;  %vm2545_vm15 = vcmp.eq.f32.partialorder %v2544_v29, 8.507059e+37 }
 0xad7   :  { %v3296_v37 = vpop.eup %3295 }
 0xad8   :  { %v3298_v38 = vpop.eup %3297  ;;  %v2516_v44 = vmul.f32 %v3296_v37, %v2514_v15  ;;  %vm2521_vm8 = vweird.f32 %v3296_v37 }
 0xad9   :  { %v2536_v58 = vmul.f32 %v3298_v38, %v2534_v48  ;;  %vm2522_vm10 = vmor %vm2520_vm9, %vm2521_vm8  ;;  %vm2541_vm12 = vweird.f32 %v3298_v38 }
 0xada   :  { %v2517_v10 = vsub.f32 1.0, %v2516_v44  ;;  %vm2542_vm14 = vmor %vm2540_vm13, %vm2541_vm12 }
 0xadb   :  { %v2537_v28 = vsub.f32 1.0, %v2536_v58 }
 0xadc   :  { %v2518_v47 = vmul.f32 %v3296_v37, %v2517_v10 }
 0xadd   :  { %v2538_v56 = vmul.f32 %v3298_v38, %v2537_v28 }
 0xade   :  { %v2519_v11 = vadd.f32 %v3296_v37, %v2518_v47 }
 0xadf   :  { %v2539_v50 = vadd.f32 %v3298_v38, %v2538_v56 }
 0xae0   :  { %v2523_v34 = vsel %vm2522_vm10, %v3296_v37, %v2519_v11 }
 0xae1   :  { %v2528_v41 = vsel %vm2525_vm11, %v2527_v57, %v2523_v34  ;;  %v2543_v12 = vsel %vm2542_vm14, %v3298_v38, %v2539_v50 }
 0xae2   :  { %v2563_v22 = vmul.f32 %v2560_v25, %v2528_v41  ;;  %v2548_v18 = vsel %vm2545_vm15, %v2547_v30, %v2543_v12 }
 0xae3   :  { %v2566_v16 = vsub.f32 1.0, %v2548_v18  ;;  %v2568_v24 = vmul.f32 %v2548_v18, %v4619_v26 }
 0xae4   :  { %v2564_v60 = vadd.f32 %v2563_v22, %v2507_v21 }
 0xae6   :  { %3299 = vtanh.f32 %v2564_v60 }
 0xaec   :  { %v3300_v43 = vpop.eup %3299 }
 0xaed   :  { %v2567_v9 = vmul.f32 %v3300_v43, %v2566_v16 }
 0xaef   :  { %v2569_v7 = vadd.f32 %v2568_v24, %v2567_v9 }
 0xaf1   :  { %v2570_v40 = vpack.c.bf16 %v2569_v7, %v2569_v7 }
 0xaf3   :  { %2647 = vmatmul.bf16.vlgmr.msra.gmra.mxu0 %v2570_v40 }
 0xb70   :  { %v2648_v13 = vpop.f32.mrf.mxu0 }
 0xb71   :  { %v2649_v54 = vadd.f32 %v3140_v6, %v2648_v13 }
 0xb73   :  { %2653 = vst.msk [vmem:[%s4694_s11] sm:$0xff] %vm2652_vm0, %v2649_v54 }
 0xb78   :  { %v2650_v8 = vpop.f32.mrf.mxu0 }
 0xb79   :  { %2658 = vsyncpa [#allocation4], 1 }
 0xb7a   :  { %2659 = vsyncpa [#allocation6], 1 }

</bundles_post_ra>
